<compile_context>
chip_gen: v7x
topology: tpu7x:2x2x1
jax: 0.10.0
libtpu: 0.0.40
codegen_flags: <defaults>
</compile_context>

<pallas_src>
import functools

import jax
import jax.numpy as jnp
import numpy as np
from jax import lax
from jax.experimental import pallas as pl
from jax.experimental.pallas import tpu as pltpu


# ----------------------------------------------------------------------------
# Fused kernel: 20-step LSTMCell + stacked g-MLP + f-MLP head.
# ----------------------------------------------------------------------------
def _fused_kernel(xseq_ref, h0_ref, c0_ref, wih_ref, whh_ref, lb_ref, x_ref,
                  gw1_hbm, gb1_ref, gw2_ref, gb2_ref, gw3_ref, gb3_ref,
                  fw1x_ref, fw1c_ref, fb1_ref, fw2_ref, fb2_ref, fw3_ref, fb3_ref,
                  out_ref, xp_scr, hdense_scr, gw1_vmem, gw1_sem,
                  *, hidden, num_agents, batch, T):
    H = hidden
    N = 2 * batch * num_agents     # LSTM rows, ordered (agent, view, batch)
    R = 2 * batch                  # rows per agent block == stacked g-MLP rows
    TH = T * H
    MP = gb1_ref.shape[1]

    # ---- kick off the big g_w1 weight fetch (only needed AFTER the recurrence),
    # so the DMA overlaps the serial 20-step loop instead of serializing before it.
    gw1_copy = pltpu.make_async_copy(gw1_hbm, gw1_vmem, gw1_sem)
    gw1_copy.start()

    # ---- hoisted input projection + fused bias on the MXU.
    # xseq is time-major (T*N, 8) with K zero-padded 2->8; one matmul replaces
    # the per-column broadcast MACs.  Off the recurrence critical path.
    xp_scr[...] = (jnp.dot(xseq_ref[...], wih_ref[...],
                           preferred_element_type=jnp.float32)
                   + lb_ref[...])                              # (T*N, 4H)

    whh = whh_ref[...]                                         # (H, 4H)
    h = h0_ref[...]                                            # (N, H)
    c = c0_ref[...]                                            # (N, H)

    # ---- T-step LSTM recurrence, fully unrolled (T compile-time constant).
    # The g-gate columns of w_ih/w_hh/bias were pre-scaled by 2 at prep time, so
    # ONE sigmoid over the whole (N,4H) tile covers all four gates and the g gate
    # is recovered as tanh(x) = 2*sigmoid(2x) - 1 (a cheap VPU FMA).
    for t in range(T):
        gates = (xp_scr[t * N:(t + 1) * N, :]
                 + jnp.dot(h, whh, preferred_element_type=jnp.float32))  # (N, 4H)
        sig = jax.nn.sigmoid(gates)
        i_g = sig[:, 0 * H:1 * H]
        f_g = sig[:, 1 * H:2 * H]
        g_g = 2.0 * sig[:, 2 * H:3 * H] - 1.0                  # == tanh(raw g)
        o_g = sig[:, 3 * H:4 * H]
        c = f_g * c + i_g * g_g
        h = o_g * jnp.tanh(c)
        # ONE dense (N, H) store per step; columns ordered (time, hidden).
        # Every column of hdense_scr is written exactly once per call (no stale
        # VMEM reaches the g_w1 contraction).
        hdense_scr[:, t * H:(t + 1) * H] = h

    # ---- stacked g-MLP: both views in one pass (2*batch rows).
    # Layer 1 as a per-agent accumulating matmul: hdense rows (agent, view, batch)
    # with per-agent columns (time, hidden) contract against the agent-a row block
    # of g_w1 (rows ordered (agent, time, hidden)) — no weight reorder needed.
    gw1_copy.wait()
    g1_pre = jnp.zeros((R, MP), jnp.float32)
    for a in range(num_agents):
        g1_pre = g1_pre + jnp.dot(hdense_scr[a * R:(a + 1) * R, :],
                                  gw1_vmem[a * TH:(a + 1) * TH, :],
                                  preferred_element_type=jnp.float32)
    g1 = jnp.maximum(g1_pre + gb1_ref[...], 0.0)
    g2 = jnp.maximum(jnp.dot(g1, gw2_ref[...], preferred_element_type=jnp.float32)
                     + gb2_ref[...], 0.0)
    g3 = jnp.maximum(jnp.dot(g2, gw3_ref[...], preferred_element_type=jnp.float32)
                     + gb3_ref[...], 0.0)                      # (2*batch, MP)
    cdiff = g3[:batch, :] - g3[batch:, :]                      # view0 - view1

    # ---- f-MLP head; concat([x, cdiff]) @ f_w1 computed as a split matmul.
    d = jnp.maximum(jnp.dot(x_ref[...], fw1x_ref[...], preferred_element_type=jnp.float32)
                    + jnp.dot(cdiff, fw1c_ref[...], preferred_element_type=jnp.float32)
                    + fb1_ref[...], 0.0)
    e = jnp.maximum(jnp.dot(d, fw2_ref[...], preferred_element_type=jnp.float32)
                    + fb2_ref[...], 0.0)
    out_ref[...] = jax.nn.sigmoid(
        jnp.dot(e, fw3_ref[...], preferred_element_type=jnp.float32) + fb3_ref[...])


# ----------------------------------------------------------------------------
# Forward wrapper: tiny layout permutations in XLA, everything else in Pallas.
# ----------------------------------------------------------------------------
@functools.partial(jax.jit, static_argnames=("num_agents",))
def forward(prep, x, x_agents, h0, c0, num_agents):
    batch = x.shape[0]
    T = x_agents.shape[3]                       # 20
    H = prep["w_hh_s"].shape[0]
    N = batch * 2 * num_agents
    dg = num_agents * T * H
    MP = prep["g_b1p"].shape[1]
    out_dim = prep["f_w3p"].shape[1]
    assert prep["g_w1p"].shape == (dg, MP), "g_w1 rows must equal num_agents*T*H"

    # LSTM rows ordered (agent, view, batch); time-major, flattened, K padded 2->8.
    x_seq = jnp.transpose(x_agents, (3, 2, 1, 0, 4)).reshape(T * N, 2)
    x_seq8 = jnp.pad(x_seq, ((0, 0), (0, 8 - x_seq.shape[1])))

    def permute_state(s):  # canonical (batch, view, agent) rows -> (agent, view, batch)
        return jnp.transpose(s.reshape(batch, 2, num_agents, H),
                             (2, 1, 0, 3)).reshape(N, H)

    h0p = permute_state(h0)
    c0p = permute_state(c0)

    kernel = functools.partial(_fused_kernel, hidden=H, num_agents=num_agents,
                               batch=batch, T=T)
    vmem = pl.BlockSpec(memory_space=pltpu.MemorySpace.VMEM)
    hbm = pl.BlockSpec(memory_space=pl.ANY)     # g_w1 stays in HBM; kernel DMAs it
    return pl.pallas_call(
        kernel,
        out_shape=jax.ShapeDtypeStruct((batch, out_dim), jnp.float32),
        in_specs=[vmem] * 7 + [hbm] + [vmem] * 12,
        out_specs=vmem,
        scratch_shapes=[pltpu.VMEM((T * N, 4 * H), jnp.float32),   # hoisted x-proj
                        pltpu.VMEM((N, T * H), jnp.float32),       # dense h history
                        pltpu.VMEM((dg, MP), jnp.float32),         # g_w1 landing pad
                        pltpu.SemaphoreType.DMA(())],              # g_w1 DMA sem
    )(x_seq8, h0p, c0p, prep["w_ih8"], prep["w_hh_s"], prep["lstm_b_s"], x,
      prep["g_w1p"], prep["g_b1p"], prep["g_w2p"], prep["g_b2p"],
      prep["g_w3p"], prep["g_b3p"],
      prep["fw1x"], prep["fw1c"], prep["f_b1p"], prep["f_w2p"], prep["f_b2p"],
      prep["f_w3p"], prep["f_b3p"])


# ----------------------------------------------------------------------------
# Deterministic parameter init (PyTorch-style uniform(-1/sqrt(fan_in), ...)).
# ----------------------------------------------------------------------------
def init_params(key, num_agents, hidden_size, mlp_hidden, output_size):
    keys = jax.random.split(key, 12)

    def lin(k, fan_in, fan_out):
        bound = 1.0 / np.sqrt(fan_in)
        k1, k2 = jax.random.split(k)
        w = jax.random.uniform(k1, (fan_in, fan_out), jnp.float32, -bound, bound)
        b = jax.random.uniform(k2, (1, fan_out), jnp.float32, -bound, bound)
        return w, b

    p = {}
    bound = 1.0 / np.sqrt(hidden_size)
    p["w_ih_t"] = jax.random.uniform(keys[0], (2, 4 * hidden_size), jnp.float32, -bound, bound)
    p["w_hh_t"] = jax.random.uniform(keys[1], (hidden_size, 4 * hidden_size), jnp.float32, -bound, bound)
    b_ih = jax.random.uniform(keys[2], (4 * hidden_size,), jnp.float32, -bound, bound)
    b_hh = jax.random.uniform(keys[3], (4 * hidden_size,), jnp.float32, -bound, bound)
    p["lstm_b"] = (b_ih + b_hh).reshape(1, 4 * hidden_size)

    dg = num_agents * 20 * hidden_size
    p["g_w1"], p["g_b1"] = lin(keys[4], dg, mlp_hidden)
    p["g_w2"], p["g_b2"] = lin(keys[5], mlp_hidden, mlp_hidden)
    p["g_w3"], p["g_b3"] = lin(keys[6], mlp_hidden, mlp_hidden)
    p["f_w1"], p["f_b1"] = lin(keys[7], mlp_hidden + 80, mlp_hidden)
    p["f_w2"], p["f_b2"] = lin(keys[8], mlp_hidden, mlp_hidden)
    p["f_w3"], p["f_b3"] = lin(keys[9], mlp_hidden, output_size)
    p["h2p_w"], p["h2p_b"] = lin(keys[10], hidden_size, 2)   # unused (training_step=2)
    return p


# ----------------------------------------------------------------------------
# One-time parameter preparation:
#   * fold the 2x scale into the g-gate columns (single-sigmoid gate trick),
#   * zero-pad the LSTM input weight K from 2 to 8 (MXU-friendly),
#   * lane-pad mlp_hidden to a multiple of 128 and pre-split f_w1 into x / c halves.
# All zero-padding is exact: padded rows/cols and biases are zero and every
# padded layer is followed by ReLU (ReLU(0)=0), so real outputs are unchanged.
# ----------------------------------------------------------------------------
def prepare_params(params, mlp_hidden, x_dim=80):
    MP = ((mlp_hidden + 127) // 128) * 128
    H4 = params["w_hh_t"].shape[1]
    H = H4 // 4

    # 2x on the g-gate (columns 2H:3H): kernel recovers tanh(g)=2*sigmoid(2g)-1.
    gate_scale = jnp.concatenate([jnp.ones((2 * H,), jnp.float32),
                                  2.0 * jnp.ones((H,), jnp.float32),
                                  jnp.ones((H,), jnp.float32)]).reshape(1, H4)

    wih_s = params["w_ih_t"] * gate_scale                       # (2, 4H), scaled
    w_ih8 = jnp.zeros((8, H4), jnp.float32).at[:2, :].set(wih_s)

    def pad_w(w, rows, cols):
        out = jnp.zeros((rows, cols), jnp.float32)
        return out.at[:w.shape[0], :w.shape[1]].set(w)

    def pad_b(b, cols):
        out = jnp.zeros((1, cols), jnp.float32)
        return out.at[:, :b.shape[1]].set(b)

    dg = params["g_w1"].shape[0]
    out_dim = params["f_w3"].shape[1]
    p = {
        "w_ih8": w_ih8,
        "w_hh_s": params["w_hh_t"] * gate_scale,
        "lstm_b_s": params["lstm_b"] * gate_scale,
        "g_w1p": pad_w(params["g_w1"], dg, MP),
        "g_b1p": pad_b(params["g_b1"], MP),
        "g_w2p": pad_w(params["g_w2"], MP, MP),
        "g_b2p": pad_b(params["g_b2"], MP),
        "g_w3p": pad_w(params["g_w3"], MP, MP),
        "g_b3p": pad_b(params["g_b3"], MP),
        "fw1x": pad_w(params["f_w1"][:x_dim, :], x_dim, MP),
        "fw1c": pad_w(params["f_w1"][x_dim:, :], MP, MP),
        "f_b1p": pad_b(params["f_b1"], MP),
        "f_w2p": pad_w(params["f_w2"], MP, MP),
        "f_b2p": pad_b(params["f_b2"], MP),
        "f_w3p": pad_w(params["f_w3"], MP, out_dim),
        "f_b3p": params["f_b3"],
    }
    return jax.tree_util.tree_map(jnp.asarray, p)


# ----------------------------------------------------------------------------
# Pure-JAX reference (canonical layouts, original un-scaled params) for validation.
# ----------------------------------------------------------------------------
def reference_forward(params, x, x_agents, h0, c0, num_agents):
    batch = x.shape[0]
    N = batch * 2 * num_agents
    xa = x_agents.reshape(N, 20, 2)
    xs = jnp.transpose(xa, (1, 0, 2))

    def step(carry, x_t):
        h, c = carry
        gates = x_t @ params["w_ih_t"] + h @ params["w_hh_t"] + params["lstm_b"][0]
        i, f, g, o = jnp.split(gates, 4, axis=1)
        c = jax.nn.sigmoid(f) * c + jax.nn.sigmoid(i) * jnp.tanh(g)
        h = jax.nn.sigmoid(o) * jnp.tanh(c)
        return (h, c), h

    _, hs = lax.scan(step, (h0, c0), xs)
    hidden_size = h0.shape[1]
    states = jnp.transpose(hs, (1, 0, 2)).reshape(batch, 2, num_agents, 20, hidden_size)

    def g_mlp(v):
        h = jax.nn.relu(v @ params["g_w1"] + params["g_b1"])
        h = jax.nn.relu(h @ params["g_w2"] + params["g_b2"])
        h = jax.nn.relu(h @ params["g_w3"] + params["g_b3"])
        return h

    a = g_mlp(states[:, 0].reshape(batch, -1))
    b = g_mlp(states[:, 1].reshape(batch, -1))
    d = jnp.concatenate([x, a - b], axis=1)
    e = jax.nn.relu(d @ params["f_w1"] + params["f_b1"])
    e = jax.nn.relu(e @ params["f_w2"] + params["f_b2"])
    return jax.nn.sigmoid(e @ params["f_w3"] + params["f_b3"])


if __name__ == "__main__":
    num_agents, hidden_size, mlp_hidden, output_size = 4, 32, 64, 8
    batch = 2

    key = jax.random.PRNGKey(0)
    kp, kx, ka, kh, kc = jax.random.split(key, 5)
    params = init_params(kp, num_agents, hidden_size, mlp_hidden, output_size)
    prep = prepare_params(params, mlp_hidden)

    x = jax.random.normal(kx, (batch, 80), jnp.float32)
    x_agents = jax.random.normal(ka, (batch, 2, num_agents, 20, 2), jnp.float32)
    # deterministic replacement for the module's torch.randn init_hidden
    h0 = jax.random.normal(kh, (batch * 2 * num_agents, hidden_size), jnp.float32)
    c0 = jax.random.normal(kc, (batch * 2 * num_agents, hidden_size), jnp.float32)

    out = forward(prep, x, x_agents, h0, c0, num_agents)
    out = jax.block_until_ready(out)
    assert out.shape == (batch, output_size)

    ref = reference_forward(params, x, x_agents, h0, c0, num_agents)
    np.testing.assert_allclose(np.asarray(out), np.asarray(ref), rtol=1e-3, atol=1e-3)

    print("KERNEL_OK")
</pallas_src>

<mosaic_0001>
module attributes {stable_mosaic.version = 11 : i64} {
  func.func @_fused_kernel(%arg0: memref<320x8xf32, #tpu.memory_space<vmem>>, %arg1: memref<16x32xf32, #tpu.memory_space<vmem>>, %arg2: memref<16x32xf32, #tpu.memory_space<vmem>>, %arg3: memref<8x128xf32, #tpu.memory_space<vmem>>, %arg4: memref<32x128xf32, #tpu.memory_space<vmem>>, %arg5: memref<1x128xf32, #tpu.memory_space<vmem>>, %arg6: memref<2x80xf32, #tpu.memory_space<vmem>>, %arg7: memref<2560x128xf32, #tpu.memory_space<any>>, %arg8: memref<1x128xf32, #tpu.memory_space<vmem>>, %arg9: memref<128x128xf32, #tpu.memory_space<vmem>>, %arg10: memref<1x128xf32, #tpu.memory_space<vmem>>, %arg11: memref<128x128xf32, #tpu.memory_space<vmem>>, %arg12: memref<1x128xf32, #tpu.memory_space<vmem>>, %arg13: memref<80x128xf32, #tpu.memory_space<vmem>>, %arg14: memref<128x128xf32, #tpu.memory_space<vmem>>, %arg15: memref<1x128xf32, #tpu.memory_space<vmem>>, %arg16: memref<128x128xf32, #tpu.memory_space<vmem>>, %arg17: memref<1x128xf32, #tpu.memory_space<vmem>>, %arg18: memref<128x8xf32, #tpu.memory_space<vmem>>, %arg19: memref<1x8xf32, #tpu.memory_space<vmem>>, %arg20: memref<2x8xf32, #tpu.memory_space<vmem>>, %arg21: memref<320x128xf32, #tpu.memory_space<vmem>>, %arg22: memref<16x640xf32, #tpu.memory_space<vmem>>, %arg23: memref<2560x128xf32, #tpu.memory_space<vmem>>, %arg24: memref<!tpu.dma_semaphore, #tpu.memory_space<semaphore_mem>>) attributes {dimension_semantics = [], scalar_prefetch = 0 : i64, scratch_operands = 4 : i64, tpu.core_type = #tpu.core_type<tc>} {
    tpu.enqueue_dma source(%arg7 : memref<2560x128xf32, #tpu.memory_space<any>>) target(%arg23 : memref<2560x128xf32, #tpu.memory_space<vmem>>) target_semaphore(%arg24 : memref<!tpu.dma_semaphore, #tpu.memory_space<semaphore_mem>>)
    %c0 = arith.constant 0 : index
    %c0_0 = arith.constant 0 : index
    %0 = vector.load %arg0[%c0, %c0_0] : memref<320x8xf32, #tpu.memory_space<vmem>>, vector<320x8xf32>
    %c0_1 = arith.constant 0 : index
    %c0_2 = arith.constant 0 : index
    %1 = vector.load %arg3[%c0_1, %c0_2] : memref<8x128xf32, #tpu.memory_space<vmem>>, vector<8x128xf32>
    %cst = arith.constant dense<0.000000e+00> : vector<320x128xf32>
    %2 = tpu.matmul %0, %1, %cst {dimension_numbers = #tpu.dot_dimension_numbers<[1], [0], [0], [1], [0, 0, 1, 1], [], []>} : vector<320x8xf32>, vector<8x128xf32>, vector<320x128xf32> -> vector<320x128xf32>
    %c0_3 = arith.constant 0 : index
    %c0_4 = arith.constant 0 : index
    %3 = vector.load %arg5[%c0_3, %c0_4] : memref<1x128xf32, #tpu.memory_space<vmem>>, vector<1x128xf32>
    %4 = vector.broadcast %3 : vector<1x128xf32> to vector<320x128xf32>
    %5 = arith.addf %2, %4 : vector<320x128xf32>
    %c0_5 = arith.constant 0 : index
    %c0_6 = arith.constant 0 : index
    %6 = vector.load %arg21[%c0_5, %c0_6] : memref<320x128xf32, #tpu.memory_space<vmem>>, vector<320x128xf32>
    tpu.vector_store %arg21[%c0_5, %c0_6], %5 {strides = array<i32>} : memref<320x128xf32, #tpu.memory_space<vmem>>, vector<320x128xf32>,
    %c0_7 = arith.constant 0 : index
    %c0_8 = arith.constant 0 : index
    %7 = vector.load %arg4[%c0_7, %c0_8] : memref<32x128xf32, #tpu.memory_space<vmem>>, vector<32x128xf32>
    %c0_9 = arith.constant 0 : index
    %c0_10 = arith.constant 0 : index
    %8 = vector.load %arg1[%c0_9, %c0_10] : memref<16x32xf32, #tpu.memory_space<vmem>>, vector<16x32xf32>
    %c0_11 = arith.constant 0 : index
    %c0_12 = arith.constant 0 : index
    %9 = vector.load %arg2[%c0_11, %c0_12] : memref<16x32xf32, #tpu.memory_space<vmem>>, vector<16x32xf32>
    %c0_13 = arith.constant 0 : index
    %c0_14 = arith.constant 0 : index
    %10 = vector.load %arg21[%c0_13, %c0_14] : memref<320x128xf32, #tpu.memory_space<vmem>>, vector<16x128xf32>
    %cst_15 = arith.constant dense<0.000000e+00> : vector<16x128xf32>
    %11 = tpu.matmul %8, %7, %cst_15 {dimension_numbers = #tpu.dot_dimension_numbers<[1], [0], [0], [1], [0, 0, 1, 1], [], []>} : vector<16x32xf32>, vector<32x128xf32>, vector<16x128xf32> -> vector<16x128xf32>
    %12 = arith.addf %10, %11 : vector<16x128xf32>
    %13 = arith.negf %12 : vector<16x128xf32>
    %14 = math.exp %13 : vector<16x128xf32>
    %cst_16 = arith.constant 1.000000e+00 : f32
    %15 = vector.broadcast %cst_16 : f32 to vector<16x128xf32>
    %16 = arith.addf %15, %14 : vector<16x128xf32>
    %17 = arith.divf %15, %16 : vector<16x128xf32>
    %18 = vector.extract_strided_slice %17 {offsets = [0, 0], sizes = [16, 32], strides = [1, 1]} : vector<16x128xf32> to vector<16x32xf32>
    %19 = vector.extract_strided_slice %17 {offsets = [0, 32], sizes = [16, 32], strides = [1, 1]} : vector<16x128xf32> to vector<16x32xf32>
    %20 = vector.extract_strided_slice %17 {offsets = [0, 64], sizes = [16, 32], strides = [1, 1]} : vector<16x128xf32> to vector<16x32xf32>
    %cst_17 = arith.constant 2.000000e+00 : f32
    %21 = vector.broadcast %cst_17 : f32 to vector<16x32xf32>
    %22 = arith.mulf %21, %20 : vector<16x32xf32>
    %cst_18 = arith.constant 1.000000e+00 : f32
    %23 = vector.broadcast %cst_18 : f32 to vector<16x32xf32>
    %24 = arith.subf %22, %23 : vector<16x32xf32>
    %25 = vector.extract_strided_slice %17 {offsets = [0, 96], sizes = [16, 32], strides = [1, 1]} : vector<16x128xf32> to vector<16x32xf32>
    %26 = arith.mulf %19, %9 : vector<16x32xf32>
    %27 = arith.mulf %18, %24 : vector<16x32xf32>
    %28 = arith.addf %26, %27 : vector<16x32xf32>
    %29 = math.tanh %28 : vector<16x32xf32>
    %30 = arith.mulf %25, %29 : vector<16x32xf32>
    %c0_19 = arith.constant 0 : index
    %c0_20 = arith.constant 0 : index
    %31 = vector.load %arg22[%c0_19, %c0_20] : memref<16x640xf32, #tpu.memory_space<vmem>>, vector<16x32xf32>
    tpu.vector_store %arg22[%c0_19, %c0_20], %30 {strides = array<i32>} : memref<16x640xf32, #tpu.memory_space<vmem>>, vector<16x32xf32>,
    %c16 = arith.constant 16 : index
    %c0_21 = arith.constant 0 : index
    %32 = vector.load %arg21[%c16, %c0_21] : memref<320x128xf32, #tpu.memory_space<vmem>>, vector<16x128xf32>
    %cst_22 = arith.constant dense<0.000000e+00> : vector<16x128xf32>
    %33 = tpu.matmul %30, %7, %cst_22 {dimension_numbers = #tpu.dot_dimension_numbers<[1], [0], [0], [1], [0, 0, 1, 1], [], []>} : vector<16x32xf32>, vector<32x128xf32>, vector<16x128xf32> -> vector<16x128xf32>
    %34 = arith.addf %32, %33 : vector<16x128xf32>
    %35 = arith.negf %34 : vector<16x128xf32>
    %36 = math.exp %35 : vector<16x128xf32>
    %cst_23 = arith.constant 1.000000e+00 : f32
    %37 = vector.broadcast %cst_23 : f32 to vector<16x128xf32>
    %38 = arith.addf %37, %36 : vector<16x128xf32>
    %39 = arith.divf %37, %38 : vector<16x128xf32>
    %40 = vector.extract_strided_slice %39 {offsets = [0, 0], sizes = [16, 32], strides = [1, 1]} : vector<16x128xf32> to vector<16x32xf32>
    %41 = vector.extract_strided_slice %39 {offsets = [0, 32], sizes = [16, 32], strides = [1, 1]} : vector<16x128xf32> to vector<16x32xf32>
    %42 = vector.extract_strided_slice %39 {offsets = [0, 64], sizes = [16, 32], strides = [1, 1]} : vector<16x128xf32> to vector<16x32xf32>
    %cst_24 = arith.constant 2.000000e+00 : f32
    %43 = vector.broadcast %cst_24 : f32 to vector<16x32xf32>
    %44 = arith.mulf %43, %42 : vector<16x32xf32>
    %cst_25 = arith.constant 1.000000e+00 : f32
    %45 = vector.broadcast %cst_25 : f32 to vector<16x32xf32>
    %46 = arith.subf %44, %45 : vector<16x32xf32>
    %47 = vector.extract_strided_slice %39 {offsets = [0, 96], sizes = [16, 32], strides = [1, 1]} : vector<16x128xf32> to vector<16x32xf32>
    %48 = arith.mulf %41, %28 : vector<16x32xf32>
    %49 = arith.mulf %40, %46 : vector<16x32xf32>
    %50 = arith.addf %48, %49 : vector<16x32xf32>
    %51 = math.tanh %50 : vector<16x32xf32>
    %52 = arith.mulf %47, %51 : vector<16x32xf32>
    %c0_26 = arith.constant 0 : index
    %c32 = arith.constant 32 : index
    %53 = vector.load %arg22[%c0_26, %c32] : memref<16x640xf32, #tpu.memory_space<vmem>>, vector<16x32xf32>
    tpu.vector_store %arg22[%c0_26, %c32], %52 {strides = array<i32>} : memref<16x640xf32, #tpu.memory_space<vmem>>, vector<16x32xf32>,
    %c32_27 = arith.constant 32 : index
    %c0_28 = arith.constant 0 : index
    %54 = vector.load %arg21[%c32_27, %c0_28] : memref<320x128xf32, #tpu.memory_space<vmem>>, vector<16x128xf32>
    %cst_29 = arith.constant dense<0.000000e+00> : vector<16x128xf32>
    %55 = tpu.matmul %52, %7, %cst_29 {dimension_numbers = #tpu.dot_dimension_numbers<[1], [0], [0], [1], [0, 0, 1, 1], [], []>} : vector<16x32xf32>, vector<32x128xf32>, vector<16x128xf32> -> vector<16x128xf32>
    %56 = arith.addf %54, %55 : vector<16x128xf32>
    %57 = arith.negf %56 : vector<16x128xf32>
    %58 = math.exp %57 : vector<16x128xf32>
    %cst_30 = arith.constant 1.000000e+00 : f32
    %59 = vector.broadcast %cst_30 : f32 to vector<16x128xf32>
    %60 = arith.addf %59, %58 : vector<16x128xf32>
    %61 = arith.divf %59, %60 : vector<16x128xf32>
    %62 = vector.extract_strided_slice %61 {offsets = [0, 0], sizes = [16, 32], strides = [1, 1]} : vector<16x128xf32> to vector<16x32xf32>
    %63 = vector.extract_strided_slice %61 {offsets = [0, 32], sizes = [16, 32], strides = [1, 1]} : vector<16x128xf32> to vector<16x32xf32>
    %64 = vector.extract_strided_slice %61 {offsets = [0, 64], sizes = [16, 32], strides = [1, 1]} : vector<16x128xf32> to vector<16x32xf32>
    %cst_31 = arith.constant 2.000000e+00 : f32
    %65 = vector.broadcast %cst_31 : f32 to vector<16x32xf32>
    %66 = arith.mulf %65, %64 : vector<16x32xf32>
    %cst_32 = arith.constant 1.000000e+00 : f32
    %67 = vector.broadcast %cst_32 : f32 to vector<16x32xf32>
    %68 = arith.subf %66, %67 : vector<16x32xf32>
    %69 = vector.extract_strided_slice %61 {offsets = [0, 96], sizes = [16, 32], strides = [1, 1]} : vector<16x128xf32> to vector<16x32xf32>
    %70 = arith.mulf %63, %50 : vector<16x32xf32>
    %71 = arith.mulf %62, %68 : vector<16x32xf32>
    %72 = arith.addf %70, %71 : vector<16x32xf32>
    %73 = math.tanh %72 : vector<16x32xf32>
    %74 = arith.mulf %69, %73 : vector<16x32xf32>
    %c0_33 = arith.constant 0 : index
    %c64 = arith.constant 64 : index
    %75 = vector.load %arg22[%c0_33, %c64] : memref<16x640xf32, #tpu.memory_space<vmem>>, vector<16x32xf32>
    tpu.vector_store %arg22[%c0_33, %c64], %74 {strides = array<i32>} : memref<16x640xf32, #tpu.memory_space<vmem>>, vector<16x32xf32>,
    %c48 = arith.constant 48 : index
    %c0_34 = arith.constant 0 : index
    %76 = vector.load %arg21[%c48, %c0_34] : memref<320x128xf32, #tpu.memory_space<vmem>>, vector<16x128xf32>
    %cst_35 = arith.constant dense<0.000000e+00> : vector<16x128xf32>
    %77 = tpu.matmul %74, %7, %cst_35 {dimension_numbers = #tpu.dot_dimension_numbers<[1], [0], [0], [1], [0, 0, 1, 1], [], []>} : vector<16x32xf32>, vector<32x128xf32>, vector<16x128xf32> -> vector<16x128xf32>
    %78 = arith.addf %76, %77 : vector<16x128xf32>
    %79 = arith.negf %78 : vector<16x128xf32>
    %80 = math.exp %79 : vector<16x128xf32>
    %cst_36 = arith.constant 1.000000e+00 : f32
    %81 = vector.broadcast %cst_36 : f32 to vector<16x128xf32>
    %82 = arith.addf %81, %80 : vector<16x128xf32>
    %83 = arith.divf %81, %82 : vector<16x128xf32>
    %84 = vector.extract_strided_slice %83 {offsets = [0, 0], sizes = [16, 32], strides = [1, 1]} : vector<16x128xf32> to vector<16x32xf32>
    %85 = vector.extract_strided_slice %83 {offsets = [0, 32], sizes = [16, 32], strides = [1, 1]} : vector<16x128xf32> to vector<16x32xf32>
    %86 = vector.extract_strided_slice %83 {offsets = [0, 64], sizes = [16, 32], strides = [1, 1]} : vector<16x128xf32> to vector<16x32xf32>
    %cst_37 = arith.constant 2.000000e+00 : f32
    %87 = vector.broadcast %cst_37 : f32 to vector<16x32xf32>
    %88 = arith.mulf %87, %86 : vector<16x32xf32>
    %cst_38 = arith.constant 1.000000e+00 : f32
    %89 = vector.broadcast %cst_38 : f32 to vector<16x32xf32>
    %90 = arith.subf %88, %89 : vector<16x32xf32>
    %91 = vector.extract_strided_slice %83 {offsets = [0, 96], sizes = [16, 32], strides = [1, 1]} : vector<16x128xf32> to vector<16x32xf32>
    %92 = arith.mulf %85, %72 : vector<16x32xf32>
    %93 = arith.mulf %84, %90 : vector<16x32xf32>
    %94 = arith.addf %92, %93 : vector<16x32xf32>
    %95 = math.tanh %94 : vector<16x32xf32>
    %96 = arith.mulf %91, %95 : vector<16x32xf32>
    %c0_39 = arith.constant 0 : index
    %c96 = arith.constant 96 : index
    %97 = vector.load %arg22[%c0_39, %c96] : memref<16x640xf32, #tpu.memory_space<vmem>>, vector<16x32xf32>
    tpu.vector_store %arg22[%c0_39, %c96], %96 {strides = array<i32>} : memref<16x640xf32, #tpu.memory_space<vmem>>, vector<16x32xf32>,
    %c64_40 = arith.constant 64 : index
    %c0_41 = arith.constant 0 : index
    %98 = vector.load %arg21[%c64_40, %c0_41] : memref<320x128xf32, #tpu.memory_space<vmem>>, vector<16x128xf32>
    %cst_42 = arith.constant dense<0.000000e+00> : vector<16x128xf32>
    %99 = tpu.matmul %96, %7, %cst_42 {dimension_numbers = #tpu.dot_dimension_numbers<[1], [0], [0], [1], [0, 0, 1, 1], [], []>} : vector<16x32xf32>, vector<32x128xf32>, vector<16x128xf32> -> vector<16x128xf32>
    %100 = arith.addf %98, %99 : vector<16x128xf32>
    %101 = arith.negf %100 : vector<16x128xf32>
    %102 = math.exp %101 : vector<16x128xf32>
    %cst_43 = arith.constant 1.000000e+00 : f32
    %103 = vector.broadcast %cst_43 : f32 to vector<16x128xf32>
    %104 = arith.addf %103, %102 : vector<16x128xf32>
    %105 = arith.divf %103, %104 : vector<16x128xf32>
    %106 = vector.extract_strided_slice %105 {offsets = [0, 0], sizes = [16, 32], strides = [1, 1]} : vector<16x128xf32> to vector<16x32xf32>
    %107 = vector.extract_strided_slice %105 {offsets = [0, 32], sizes = [16, 32], strides = [1, 1]} : vector<16x128xf32> to vector<16x32xf32>
    %108 = vector.extract_strided_slice %105 {offsets = [0, 64], sizes = [16, 32], strides = [1, 1]} : vector<16x128xf32> to vector<16x32xf32>
    %cst_44 = arith.constant 2.000000e+00 : f32
    %109 = vector.broadcast %cst_44 : f32 to vector<16x32xf32>
    %110 = arith.mulf %109, %108 : vector<16x32xf32>
    %cst_45 = arith.constant 1.000000e+00 : f32
    %111 = vector.broadcast %cst_45 : f32 to vector<16x32xf32>
    %112 = arith.subf %110, %111 : vector<16x32xf32>
    %113 = vector.extract_strided_slice %105 {offsets = [0, 96], sizes = [16, 32], strides = [1, 1]} : vector<16x128xf32> to vector<16x32xf32>
    %114 = arith.mulf %107, %94 : vector<16x32xf32>
    %115 = arith.mulf %106, %112 : vector<16x32xf32>
    %116 = arith.addf %114, %115 : vector<16x32xf32>
    %117 = math.tanh %116 : vector<16x32xf32>
    %118 = arith.mulf %113, %117 : vector<16x32xf32>
    %c0_46 = arith.constant 0 : index
    %c128 = arith.constant 128 : index
    %119 = vector.load %arg22[%c0_46, %c128] : memref<16x640xf32, #tpu.memory_space<vmem>>, vector<16x32xf32>
    tpu.vector_store %arg22[%c0_46, %c128], %118 {strides = array<i32>} : memref<16x640xf32, #tpu.memory_space<vmem>>, vector<16x32xf32>,
    %c80 = arith.constant 80 : index
    %c0_47 = arith.constant 0 : index
    %120 = vector.load %arg21[%c80, %c0_47] : memref<320x128xf32, #tpu.memory_space<vmem>>, vector<16x128xf32>
    %cst_48 = arith.constant dense<0.000000e+00> : vector<16x128xf32>
    %121 = tpu.matmul %118, %7, %cst_48 {dimension_numbers = #tpu.dot_dimension_numbers<[1], [0], [0], [1], [0, 0, 1, 1], [], []>} : vector<16x32xf32>, vector<32x128xf32>, vector<16x128xf32> -> vector<16x128xf32>
    %122 = arith.addf %120, %121 : vector<16x128xf32>
    %123 = arith.negf %122 : vector<16x128xf32>
    %124 = math.exp %123 : vector<16x128xf32>
    %cst_49 = arith.constant 1.000000e+00 : f32
    %125 = vector.broadcast %cst_49 : f32 to vector<16x128xf32>
    %126 = arith.addf %125, %124 : vector<16x128xf32>
    %127 = arith.divf %125, %126 : vector<16x128xf32>
    %128 = vector.extract_strided_slice %127 {offsets = [0, 0], sizes = [16, 32], strides = [1, 1]} : vector<16x128xf32> to vector<16x32xf32>
    %129 = vector.extract_strided_slice %127 {offsets = [0, 32], sizes = [16, 32], strides = [1, 1]} : vector<16x128xf32> to vector<16x32xf32>
    %130 = vector.extract_strided_slice %127 {offsets = [0, 64], sizes = [16, 32], strides = [1, 1]} : vector<16x128xf32> to vector<16x32xf32>
    %cst_50 = arith.constant 2.000000e+00 : f32
    %131 = vector.broadcast %cst_50 : f32 to vector<16x32xf32>
    %132 = arith.mulf %131, %130 : vector<16x32xf32>
    %cst_51 = arith.constant 1.000000e+00 : f32
    %133 = vector.broadcast %cst_51 : f32 to vector<16x32xf32>
    %134 = arith.subf %132, %133 : vector<16x32xf32>
    %135 = vector.extract_strided_slice %127 {offsets = [0, 96], sizes = [16, 32], strides = [1, 1]} : vector<16x128xf32> to vector<16x32xf32>
    %136 = arith.mulf %129, %116 : vector<16x32xf32>
    %137 = arith.mulf %128, %134 : vector<16x32xf32>
    %138 = arith.addf %136, %137 : vector<16x32xf32>
    %139 = math.tanh %138 : vector<16x32xf32>
    %140 = arith.mulf %135, %139 : vector<16x32xf32>
    %c0_52 = arith.constant 0 : index
    %c160 = arith.constant 160 : index
    %141 = vector.load %arg22[%c0_52, %c160] : memref<16x640xf32, #tpu.memory_space<vmem>>, vector<16x32xf32>
    tpu.vector_store %arg22[%c0_52, %c160], %140 {strides = array<i32>} : memref<16x640xf32, #tpu.memory_space<vmem>>, vector<16x32xf32>,
    %c96_53 = arith.constant 96 : index
    %c0_54 = arith.constant 0 : index
    %142 = vector.load %arg21[%c96_53, %c0_54] : memref<320x128xf32, #tpu.memory_space<vmem>>, vector<16x128xf32>
    %cst_55 = arith.constant dense<0.000000e+00> : vector<16x128xf32>
    %143 = tpu.matmul %140, %7, %cst_55 {dimension_numbers = #tpu.dot_dimension_numbers<[1], [0], [0], [1], [0, 0, 1, 1], [], []>} : vector<16x32xf32>, vector<32x128xf32>, vector<16x128xf32> -> vector<16x128xf32>
    %144 = arith.addf %142, %143 : vector<16x128xf32>
    %145 = arith.negf %144 : vector<16x128xf32>
    %146 = math.exp %145 : vector<16x128xf32>
    %cst_56 = arith.constant 1.000000e+00 : f32
    %147 = vector.broadcast %cst_56 : f32 to vector<16x128xf32>
    %148 = arith.addf %147, %146 : vector<16x128xf32>
    %149 = arith.divf %147, %148 : vector<16x128xf32>
    %150 = vector.extract_strided_slice %149 {offsets = [0, 0], sizes = [16, 32], strides = [1, 1]} : vector<16x128xf32> to vector<16x32xf32>
    %151 = vector.extract_strided_slice %149 {offsets = [0, 32], sizes = [16, 32], strides = [1, 1]} : vector<16x128xf32> to vector<16x32xf32>
    %152 = vector.extract_strided_slice %149 {offsets = [0, 64], sizes = [16, 32], strides = [1, 1]} : vector<16x128xf32> to vector<16x32xf32>
    %cst_57 = arith.constant 2.000000e+00 : f32
    %153 = vector.broadcast %cst_57 : f32 to vector<16x32xf32>
    %154 = arith.mulf %153, %152 : vector<16x32xf32>
    %cst_58 = arith.constant 1.000000e+00 : f32
    %155 = vector.broadcast %cst_58 : f32 to vector<16x32xf32>
    %156 = arith.subf %154, %155 : vector<16x32xf32>
    %157 = vector.extract_strided_slice %149 {offsets = [0, 96], sizes = [16, 32], strides = [1, 1]} : vector<16x128xf32> to vector<16x32xf32>
    %158 = arith.mulf %151, %138 : vector<16x32xf32>
    %159 = arith.mulf %150, %156 : vector<16x32xf32>
    %160 = arith.addf %158, %159 : vector<16x32xf32>
    %161 = math.tanh %160 : vector<16x32xf32>
    %162 = arith.mulf %157, %161 : vector<16x32xf32>
    %c0_59 = arith.constant 0 : index
    %c192 = arith.constant 192 : index
    %163 = vector.load %arg22[%c0_59, %c192] : memref<16x640xf32, #tpu.memory_space<vmem>>, vector<16x32xf32>
    tpu.vector_store %arg22[%c0_59, %c192], %162 {strides = array<i32>} : memref<16x640xf32, #tpu.memory_space<vmem>>, vector<16x32xf32>,
    %c112 = arith.constant 112 : index
    %c0_60 = arith.constant 0 : index
    %164 = vector.load %arg21[%c112, %c0_60] : memref<320x128xf32, #tpu.memory_space<vmem>>, vector<16x128xf32>
    %cst_61 = arith.constant dense<0.000000e+00> : vector<16x128xf32>
    %165 = tpu.matmul %162, %7, %cst_61 {dimension_numbers = #tpu.dot_dimension_numbers<[1], [0], [0], [1], [0, 0, 1, 1], [], []>} : vector<16x32xf32>, vector<32x128xf32>, vector<16x128xf32> -> vector<16x128xf32>
    %166 = arith.addf %164, %165 : vector<16x128xf32>
    %167 = arith.negf %166 : vector<16x128xf32>
    %168 = math.exp %167 : vector<16x128xf32>
    %cst_62 = arith.constant 1.000000e+00 : f32
    %169 = vector.broadcast %cst_62 : f32 to vector<16x128xf32>
    %170 = arith.addf %169, %168 : vector<16x128xf32>
    %171 = arith.divf %169, %170 : vector<16x128xf32>
    %172 = vector.extract_strided_slice %171 {offsets = [0, 0], sizes = [16, 32], strides = [1, 1]} : vector<16x128xf32> to vector<16x32xf32>
    %173 = vector.extract_strided_slice %171 {offsets = [0, 32], sizes = [16, 32], strides = [1, 1]} : vector<16x128xf32> to vector<16x32xf32>
    %174 = vector.extract_strided_slice %171 {offsets = [0, 64], sizes = [16, 32], strides = [1, 1]} : vector<16x128xf32> to vector<16x32xf32>
    %cst_63 = arith.constant 2.000000e+00 : f32
    %175 = vector.broadcast %cst_63 : f32 to vector<16x32xf32>
    %176 = arith.mulf %175, %174 : vector<16x32xf32>
    %cst_64 = arith.constant 1.000000e+00 : f32
    %177 = vector.broadcast %cst_64 : f32 to vector<16x32xf32>
    %178 = arith.subf %176, %177 : vector<16x32xf32>
    %179 = vector.extract_strided_slice %171 {offsets = [0, 96], sizes = [16, 32], strides = [1, 1]} : vector<16x128xf32> to vector<16x32xf32>
    %180 = arith.mulf %173, %160 : vector<16x32xf32>
    %181 = arith.mulf %172, %178 : vector<16x32xf32>
    %182 = arith.addf %180, %181 : vector<16x32xf32>
    %183 = math.tanh %182 : vector<16x32xf32>
    %184 = arith.mulf %179, %183 : vector<16x32xf32>
    %c0_65 = arith.constant 0 : index
    %c224 = arith.constant 224 : index
    %185 = vector.load %arg22[%c0_65, %c224] : memref<16x640xf32, #tpu.memory_space<vmem>>, vector<16x32xf32>
    tpu.vector_store %arg22[%c0_65, %c224], %184 {strides = array<i32>} : memref<16x640xf32, #tpu.memory_space<vmem>>, vector<16x32xf32>,
    %c128_66 = arith.constant 128 : index
    %c0_67 = arith.constant 0 : index
    %186 = vector.load %arg21[%c128_66, %c0_67] : memref<320x128xf32, #tpu.memory_space<vmem>>, vector<16x128xf32>
    %cst_68 = arith.constant dense<0.000000e+00> : vector<16x128xf32>
    %187 = tpu.matmul %184, %7, %cst_68 {dimension_numbers = #tpu.dot_dimension_numbers<[1], [0], [0], [1], [0, 0, 1, 1], [], []>} : vector<16x32xf32>, vector<32x128xf32>, vector<16x128xf32> -> vector<16x128xf32>
    %188 = arith.addf %186, %187 : vector<16x128xf32>
    %189 = arith.negf %188 : vector<16x128xf32>
    %190 = math.exp %189 : vector<16x128xf32>
    %cst_69 = arith.constant 1.000000e+00 : f32
    %191 = vector.broadcast %cst_69 : f32 to vector<16x128xf32>
    %192 = arith.addf %191, %190 : vector<16x128xf32>
    %193 = arith.divf %191, %192 : vector<16x128xf32>
    %194 = vector.extract_strided_slice %193 {offsets = [0, 0], sizes = [16, 32], strides = [1, 1]} : vector<16x128xf32> to vector<16x32xf32>
    %195 = vector.extract_strided_slice %193 {offsets = [0, 32], sizes = [16, 32], strides = [1, 1]} : vector<16x128xf32> to vector<16x32xf32>
    %196 = vector.extract_strided_slice %193 {offsets = [0, 64], sizes = [16, 32], strides = [1, 1]} : vector<16x128xf32> to vector<16x32xf32>
    %cst_70 = arith.constant 2.000000e+00 : f32
    %197 = vector.broadcast %cst_70 : f32 to vector<16x32xf32>
    %198 = arith.mulf %197, %196 : vector<16x32xf32>
    %cst_71 = arith.constant 1.000000e+00 : f32
    %199 = vector.broadcast %cst_71 : f32 to vector<16x32xf32>
    %200 = arith.subf %198, %199 : vector<16x32xf32>
    %201 = vector.extract_strided_slice %193 {offsets = [0, 96], sizes = [16, 32], strides = [1, 1]} : vector<16x128xf32> to vector<16x32xf32>
    %202 = arith.mulf %195, %182 : vector<16x32xf32>
    %203 = arith.mulf %194, %200 : vector<16x32xf32>
    %204 = arith.addf %202, %203 : vector<16x32xf32>
    %205 = math.tanh %204 : vector<16x32xf32>
    %206 = arith.mulf %201, %205 : vector<16x32xf32>
    %c0_72 = arith.constant 0 : index
    %c256 = arith.constant 256 : index
    %207 = vector.load %arg22[%c0_72, %c256] : memref<16x640xf32, #tpu.memory_space<vmem>>, vector<16x32xf32>
    tpu.vector_store %arg22[%c0_72, %c256], %206 {strides = array<i32>} : memref<16x640xf32, #tpu.memory_space<vmem>>, vector<16x32xf32>,
    %c144 = arith.constant 144 : index
    %c0_73 = arith.constant 0 : index
    %208 = vector.load %arg21[%c144, %c0_73] : memref<320x128xf32, #tpu.memory_space<vmem>>, vector<16x128xf32>
    %cst_74 = arith.constant dense<0.000000e+00> : vector<16x128xf32>
    %209 = tpu.matmul %206, %7, %cst_74 {dimension_numbers = #tpu.dot_dimension_numbers<[1], [0], [0], [1], [0, 0, 1, 1], [], []>} : vector<16x32xf32>, vector<32x128xf32>, vector<16x128xf32> -> vector<16x128xf32>
    %210 = arith.addf %208, %209 : vector<16x128xf32>
    %211 = arith.negf %210 : vector<16x128xf32>
    %212 = math.exp %211 : vector<16x128xf32>
    %cst_75 = arith.constant 1.000000e+00 : f32
    %213 = vector.broadcast %cst_75 : f32 to vector<16x128xf32>
    %214 = arith.addf %213, %212 : vector<16x128xf32>
    %215 = arith.divf %213, %214 : vector<16x128xf32>
    %216 = vector.extract_strided_slice %215 {offsets = [0, 0], sizes = [16, 32], strides = [1, 1]} : vector<16x128xf32> to vector<16x32xf32>
    %217 = vector.extract_strided_slice %215 {offsets = [0, 32], sizes = [16, 32], strides = [1, 1]} : vector<16x128xf32> to vector<16x32xf32>
    %218 = vector.extract_strided_slice %215 {offsets = [0, 64], sizes = [16, 32], strides = [1, 1]} : vector<16x128xf32> to vector<16x32xf32>
    %cst_76 = arith.constant 2.000000e+00 : f32
    %219 = vector.broadcast %cst_76 : f32 to vector<16x32xf32>
    %220 = arith.mulf %219, %218 : vector<16x32xf32>
    %cst_77 = arith.constant 1.000000e+00 : f32
    %221 = vector.broadcast %cst_77 : f32 to vector<16x32xf32>
    %222 = arith.subf %220, %221 : vector<16x32xf32>
    %223 = vector.extract_strided_slice %215 {offsets = [0, 96], sizes = [16, 32], strides = [1, 1]} : vector<16x128xf32> to vector<16x32xf32>
    %224 = arith.mulf %217, %204 : vector<16x32xf32>
    %225 = arith.mulf %216, %222 : vector<16x32xf32>
    %226 = arith.addf %224, %225 : vector<16x32xf32>
    %227 = math.tanh %226 : vector<16x32xf32>
    %228 = arith.mulf %223, %227 : vector<16x32xf32>
    %c0_78 = arith.constant 0 : index
    %c288 = arith.constant 288 : index
    %229 = vector.load %arg22[%c0_78, %c288] : memref<16x640xf32, #tpu.memory_space<vmem>>, vector<16x32xf32>
    tpu.vector_store %arg22[%c0_78, %c288], %228 {strides = array<i32>} : memref<16x640xf32, #tpu.memory_space<vmem>>, vector<16x32xf32>,
    %c160_79 = arith.constant 160 : index
    %c0_80 = arith.constant 0 : index
    %230 = vector.load %arg21[%c160_79, %c0_80] : memref<320x128xf32, #tpu.memory_space<vmem>>, vector<16x128xf32>
    %cst_81 = arith.constant dense<0.000000e+00> : vector<16x128xf32>
    %231 = tpu.matmul %228, %7, %cst_81 {dimension_numbers = #tpu.dot_dimension_numbers<[1], [0], [0], [1], [0, 0, 1, 1], [], []>} : vector<16x32xf32>, vector<32x128xf32>, vector<16x128xf32> -> vector<16x128xf32>
    %232 = arith.addf %230, %231 : vector<16x128xf32>
    %233 = arith.negf %232 : vector<16x128xf32>
    %234 = math.exp %233 : vector<16x128xf32>
    %cst_82 = arith.constant 1.000000e+00 : f32
    %235 = vector.broadcast %cst_82 : f32 to vector<16x128xf32>
    %236 = arith.addf %235, %234 : vector<16x128xf32>
    %237 = arith.divf %235, %236 : vector<16x128xf32>
    %238 = vector.extract_strided_slice %237 {offsets = [0, 0], sizes = [16, 32], strides = [1, 1]} : vector<16x128xf32> to vector<16x32xf32>
    %239 = vector.extract_strided_slice %237 {offsets = [0, 32], sizes = [16, 32], strides = [1, 1]} : vector<16x128xf32> to vector<16x32xf32>
    %240 = vector.extract_strided_slice %237 {offsets = [0, 64], sizes = [16, 32], strides = [1, 1]} : vector<16x128xf32> to vector<16x32xf32>
    %cst_83 = arith.constant 2.000000e+00 : f32
    %241 = vector.broadcast %cst_83 : f32 to vector<16x32xf32>
    %242 = arith.mulf %241, %240 : vector<16x32xf32>
    %cst_84 = arith.constant 1.000000e+00 : f32
    %243 = vector.broadcast %cst_84 : f32 to vector<16x32xf32>
    %244 = arith.subf %242, %243 : vector<16x32xf32>
    %245 = vector.extract_strided_slice %237 {offsets = [0, 96], sizes = [16, 32], strides = [1, 1]} : vector<16x128xf32> to vector<16x32xf32>
    %246 = arith.mulf %239, %226 : vector<16x32xf32>
    %247 = arith.mulf %238, %244 : vector<16x32xf32>
    %248 = arith.addf %246, %247 : vector<16x32xf32>
    %249 = math.tanh %248 : vector<16x32xf32>
    %250 = arith.mulf %245, %249 : vector<16x32xf32>
    %c0_85 = arith.constant 0 : index
    %c320 = arith.constant 320 : index
    %251 = vector.load %arg22[%c0_85, %c320] : memref<16x640xf32, #tpu.memory_space<vmem>>, vector<16x32xf32>
    tpu.vector_store %arg22[%c0_85, %c320], %250 {strides = array<i32>} : memref<16x640xf32, #tpu.memory_space<vmem>>, vector<16x32xf32>,
    %c176 = arith.constant 176 : index
    %c0_86 = arith.constant 0 : index
    %252 = vector.load %arg21[%c176, %c0_86] : memref<320x128xf32, #tpu.memory_space<vmem>>, vector<16x128xf32>
    %cst_87 = arith.constant dense<0.000000e+00> : vector<16x128xf32>
    %253 = tpu.matmul %250, %7, %cst_87 {dimension_numbers = #tpu.dot_dimension_numbers<[1], [0], [0], [1], [0, 0, 1, 1], [], []>} : vector<16x32xf32>, vector<32x128xf32>, vector<16x128xf32> -> vector<16x128xf32>
    %254 = arith.addf %252, %253 : vector<16x128xf32>
    %255 = arith.negf %254 : vector<16x128xf32>
    %256 = math.exp %255 : vector<16x128xf32>
    %cst_88 = arith.constant 1.000000e+00 : f32
    %257 = vector.broadcast %cst_88 : f32 to vector<16x128xf32>
    %258 = arith.addf %257, %256 : vector<16x128xf32>
    %259 = arith.divf %257, %258 : vector<16x128xf32>
    %260 = vector.extract_strided_slice %259 {offsets = [0, 0], sizes = [16, 32], strides = [1, 1]} : vector<16x128xf32> to vector<16x32xf32>
    %261 = vector.extract_strided_slice %259 {offsets = [0, 32], sizes = [16, 32], strides = [1, 1]} : vector<16x128xf32> to vector<16x32xf32>
    %262 = vector.extract_strided_slice %259 {offsets = [0, 64], sizes = [16, 32], strides = [1, 1]} : vector<16x128xf32> to vector<16x32xf32>
    %cst_89 = arith.constant 2.000000e+00 : f32
    %263 = vector.broadcast %cst_89 : f32 to vector<16x32xf32>
    %264 = arith.mulf %263, %262 : vector<16x32xf32>
    %cst_90 = arith.constant 1.000000e+00 : f32
    %265 = vector.broadcast %cst_90 : f32 to vector<16x32xf32>
    %266 = arith.subf %264, %265 : vector<16x32xf32>
    %267 = vector.extract_strided_slice %259 {offsets = [0, 96], sizes = [16, 32], strides = [1, 1]} : vector<16x128xf32> to vector<16x32xf32>
    %268 = arith.mulf %261, %248 : vector<16x32xf32>
    %269 = arith.mulf %260, %266 : vector<16x32xf32>
    %270 = arith.addf %268, %269 : vector<16x32xf32>
    %271 = math.tanh %270 : vector<16x32xf32>
    %272 = arith.mulf %267, %271 : vector<16x32xf32>
    %c0_91 = arith.constant 0 : index
    %c352 = arith.constant 352 : index
    %273 = vector.load %arg22[%c0_91, %c352] : memref<16x640xf32, #tpu.memory_space<vmem>>, vector<16x32xf32>
    tpu.vector_store %arg22[%c0_91, %c352], %272 {strides = array<i32>} : memref<16x640xf32, #tpu.memory_space<vmem>>, vector<16x32xf32>,
    %c192_92 = arith.constant 192 : index
    %c0_93 = arith.constant 0 : index
    %274 = vector.load %arg21[%c192_92, %c0_93] : memref<320x128xf32, #tpu.memory_space<vmem>>, vector<16x128xf32>
    %cst_94 = arith.constant dense<0.000000e+00> : vector<16x128xf32>
    %275 = tpu.matmul %272, %7, %cst_94 {dimension_numbers = #tpu.dot_dimension_numbers<[1], [0], [0], [1], [0, 0, 1, 1], [], []>} : vector<16x32xf32>, vector<32x128xf32>, vector<16x128xf32> -> vector<16x128xf32>
    %276 = arith.addf %274, %275 : vector<16x128xf32>
    %277 = arith.negf %276 : vector<16x128xf32>
    %278 = math.exp %277 : vector<16x128xf32>
    %cst_95 = arith.constant 1.000000e+00 : f32
    %279 = vector.broadcast %cst_95 : f32 to vector<16x128xf32>
    %280 = arith.addf %279, %278 : vector<16x128xf32>
    %281 = arith.divf %279, %280 : vector<16x128xf32>
    %282 = vector.extract_strided_slice %281 {offsets = [0, 0], sizes = [16, 32], strides = [1, 1]} : vector<16x128xf32> to vector<16x32xf32>
    %283 = vector.extract_strided_slice %281 {offsets = [0, 32], sizes = [16, 32], strides = [1, 1]} : vector<16x128xf32> to vector<16x32xf32>
    %284 = vector.extract_strided_slice %281 {offsets = [0, 64], sizes = [16, 32], strides = [1, 1]} : vector<16x128xf32> to vector<16x32xf32>
    %cst_96 = arith.constant 2.000000e+00 : f32
    %285 = vector.broadcast %cst_96 : f32 to vector<16x32xf32>
    %286 = arith.mulf %285, %284 : vector<16x32xf32>
    %cst_97 = arith.constant 1.000000e+00 : f32
    %287 = vector.broadcast %cst_97 : f32 to vector<16x32xf32>
    %288 = arith.subf %286, %287 : vector<16x32xf32>
    %289 = vector.extract_strided_slice %281 {offsets = [0, 96], sizes = [16, 32], strides = [1, 1]} : vector<16x128xf32> to vector<16x32xf32>
    %290 = arith.mulf %283, %270 : vector<16x32xf32>
    %291 = arith.mulf %282, %288 : vector<16x32xf32>
    %292 = arith.addf %290, %291 : vector<16x32xf32>
    %293 = math.tanh %292 : vector<16x32xf32>
    %294 = arith.mulf %289, %293 : vector<16x32xf32>
    %c0_98 = arith.constant 0 : index
    %c384 = arith.constant 384 : index
    %295 = vector.load %arg22[%c0_98, %c384] : memref<16x640xf32, #tpu.memory_space<vmem>>, vector<16x32xf32>
    tpu.vector_store %arg22[%c0_98, %c384], %294 {strides = array<i32>} : memref<16x640xf32, #tpu.memory_space<vmem>>, vector<16x32xf32>,
    %c208 = arith.constant 208 : index
    %c0_99 = arith.constant 0 : index
    %296 = vector.load %arg21[%c208, %c0_99] : memref<320x128xf32, #tpu.memory_space<vmem>>, vector<16x128xf32>
    %cst_100 = arith.constant dense<0.000000e+00> : vector<16x128xf32>
    %297 = tpu.matmul %294, %7, %cst_100 {dimension_numbers = #tpu.dot_dimension_numbers<[1], [0], [0], [1], [0, 0, 1, 1], [], []>} : vector<16x32xf32>, vector<32x128xf32>, vector<16x128xf32> -> vector<16x128xf32>
    %298 = arith.addf %296, %297 : vector<16x128xf32>
    %299 = arith.negf %298 : vector<16x128xf32>
    %300 = math.exp %299 : vector<16x128xf32>
    %cst_101 = arith.constant 1.000000e+00 : f32
    %301 = vector.broadcast %cst_101 : f32 to vector<16x128xf32>
    %302 = arith.addf %301, %300 : vector<16x128xf32>
    %303 = arith.divf %301, %302 : vector<16x128xf32>
    %304 = vector.extract_strided_slice %303 {offsets = [0, 0], sizes = [16, 32], strides = [1, 1]} : vector<16x128xf32> to vector<16x32xf32>
    %305 = vector.extract_strided_slice %303 {offsets = [0, 32], sizes = [16, 32], strides = [1, 1]} : vector<16x128xf32> to vector<16x32xf32>
    %306 = vector.extract_strided_slice %303 {offsets = [0, 64], sizes = [16, 32], strides = [1, 1]} : vector<16x128xf32> to vector<16x32xf32>
    %cst_102 = arith.constant 2.000000e+00 : f32
    %307 = vector.broadcast %cst_102 : f32 to vector<16x32xf32>
    %308 = arith.mulf %307, %306 : vector<16x32xf32>
    %cst_103 = arith.constant 1.000000e+00 : f32
    %309 = vector.broadcast %cst_103 : f32 to vector<16x32xf32>
    %310 = arith.subf %308, %309 : vector<16x32xf32>
    %311 = vector.extract_strided_slice %303 {offsets = [0, 96], sizes = [16, 32], strides = [1, 1]} : vector<16x128xf32> to vector<16x32xf32>
    %312 = arith.mulf %305, %292 : vector<16x32xf32>
    %313 = arith.mulf %304, %310 : vector<16x32xf32>
    %314 = arith.addf %312, %313 : vector<16x32xf32>
    %315 = math.tanh %314 : vector<16x32xf32>
    %316 = arith.mulf %311, %315 : vector<16x32xf32>
    %c0_104 = arith.constant 0 : index
    %c416 = arith.constant 416 : index
    %317 = vector.load %arg22[%c0_104, %c416] : memref<16x640xf32, #tpu.memory_space<vmem>>, vector<16x32xf32>
    tpu.vector_store %arg22[%c0_104, %c416], %316 {strides = array<i32>} : memref<16x640xf32, #tpu.memory_space<vmem>>, vector<16x32xf32>,
    %c224_105 = arith.constant 224 : index
    %c0_106 = arith.constant 0 : index
    %318 = vector.load %arg21[%c224_105, %c0_106] : memref<320x128xf32, #tpu.memory_space<vmem>>, vector<16x128xf32>
    %cst_107 = arith.constant dense<0.000000e+00> : vector<16x128xf32>
    %319 = tpu.matmul %316, %7, %cst_107 {dimension_numbers = #tpu.dot_dimension_numbers<[1], [0], [0], [1], [0, 0, 1, 1], [], []>} : vector<16x32xf32>, vector<32x128xf32>, vector<16x128xf32> -> vector<16x128xf32>
    %320 = arith.addf %318, %319 : vector<16x128xf32>
    %321 = arith.negf %320 : vector<16x128xf32>
    %322 = math.exp %321 : vector<16x128xf32>
    %cst_108 = arith.constant 1.000000e+00 : f32
    %323 = vector.broadcast %cst_108 : f32 to vector<16x128xf32>
    %324 = arith.addf %323, %322 : vector<16x128xf32>
    %325 = arith.divf %323, %324 : vector<16x128xf32>
    %326 = vector.extract_strided_slice %325 {offsets = [0, 0], sizes = [16, 32], strides = [1, 1]} : vector<16x128xf32> to vector<16x32xf32>
    %327 = vector.extract_strided_slice %325 {offsets = [0, 32], sizes = [16, 32], strides = [1, 1]} : vector<16x128xf32> to vector<16x32xf32>
    %328 = vector.extract_strided_slice %325 {offsets = [0, 64], sizes = [16, 32], strides = [1, 1]} : vector<16x128xf32> to vector<16x32xf32>
    %cst_109 = arith.constant 2.000000e+00 : f32
    %329 = vector.broadcast %cst_109 : f32 to vector<16x32xf32>
    %330 = arith.mulf %329, %328 : vector<16x32xf32>
    %cst_110 = arith.constant 1.000000e+00 : f32
    %331 = vector.broadcast %cst_110 : f32 to vector<16x32xf32>
    %332 = arith.subf %330, %331 : vector<16x32xf32>
    %333 = vector.extract_strided_slice %325 {offsets = [0, 96], sizes = [16, 32], strides = [1, 1]} : vector<16x128xf32> to vector<16x32xf32>
    %334 = arith.mulf %327, %314 : vector<16x32xf32>
    %335 = arith.mulf %326, %332 : vector<16x32xf32>
    %336 = arith.addf %334, %335 : vector<16x32xf32>
    %337 = math.tanh %336 : vector<16x32xf32>
    %338 = arith.mulf %333, %337 : vector<16x32xf32>
    %c0_111 = arith.constant 0 : index
    %c448 = arith.constant 448 : index
    %339 = vector.load %arg22[%c0_111, %c448] : memref<16x640xf32, #tpu.memory_space<vmem>>, vector<16x32xf32>
    tpu.vector_store %arg22[%c0_111, %c448], %338 {strides = array<i32>} : memref<16x640xf32, #tpu.memory_space<vmem>>, vector<16x32xf32>,
    %c240 = arith.constant 240 : index
    %c0_112 = arith.constant 0 : index
    %340 = vector.load %arg21[%c240, %c0_112] : memref<320x128xf32, #tpu.memory_space<vmem>>, vector<16x128xf32>
    %cst_113 = arith.constant dense<0.000000e+00> : vector<16x128xf32>
    %341 = tpu.matmul %338, %7, %cst_113 {dimension_numbers = #tpu.dot_dimension_numbers<[1], [0], [0], [1], [0, 0, 1, 1], [], []>} : vector<16x32xf32>, vector<32x128xf32>, vector<16x128xf32> -> vector<16x128xf32>
    %342 = arith.addf %340, %341 : vector<16x128xf32>
    %343 = arith.negf %342 : vector<16x128xf32>
    %344 = math.exp %343 : vector<16x128xf32>
    %cst_114 = arith.constant 1.000000e+00 : f32
    %345 = vector.broadcast %cst_114 : f32 to vector<16x128xf32>
    %346 = arith.addf %345, %344 : vector<16x128xf32>
    %347 = arith.divf %345, %346 : vector<16x128xf32>
    %348 = vector.extract_strided_slice %347 {offsets = [0, 0], sizes = [16, 32], strides = [1, 1]} : vector<16x128xf32> to vector<16x32xf32>
    %349 = vector.extract_strided_slice %347 {offsets = [0, 32], sizes = [16, 32], strides = [1, 1]} : vector<16x128xf32> to vector<16x32xf32>
    %350 = vector.extract_strided_slice %347 {offsets = [0, 64], sizes = [16, 32], strides = [1, 1]} : vector<16x128xf32> to vector<16x32xf32>
    %cst_115 = arith.constant 2.000000e+00 : f32
    %351 = vector.broadcast %cst_115 : f32 to vector<16x32xf32>
    %352 = arith.mulf %351, %350 : vector<16x32xf32>
    %cst_116 = arith.constant 1.000000e+00 : f32
    %353 = vector.broadcast %cst_116 : f32 to vector<16x32xf32>
    %354 = arith.subf %352, %353 : vector<16x32xf32>
    %355 = vector.extract_strided_slice %347 {offsets = [0, 96], sizes = [16, 32], strides = [1, 1]} : vector<16x128xf32> to vector<16x32xf32>
    %356 = arith.mulf %349, %336 : vector<16x32xf32>
    %357 = arith.mulf %348, %354 : vector<16x32xf32>
    %358 = arith.addf %356, %357 : vector<16x32xf32>
    %359 = math.tanh %358 : vector<16x32xf32>
    %360 = arith.mulf %355, %359 : vector<16x32xf32>
    %c0_117 = arith.constant 0 : index
    %c480 = arith.constant 480 : index
    %361 = vector.load %arg22[%c0_117, %c480] : memref<16x640xf32, #tpu.memory_space<vmem>>, vector<16x32xf32>
    tpu.vector_store %arg22[%c0_117, %c480], %360 {strides = array<i32>} : memref<16x640xf32, #tpu.memory_space<vmem>>, vector<16x32xf32>,
    %c256_118 = arith.constant 256 : index
    %c0_119 = arith.constant 0 : index
    %362 = vector.load %arg21[%c256_118, %c0_119] : memref<320x128xf32, #tpu.memory_space<vmem>>, vector<16x128xf32>
    %cst_120 = arith.constant dense<0.000000e+00> : vector<16x128xf32>
    %363 = tpu.matmul %360, %7, %cst_120 {dimension_numbers = #tpu.dot_dimension_numbers<[1], [0], [0], [1], [0, 0, 1, 1], [], []>} : vector<16x32xf32>, vector<32x128xf32>, vector<16x128xf32> -> vector<16x128xf32>
    %364 = arith.addf %362, %363 : vector<16x128xf32>
    %365 = arith.negf %364 : vector<16x128xf32>
    %366 = math.exp %365 : vector<16x128xf32>
    %cst_121 = arith.constant 1.000000e+00 : f32
    %367 = vector.broadcast %cst_121 : f32 to vector<16x128xf32>
    %368 = arith.addf %367, %366 : vector<16x128xf32>
    %369 = arith.divf %367, %368 : vector<16x128xf32>
    %370 = vector.extract_strided_slice %369 {offsets = [0, 0], sizes = [16, 32], strides = [1, 1]} : vector<16x128xf32> to vector<16x32xf32>
    %371 = vector.extract_strided_slice %369 {offsets = [0, 32], sizes = [16, 32], strides = [1, 1]} : vector<16x128xf32> to vector<16x32xf32>
    %372 = vector.extract_strided_slice %369 {offsets = [0, 64], sizes = [16, 32], strides = [1, 1]} : vector<16x128xf32> to vector<16x32xf32>
    %cst_122 = arith.constant 2.000000e+00 : f32
    %373 = vector.broadcast %cst_122 : f32 to vector<16x32xf32>
    %374 = arith.mulf %373, %372 : vector<16x32xf32>
    %cst_123 = arith.constant 1.000000e+00 : f32
    %375 = vector.broadcast %cst_123 : f32 to vector<16x32xf32>
    %376 = arith.subf %374, %375 : vector<16x32xf32>
    %377 = vector.extract_strided_slice %369 {offsets = [0, 96], sizes = [16, 32], strides = [1, 1]} : vector<16x128xf32> to vector<16x32xf32>
    %378 = arith.mulf %371, %358 : vector<16x32xf32>
    %379 = arith.mulf %370, %376 : vector<16x32xf32>
    %380 = arith.addf %378, %379 : vector<16x32xf32>
    %381 = math.tanh %380 : vector<16x32xf32>
    %382 = arith.mulf %377, %381 : vector<16x32xf32>
    %c0_124 = arith.constant 0 : index
    %c512 = arith.constant 512 : index
    %383 = vector.load %arg22[%c0_124, %c512] : memref<16x640xf32, #tpu.memory_space<vmem>>, vector<16x32xf32>
    tpu.vector_store %arg22[%c0_124, %c512], %382 {strides = array<i32>} : memref<16x640xf32, #tpu.memory_space<vmem>>, vector<16x32xf32>,
    %c272 = arith.constant 272 : index
    %c0_125 = arith.constant 0 : index
    %384 = vector.load %arg21[%c272, %c0_125] : memref<320x128xf32, #tpu.memory_space<vmem>>, vector<16x128xf32>
    %cst_126 = arith.constant dense<0.000000e+00> : vector<16x128xf32>
    %385 = tpu.matmul %382, %7, %cst_126 {dimension_numbers = #tpu.dot_dimension_numbers<[1], [0], [0], [1], [0, 0, 1, 1], [], []>} : vector<16x32xf32>, vector<32x128xf32>, vector<16x128xf32> -> vector<16x128xf32>
    %386 = arith.addf %384, %385 : vector<16x128xf32>
    %387 = arith.negf %386 : vector<16x128xf32>
    %388 = math.exp %387 : vector<16x128xf32>
    %cst_127 = arith.constant 1.000000e+00 : f32
    %389 = vector.broadcast %cst_127 : f32 to vector<16x128xf32>
    %390 = arith.addf %389, %388 : vector<16x128xf32>
    %391 = arith.divf %389, %390 : vector<16x128xf32>
    %392 = vector.extract_strided_slice %391 {offsets = [0, 0], sizes = [16, 32], strides = [1, 1]} : vector<16x128xf32> to vector<16x32xf32>
    %393 = vector.extract_strided_slice %391 {offsets = [0, 32], sizes = [16, 32], strides = [1, 1]} : vector<16x128xf32> to vector<16x32xf32>
    %394 = vector.extract_strided_slice %391 {offsets = [0, 64], sizes = [16, 32], strides = [1, 1]} : vector<16x128xf32> to vector<16x32xf32>
    %cst_128 = arith.constant 2.000000e+00 : f32
    %395 = vector.broadcast %cst_128 : f32 to vector<16x32xf32>
    %396 = arith.mulf %395, %394 : vector<16x32xf32>
    %cst_129 = arith.constant 1.000000e+00 : f32
    %397 = vector.broadcast %cst_129 : f32 to vector<16x32xf32>
    %398 = arith.subf %396, %397 : vector<16x32xf32>
    %399 = vector.extract_strided_slice %391 {offsets = [0, 96], sizes = [16, 32], strides = [1, 1]} : vector<16x128xf32> to vector<16x32xf32>
    %400 = arith.mulf %393, %380 : vector<16x32xf32>
    %401 = arith.mulf %392, %398 : vector<16x32xf32>
    %402 = arith.addf %400, %401 : vector<16x32xf32>
    %403 = math.tanh %402 : vector<16x32xf32>
    %404 = arith.mulf %399, %403 : vector<16x32xf32>
    %c0_130 = arith.constant 0 : index
    %c544 = arith.constant 544 : index
    %405 = vector.load %arg22[%c0_130, %c544] : memref<16x640xf32, #tpu.memory_space<vmem>>, vector<16x32xf32>
    tpu.vector_store %arg22[%c0_130, %c544], %404 {strides = array<i32>} : memref<16x640xf32, #tpu.memory_space<vmem>>, vector<16x32xf32>,
    %c288_131 = arith.constant 288 : index
    %c0_132 = arith.constant 0 : index
    %406 = vector.load %arg21[%c288_131, %c0_132] : memref<320x128xf32, #tpu.memory_space<vmem>>, vector<16x128xf32>
    %cst_133 = arith.constant dense<0.000000e+00> : vector<16x128xf32>
    %407 = tpu.matmul %404, %7, %cst_133 {dimension_numbers = #tpu.dot_dimension_numbers<[1], [0], [0], [1], [0, 0, 1, 1], [], []>} : vector<16x32xf32>, vector<32x128xf32>, vector<16x128xf32> -> vector<16x128xf32>
    %408 = arith.addf %406, %407 : vector<16x128xf32>
    %409 = arith.negf %408 : vector<16x128xf32>
    %410 = math.exp %409 : vector<16x128xf32>
    %cst_134 = arith.constant 1.000000e+00 : f32
    %411 = vector.broadcast %cst_134 : f32 to vector<16x128xf32>
    %412 = arith.addf %411, %410 : vector<16x128xf32>
    %413 = arith.divf %411, %412 : vector<16x128xf32>
    %414 = vector.extract_strided_slice %413 {offsets = [0, 0], sizes = [16, 32], strides = [1, 1]} : vector<16x128xf32> to vector<16x32xf32>
    %415 = vector.extract_strided_slice %413 {offsets = [0, 32], sizes = [16, 32], strides = [1, 1]} : vector<16x128xf32> to vector<16x32xf32>
    %416 = vector.extract_strided_slice %413 {offsets = [0, 64], sizes = [16, 32], strides = [1, 1]} : vector<16x128xf32> to vector<16x32xf32>
    %cst_135 = arith.constant 2.000000e+00 : f32
    %417 = vector.broadcast %cst_135 : f32 to vector<16x32xf32>
    %418 = arith.mulf %417, %416 : vector<16x32xf32>
    %cst_136 = arith.constant 1.000000e+00 : f32
    %419 = vector.broadcast %cst_136 : f32 to vector<16x32xf32>
    %420 = arith.subf %418, %419 : vector<16x32xf32>
    %421 = vector.extract_strided_slice %413 {offsets = [0, 96], sizes = [16, 32], strides = [1, 1]} : vector<16x128xf32> to vector<16x32xf32>
    %422 = arith.mulf %415, %402 : vector<16x32xf32>
    %423 = arith.mulf %414, %420 : vector<16x32xf32>
    %424 = arith.addf %422, %423 : vector<16x32xf32>
    %425 = math.tanh %424 : vector<16x32xf32>
    %426 = arith.mulf %421, %425 : vector<16x32xf32>
    %c0_137 = arith.constant 0 : index
    %c576 = arith.constant 576 : index
    %427 = vector.load %arg22[%c0_137, %c576] : memref<16x640xf32, #tpu.memory_space<vmem>>, vector<16x32xf32>
    tpu.vector_store %arg22[%c0_137, %c576], %426 {strides = array<i32>} : memref<16x640xf32, #tpu.memory_space<vmem>>, vector<16x32xf32>,
    %c304 = arith.constant 304 : index
    %c0_138 = arith.constant 0 : index
    %428 = vector.load %arg21[%c304, %c0_138] : memref<320x128xf32, #tpu.memory_space<vmem>>, vector<16x128xf32>
    %cst_139 = arith.constant dense<0.000000e+00> : vector<16x128xf32>
    %429 = tpu.matmul %426, %7, %cst_139 {dimension_numbers = #tpu.dot_dimension_numbers<[1], [0], [0], [1], [0, 0, 1, 1], [], []>} : vector<16x32xf32>, vector<32x128xf32>, vector<16x128xf32> -> vector<16x128xf32>
    %430 = arith.addf %428, %429 : vector<16x128xf32>
    %431 = arith.negf %430 : vector<16x128xf32>
    %432 = math.exp %431 : vector<16x128xf32>
    %cst_140 = arith.constant 1.000000e+00 : f32
    %433 = vector.broadcast %cst_140 : f32 to vector<16x128xf32>
    %434 = arith.addf %433, %432 : vector<16x128xf32>
    %435 = arith.divf %433, %434 : vector<16x128xf32>
    %436 = vector.extract_strided_slice %435 {offsets = [0, 0], sizes = [16, 32], strides = [1, 1]} : vector<16x128xf32> to vector<16x32xf32>
    %437 = vector.extract_strided_slice %435 {offsets = [0, 32], sizes = [16, 32], strides = [1, 1]} : vector<16x128xf32> to vector<16x32xf32>
    %438 = vector.extract_strided_slice %435 {offsets = [0, 64], sizes = [16, 32], strides = [1, 1]} : vector<16x128xf32> to vector<16x32xf32>
    %cst_141 = arith.constant 2.000000e+00 : f32
    %439 = vector.broadcast %cst_141 : f32 to vector<16x32xf32>
    %440 = arith.mulf %439, %438 : vector<16x32xf32>
    %cst_142 = arith.constant 1.000000e+00 : f32
    %441 = vector.broadcast %cst_142 : f32 to vector<16x32xf32>
    %442 = arith.subf %440, %441 : vector<16x32xf32>
    %443 = vector.extract_strided_slice %435 {offsets = [0, 96], sizes = [16, 32], strides = [1, 1]} : vector<16x128xf32> to vector<16x32xf32>
    %444 = arith.mulf %437, %424 : vector<16x32xf32>
    %445 = arith.mulf %436, %442 : vector<16x32xf32>
    %446 = arith.addf %444, %445 : vector<16x32xf32>
    %447 = math.tanh %446 : vector<16x32xf32>
    %448 = arith.mulf %443, %447 : vector<16x32xf32>
    %c0_143 = arith.constant 0 : index
    %c608 = arith.constant 608 : index
    %449 = vector.load %arg22[%c0_143, %c608] : memref<16x640xf32, #tpu.memory_space<vmem>>, vector<16x32xf32>
    tpu.vector_store %arg22[%c0_143, %c608], %448 {strides = array<i32>} : memref<16x640xf32, #tpu.memory_space<vmem>>, vector<16x32xf32>,
    tpu.wait_dma2 semaphore(%arg24 : memref<!tpu.dma_semaphore, #tpu.memory_space<semaphore_mem>>) src(%arg7 : memref<2560x128xf32, #tpu.memory_space<any>>) dst(%arg23 : memref<2560x128xf32, #tpu.memory_space<vmem>>)
    %cst_144 = arith.constant 0.000000e+00 : f32
    %450 = vector.broadcast %cst_144 : f32 to vector<4x128xf32>
    %c0_145 = arith.constant 0 : index
    %c0_146 = arith.constant 0 : index
    %451 = vector.load %arg22[%c0_145, %c0_146] : memref<16x640xf32, #tpu.memory_space<vmem>>, vector<4x640xf32>
    %c0_147 = arith.constant 0 : index
    %c0_148 = arith.constant 0 : index
    %452 = vector.load %arg23[%c0_147, %c0_148] : memref<2560x128xf32, #tpu.memory_space<vmem>>, vector<640x128xf32>
    %cst_149 = arith.constant dense<0.000000e+00> : vector<4x128xf32>
    %453 = tpu.matmul %451, %452, %cst_149 {dimension_numbers = #tpu.dot_dimension_numbers<[1], [0], [0], [1], [0, 0, 1, 1], [], []>} : vector<4x640xf32>, vector<640x128xf32>, vector<4x128xf32> -> vector<4x128xf32>
    %454 = arith.addf %450, %453 : vector<4x128xf32>
    %c4 = arith.constant 4 : index
    %c0_150 = arith.constant 0 : index
    %455 = vector.load %arg22[%c4, %c0_150] : memref<16x640xf32, #tpu.memory_space<vmem>>, vector<4x640xf32>
    %c640 = arith.constant 640 : index
    %c0_151 = arith.constant 0 : index
    %456 = vector.load %arg23[%c640, %c0_151] : memref<2560x128xf32, #tpu.memory_space<vmem>>, vector<640x128xf32>
    %cst_152 = arith.constant dense<0.000000e+00> : vector<4x128xf32>
    %457 = tpu.matmul %455, %456, %cst_152 {dimension_numbers = #tpu.dot_dimension_numbers<[1], [0], [0], [1], [0, 0, 1, 1], [], []>} : vector<4x640xf32>, vector<640x128xf32>, vector<4x128xf32> -> vector<4x128xf32>
    %458 = arith.addf %454, %457 : vector<4x128xf32>
    %c8 = arith.constant 8 : index
    %c0_153 = arith.constant 0 : index
    %459 = vector.load %arg22[%c8, %c0_153] : memref<16x640xf32, #tpu.memory_space<vmem>>, vector<4x640xf32>
    %c1280 = arith.constant 1280 : index
    %c0_154 = arith.constant 0 : index
    %460 = vector.load %arg23[%c1280, %c0_154] : memref<2560x128xf32, #tpu.memory_space<vmem>>, vector<640x128xf32>
    %cst_155 = arith.constant dense<0.000000e+00> : vector<4x128xf32>
    %461 = tpu.matmul %459, %460, %cst_155 {dimension_numbers = #tpu.dot_dimension_numbers<[1], [0], [0], [1], [0, 0, 1, 1], [], []>} : vector<4x640xf32>, vector<640x128xf32>, vector<4x128xf32> -> vector<4x128xf32>
    %462 = arith.addf %458, %461 : vector<4x128xf32>
    %c12 = arith.constant 12 : index
    %c0_156 = arith.constant 0 : index
    %463 = vector.load %arg22[%c12, %c0_156] : memref<16x640xf32, #tpu.memory_space<vmem>>, vector<4x640xf32>
    %c1920 = arith.constant 1920 : index
    %c0_157 = arith.constant 0 : index
    %464 = vector.load %arg23[%c1920, %c0_157] : memref<2560x128xf32, #tpu.memory_space<vmem>>, vector<640x128xf32>
    %cst_158 = arith.constant dense<0.000000e+00> : vector<4x128xf32>
    %465 = tpu.matmul %463, %464, %cst_158 {dimension_numbers = #tpu.dot_dimension_numbers<[1], [0], [0], [1], [0, 0, 1, 1], [], []>} : vector<4x640xf32>, vector<640x128xf32>, vector<4x128xf32> -> vector<4x128xf32>
    %466 = arith.addf %462, %465 : vector<4x128xf32>
    %c0_159 = arith.constant 0 : index
    %c0_160 = arith.constant 0 : index
    %467 = vector.load %arg8[%c0_159, %c0_160] : memref<1x128xf32, #tpu.memory_space<vmem>>, vector<1x128xf32>
    %468 = vector.broadcast %467 : vector<1x128xf32> to vector<4x128xf32>
    %469 = arith.addf %466, %468 : vector<4x128xf32>
    %cst_161 = arith.constant 0.000000e+00 : f32
    %470 = vector.broadcast %cst_161 : f32 to vector<4x128xf32>
    %471 = arith.maximumf %469, %470 : vector<4x128xf32>
    %c0_162 = arith.constant 0 : index
    %c0_163 = arith.constant 0 : index
    %472 = vector.load %arg9[%c0_162, %c0_163] : memref<128x128xf32, #tpu.memory_space<vmem>>, vector<128x128xf32>
    %cst_164 = arith.constant dense<0.000000e+00> : vector<4x128xf32>
    %473 = tpu.matmul %471, %472, %cst_164 {dimension_numbers = #tpu.dot_dimension_numbers<[1], [0], [0], [1], [0, 0, 1, 1], [], []>} : vector<4x128xf32>, vector<128x128xf32>, vector<4x128xf32> -> vector<4x128xf32>
    %c0_165 = arith.constant 0 : index
    %c0_166 = arith.constant 0 : index
    %474 = vector.load %arg10[%c0_165, %c0_166] : memref<1x128xf32, #tpu.memory_space<vmem>>, vector<1x128xf32>
    %475 = vector.broadcast %474 : vector<1x128xf32> to vector<4x128xf32>
    %476 = arith.addf %473, %475 : vector<4x128xf32>
    %cst_167 = arith.constant 0.000000e+00 : f32
    %477 = vector.broadcast %cst_167 : f32 to vector<4x128xf32>
    %478 = arith.maximumf %476, %477 : vector<4x128xf32>
    %c0_168 = arith.constant 0 : index
    %c0_169 = arith.constant 0 : index
    %479 = vector.load %arg11[%c0_168, %c0_169] : memref<128x128xf32, #tpu.memory_space<vmem>>, vector<128x128xf32>
    %cst_170 = arith.constant dense<0.000000e+00> : vector<4x128xf32>
    %480 = tpu.matmul %478, %479, %cst_170 {dimension_numbers = #tpu.dot_dimension_numbers<[1], [0], [0], [1], [0, 0, 1, 1], [], []>} : vector<4x128xf32>, vector<128x128xf32>, vector<4x128xf32> -> vector<4x128xf32>
    %c0_171 = arith.constant 0 : index
    %c0_172 = arith.constant 0 : index
    %481 = vector.load %arg12[%c0_171, %c0_172] : memref<1x128xf32, #tpu.memory_space<vmem>>, vector<1x128xf32>
    %482 = vector.broadcast %481 : vector<1x128xf32> to vector<4x128xf32>
    %483 = arith.addf %480, %482 : vector<4x128xf32>
    %cst_173 = arith.constant 0.000000e+00 : f32
    %484 = vector.broadcast %cst_173 : f32 to vector<4x128xf32>
    %485 = arith.maximumf %483, %484 : vector<4x128xf32>
    %486 = vector.extract_strided_slice %485 {offsets = [0, 0], sizes = [2, 128], strides = [1, 1]} : vector<4x128xf32> to vector<2x128xf32>
    %487 = vector.extract_strided_slice %485 {offsets = [2, 0], sizes = [2, 128], strides = [1, 1]} : vector<4x128xf32> to vector<2x128xf32>
    %488 = arith.subf %486, %487 : vector<2x128xf32>
    %c0_174 = arith.constant 0 : index
    %c0_175 = arith.constant 0 : index
    %489 = vector.load %arg6[%c0_174, %c0_175] : memref<2x80xf32, #tpu.memory_space<vmem>>, vector<2x80xf32>
    %c0_176 = arith.constant 0 : index
    %c0_177 = arith.constant 0 : index
    %490 = vector.load %arg13[%c0_176, %c0_177] : memref<80x128xf32, #tpu.memory_space<vmem>>, vector<80x128xf32>
    %cst_178 = arith.constant dense<0.000000e+00> : vector<2x128xf32>
    %491 = tpu.matmul %489, %490, %cst_178 {dimension_numbers = #tpu.dot_dimension_numbers<[1], [0], [0], [1], [0, 0, 1, 1], [], []>} : vector<2x80xf32>, vector<80x128xf32>, vector<2x128xf32> -> vector<2x128xf32>
    %c0_179 = arith.constant 0 : index
    %c0_180 = arith.constant 0 : index
    %492 = vector.load %arg14[%c0_179, %c0_180] : memref<128x128xf32, #tpu.memory_space<vmem>>, vector<128x128xf32>
    %cst_181 = arith.constant dense<0.000000e+00> : vector<2x128xf32>
    %493 = tpu.matmul %488, %492, %cst_181 {dimension_numbers = #tpu.dot_dimension_numbers<[1], [0], [0], [1], [0, 0, 1, 1], [], []>} : vector<2x128xf32>, vector<128x128xf32>, vector<2x128xf32> -> vector<2x128xf32>
    %494 = arith.addf %491, %493 : vector<2x128xf32>
    %c0_182 = arith.constant 0 : index
    %c0_183 = arith.constant 0 : index
    %495 = vector.load %arg15[%c0_182, %c0_183] : memref<1x128xf32, #tpu.memory_space<vmem>>, vector<1x128xf32>
    %496 = vector.broadcast %495 : vector<1x128xf32> to vector<2x128xf32>
    %497 = arith.addf %494, %496 : vector<2x128xf32>
    %cst_184 = arith.constant 0.000000e+00 : f32
    %498 = vector.broadcast %cst_184 : f32 to vector<2x128xf32>
    %499 = arith.maximumf %497, %498 : vector<2x128xf32>
    %c0_185 = arith.constant 0 : index
    %c0_186 = arith.constant 0 : index
    %500 = vector.load %arg16[%c0_185, %c0_186] : memref<128x128xf32, #tpu.memory_space<vmem>>, vector<128x128xf32>
    %cst_187 = arith.constant dense<0.000000e+00> : vector<2x128xf32>
    %501 = tpu.matmul %499, %500, %cst_187 {dimension_numbers = #tpu.dot_dimension_numbers<[1], [0], [0], [1], [0, 0, 1, 1], [], []>} : vector<2x128xf32>, vector<128x128xf32>, vector<2x128xf32> -> vector<2x128xf32>
    %c0_188 = arith.constant 0 : index
    %c0_189 = arith.constant 0 : index
    %502 = vector.load %arg17[%c0_188, %c0_189] : memref<1x128xf32, #tpu.memory_space<vmem>>, vector<1x128xf32>
    %503 = vector.broadcast %502 : vector<1x128xf32> to vector<2x128xf32>
    %504 = arith.addf %501, %503 : vector<2x128xf32>
    %cst_190 = arith.constant 0.000000e+00 : f32
    %505 = vector.broadcast %cst_190 : f32 to vector<2x128xf32>
    %506 = arith.maximumf %504, %505 : vector<2x128xf32>
    %c0_191 = arith.constant 0 : index
    %c0_192 = arith.constant 0 : index
    %507 = vector.load %arg18[%c0_191, %c0_192] : memref<128x8xf32, #tpu.memory_space<vmem>>, vector<128x8xf32>
    %cst_193 = arith.constant dense<0.000000e+00> : vector<2x8xf32>
    %508 = tpu.matmul %506, %507, %cst_193 {dimension_numbers = #tpu.dot_dimension_numbers<[1], [0], [0], [1], [0, 0, 1, 1], [], []>} : vector<2x128xf32>, vector<128x8xf32>, vector<2x8xf32> -> vector<2x8xf32>
    %c0_194 = arith.constant 0 : index
    %c0_195 = arith.constant 0 : index
    %509 = vector.load %arg19[%c0_194, %c0_195] : memref<1x8xf32, #tpu.memory_space<vmem>>, vector<1x8xf32>
    %510 = vector.broadcast %509 : vector<1x8xf32> to vector<2x8xf32>
    %511 = arith.addf %508, %510 : vector<2x8xf32>
    %512 = arith.negf %511 : vector<2x8xf32>
    %513 = math.exp %512 : vector<2x8xf32>
    %cst_196 = arith.constant 1.000000e+00 : f32
    %514 = vector.broadcast %cst_196 : f32 to vector<2x8xf32>
    %515 = arith.addf %514, %513 : vector<2x8xf32>
    %516 = arith.divf %514, %515 : vector<2x8xf32>
    %c0_197 = arith.constant 0 : index
    %c0_198 = arith.constant 0 : index
    %517 = vector.load %arg20[%c0_197, %c0_198] : memref<2x8xf32, #tpu.memory_space<vmem>>, vector<2x8xf32>
    tpu.vector_store %arg20[%c0_197, %c0_198], %516 {strides = array<i32>} : memref<2x8xf32, #tpu.memory_space<vmem>>, vector<2x8xf32>,
    return
  }
}

</mosaic_0001>

<bundles_post_ra>
// kernel: forward.1
= control target key start
LH: loop header
LB: loop body
LE: loop exit
PB: predicated region body
PF: predicated region fallthrough
CT: control target
= control target key end

     0   :  { %s9443_s0 = inlined_call_operand.vmem [shape: f32[320,8], index: 0, kind: input, shape index: {}]   ;;  %s9444_s1 = inlined_call_operand.vmem [shape: f32[16,32], index: 1, kind: input, shape index: {}]   ;;  %s9445_s2 = inlined_call_operand.vmem [shape: f32[16,32], index: 2, kind: input, shape index: {}]   ;;  %s9446_s3 = inlined_call_operand.hbm [shape: f32[8,128], index: 3, kind: input, shape index: {}]   ;;  %s9447_s4 = inlined_call_operand.hbm [shape: f32[32,128], index: 4, kind: input, shape index: {}]   ;;  %s9448_s5 = inlined_call_operand.hbm [shape: f32[1,128], index: 5, kind: input, shape index: {}]   ;;  %s9449_s6 = inlined_call_operand.hbm [shape: f32[2,80], index: 6, kind: input, shape index: {}]   ;;  %s9450_s7 = inlined_call_operand.hbm [shape: f32[2560,128], index: 7, kind: input, shape index: {}]   ;;  %s9451_s8 = inlined_call_operand.hbm [shape: f32[1,128], index: 8, kind: input, shape index: {}]   ;;  %s9452_s9 = inlined_call_operand.hbm [shape: f32[128,128], index: 9, kind: input, shape index: {}]   ;;  %s9453_s10 = inlined_call_operand.hbm [shape: f32[1,128], index: 10, kind: input, shape index: {}]   ;;  %s9454_s11 = inlined_call_operand.hbm [shape: f32[128,128], index: 11, kind: input, shape index: {}]   ;;  %s9455_s12 = inlined_call_operand.hbm [shape: f32[1,128], index: 12, kind: input, shape index: {}]   ;;  %s9456_s13 = inlined_call_operand.hbm [shape: f32[80,128], index: 13, kind: input, shape index: {}]   ;;  %s9457_s14 = inlined_call_operand.hbm [shape: f32[128,128], index: 14, kind: input, shape index: {}]   ;;  %s9458_s15 = inlined_call_operand.hbm [shape: f32[1,128], index: 15, kind: input, shape index: {}]   ;;  %s9459_s16 = inlined_call_operand.hbm [shape: f32[128,128], index: 16, kind: input, shape index: {}]   ;;  %s9460_s17 = inlined_call_operand.hbm [shape: f32[1,128], index: 17, kind: input, shape index: {}]   ;;  %s9461_s18 = inlined_call_operand.vmem [shape: f32[128,8], index: 18, kind: input, shape index: {}]   ;;  %s9462_s19 = inlined_call_operand.hbm [shape: f32[1,8], index: 19, kind: input, shape index: {}]   ;;  %s9463_s20 = inlined_call_operand.hbm [shape: f32[2,8], index: 20, kind: output, shape index: {}]  }
   0x1   :  { %9471 = sst [smem:[#allocation45_spill]] %s9443_s0 }
   0x2   :  { %9472 = sst [smem:[#allocation46_spill]] %s9444_s1 }
   0x3   :  { %9473 = sst [smem:[#allocation47_spill]] %s9445_s2 }
   0x4   :  { %9474 = sst [smem:[#allocation48_spill]] %s9446_s3 }
   0x5   :  { %9475 = sst [smem:[#allocation49_spill]] %s9447_s4 }
   0x6   :  { %9476 = sst [smem:[#allocation50_spill]] %s9461_s18 }
   0x7   :  { %9477 = sst [smem:[#allocation51_spill]] %s9463_s20 }
   0x8   :  { %25 = vsyncpa [#allocation7], 0 }
   0x9   :  { %26 = vsyncpa [#allocation10], 0 }
   0xa   :  { %27 = vsyncpa [#allocation13], 0 }
   0xb   :  { %28 = vsyncpa [#allocation16], 0 }
   0xc   :  { %29 = vsyncpa [#allocation19], 0 }
   0xd   :  { %30 = vsyncpa [#allocation22], 0 }
   0xe   :  { %31 = vsyncpa [#allocation25], 0 }
   0xf   :  { %32 = vsyncpa [#allocation28], 0 }
  0x10   :  { %33 = vsyncpa [#allocation8], 0  ;;  %s8245_s1 = smov [#allocation9]   ;;  %s9478_s2 = sld [smem:[#allocation49_spill]] }
  0x11   :  { %s55_s22 = sshll.u32 %s8245_s1, 4  ;;  %s56_s22 = int_to_ptr.vmem [resolvable:$true] %s55_s22 }
  0x16   :  { %s7851_s25 = scalar_lea.hbm %s9478_s2, 512 }
  0x17   :  { %p7852_p0 = scmp.ne.s32.totalorder %s9478_s2, %s7851_s25  ;;  %p7855_p1 = scmp.lt.u32.totalorder %s7851_s25, %s9478_s2 }
  0x19   :  { %p7857_p2 = pnand %p7855_p1, %p7852_p0 }
  0x1b   :  { %7860 = shalt.err (!%p7857_p2)
}
  0x1c   :  { %s7861_s4 = scalar_lea.vmem %s56_s22, 512  ;;  %p7866_p4 = scmp.lt.s32.totalorder %s56_s22, %s56_s22 }
  0x1d   :  { %p7862_p3 = scmp.ne.s32.totalorder %s56_s22, %s7861_s4  ;;  %p7867_p5 = scmp.lt.s32.totalorder %s7861_s4, %s7861_s4 }
  0x1f   :  { %p7868_p6 = por %p7867_p5, %p7866_p4 }
  0x21   :  { %p7869_p7 = pnand %p7868_p6, %p7862_p3 }
  0x23   :  { %7872 = shalt.err (!%p7869_p7)
}
  0x24   :  { %s8246_s29 = smov 128   ;;  %s8247_s30 = smov 8  }
  0x25   :  { %61 = dma.hbm_to_vmem [thread:$0]  %s9478_s2, 512, %s56_s22, [#allocation10], %s8246_s29, %s8246_s29, %s8247_s30  }
  0x26   :  { %s8248_s1 = smov [#allocation12]   ;;  %s8249_s24 = smov [#allocation15]  }
  0x27   :  { %s78_s23 = sshll.u32 %s8248_s1, 4  ;;  %s97_s25 = sshll.u32 %s8249_s24, 4  ;;  %s79_s23 = int_to_ptr.vmem [resolvable:$true] %s78_s23  ;;  %s98_s25 = int_to_ptr.vmem [resolvable:$true] %s97_s25 }
  0x28   :  { %s7873_s27 = scalar_lea.hbm %s9449_s6, 32 }
  0x29   :  { %p7874_p8 = scmp.ne.s32.totalorder %s9449_s6, %s7873_s27  ;;  %p7877_p9 = scmp.lt.u32.totalorder %s7873_s27, %s9449_s6 }
  0x2b   :  { %p7879_p10 = pnand %p7877_p9, %p7874_p8 }
  0x2d   :  { %7882 = shalt.err (!%p7879_p10)
}
  0x2e   :  { %s7883_s22 = scalar_lea.vmem %s79_s23, 32  ;;  %p7888_p12 = scmp.lt.s32.totalorder %s79_s23, %s79_s23 }
  0x2f   :  { %p7884_p11 = scmp.ne.s32.totalorder %s79_s23, %s7883_s22  ;;  %p7889_p13 = scmp.lt.s32.totalorder %s7883_s22, %s7883_s22 }
  0x31   :  { %p7890_p0 = por %p7889_p13, %p7888_p12 }
  0x33   :  { %p7891_p1 = pnand %p7890_p0, %p7884_p11 }
  0x35   :  { %7894 = shalt.err (!%p7891_p1)
}
  0x36   :  { %81 = dma.hbm_to_vmem [thread:$0]  %s9449_s6, 32, %s79_s23, [#allocation13]  }
  0x37   :  { %s7895_s24 = scalar_lea.hbm %s9452_s9, 2048 }
  0x38   :  { %p7896_p2 = scmp.ne.s32.totalorder %s9452_s9, %s7895_s24  ;;  %p7899_p3 = scmp.lt.u32.totalorder %s7895_s24, %s9452_s9 }
  0x3a   :  { %p7901_p4 = pnand %p7899_p3, %p7896_p2 }
  0x3c   :  { %7904 = shalt.err (!%p7901_p4)
}
  0x3d   :  { %s7905_s27 = scalar_lea.vmem %s98_s25, 2048  ;;  %p7910_p6 = scmp.lt.s32.totalorder %s98_s25, %s98_s25 }
  0x3e   :  { %p7906_p5 = scmp.ne.s32.totalorder %s98_s25, %s7905_s27  ;;  %p7911_p7 = scmp.lt.s32.totalorder %s7905_s27, %s7905_s27 }
  0x40   :  { %p7912_p8 = por %p7911_p7, %p7910_p6 }
  0x42   :  { %p7913_p9 = pnand %p7912_p8, %p7906_p5 }
  0x44   :  { %7916 = shalt.err (!%p7913_p9)
}
  0x45   :  { %103 = dma.hbm_to_vmem [thread:$0]  %s9452_s9, 2048, %s98_s25, [#allocation16], %s8246_s29, %s8246_s29, %s8247_s30  }
  0x46   :  { %s8250_s28 = smov [#allocation18]   ;;  %s8251_s22 = smov [#allocation21]  }
  0x47   :  { %s119_s4 = sshll.u32 %s8250_s28, 4  ;;  %s141_s2 = sshll.u32 %s8251_s22, 4  ;;  %s120_s4 = int_to_ptr.vmem [resolvable:$true] %s119_s4  ;;  %s142_s2 = int_to_ptr.vmem [resolvable:$true] %s141_s2 }
  0x48   :  { %s7917_s1 = scalar_lea.hbm %s9454_s11, 2048 }
  0x49   :  { %p7918_p10 = scmp.ne.s32.totalorder %s9454_s11, %s7917_s1  ;;  %p7921_p11 = scmp.lt.u32.totalorder %s7917_s1, %s9454_s11 }
  0x4b   :  { %p7923_p12 = pnand %p7921_p11, %p7918_p10 }
  0x4d   :  { %7926 = shalt.err (!%p7923_p12)
}
  0x4e   :  { %s7927_s9 = scalar_lea.vmem %s120_s4, 2048  ;;  %p7932_p0 = scmp.lt.s32.totalorder %s120_s4, %s120_s4 }
  0x4f   :  { %p7928_p13 = scmp.ne.s32.totalorder %s120_s4, %s7927_s9  ;;  %p7933_p1 = scmp.lt.s32.totalorder %s7927_s9, %s7927_s9 }
  0x51   :  { %p7934_p2 = por %p7933_p1, %p7932_p0 }
  0x53   :  { %p7935_p3 = pnand %p7934_p2, %p7928_p13 }
  0x55   :  { %7938 = shalt.err (!%p7935_p3)
}
  0x56   :  { %125 = dma.hbm_to_vmem [thread:$0]  %s9454_s11, 2048, %s120_s4, [#allocation19], %s8246_s29, %s8246_s29, %s8247_s30  }
  0x57   :  { %s7939_s23 = scalar_lea.hbm %s9456_s13, 1280 }
  0x58   :  { %p7940_p4 = scmp.ne.s32.totalorder %s9456_s13, %s7939_s23  ;;  %p7943_p5 = scmp.lt.u32.totalorder %s7939_s23, %s9456_s13 }
  0x5a   :  { %p7945_p6 = pnand %p7943_p5, %p7940_p4 }
  0x5c   :  { %7948 = shalt.err (!%p7945_p6)
}
  0x5d   :  { %s7949_s1 = scalar_lea.vmem %s142_s2, 1280  ;;  %p7954_p8 = scmp.lt.s32.totalorder %s142_s2, %s142_s2 }
  0x5e   :  { %p7950_p7 = scmp.ne.s32.totalorder %s142_s2, %s7949_s1  ;;  %p7955_p9 = scmp.lt.s32.totalorder %s7949_s1, %s7949_s1 }
  0x60   :  { %p7956_p10 = por %p7955_p9, %p7954_p8 }
  0x62   :  { %p7957_p11 = pnand %p7956_p10, %p7950_p7 }
  0x64   :  { %7960 = shalt.err (!%p7957_p11)
}
  0x65   :  { %147 = dma.hbm_to_vmem [thread:$0]  %s9456_s13, 1280, %s142_s2, [#allocation22], %s8246_s29, %s8246_s29, %s8247_s30  }
  0x66   :  { %s8252_s24 = smov [#allocation24]   ;;  %s8253_s20 = smov [#allocation27]  }
  0x67   :  { %s166_s18 = sshll.u32 %s8252_s24, 4  ;;  %s188_s3 = sshll.u32 %s8253_s20, 4  ;;  %s167_s18 = int_to_ptr.vmem [resolvable:$true] %s166_s18  ;;  %s189_s3 = int_to_ptr.vmem [resolvable:$true] %s188_s3 }
  0x68   :  { %s7961_s26 = scalar_lea.hbm %s9458_s15, 16 }
  0x69   :  { %p7962_p12 = scmp.ne.s32.totalorder %s9458_s15, %s7961_s26  ;;  %p7965_p13 = scmp.lt.u32.totalorder %s7961_s26, %s9458_s15 }
  0x6b   :  { %p7967_p0 = pnand %p7965_p13, %p7962_p12 }
  0x6d   :  { %7970 = shalt.err (!%p7967_p0)
}
  0x6e   :  { %s7971_s13 = scalar_lea.vmem %s167_s18, 16  ;;  %s7975_s2 = scalar_lea.vmem %s167_s18, 32 }
  0x6f   :  { %p7972_p1 = scmp.ne.s32.totalorder %s167_s18, %s7971_s13  ;;  %p7976_p2 = scmp.lt.s32.totalorder %s167_s18, %s167_s18 }
  0x70   :  { %p7977_p3 = scmp.lt.s32.totalorder %s7975_s2, %s7971_s13 }
  0x72   :  { %p7978_p4 = por %p7977_p3, %p7976_p2 }
  0x74   :  { %p7979_p5 = pnand %p7978_p4, %p7972_p1 }
  0x76   :  { %7982 = shalt.err (!%p7979_p5)
}
  0x77   :  { %169 = dma.hbm_to_vmem [thread:$0]  %s9458_s15, 16, %s167_s18, [#allocation25]  }
  0x78   :  { %s7983_s11 = scalar_lea.hbm %s9460_s17, 16 }
  0x79   :  { %p7984_p6 = scmp.ne.s32.totalorder %s9460_s17, %s7983_s11  ;;  %p7987_p7 = scmp.lt.u32.totalorder %s7983_s11, %s9460_s17 }
  0x7b   :  { %p7989_p8 = pnand %p7987_p7, %p7984_p6 }
  0x7d   :  { %7992 = shalt.err (!%p7989_p8)
}
  0x7e   :  { %s7993_s25 = scalar_lea.vmem %s189_s3, 16  ;;  %s7997_s26 = scalar_lea.vmem %s189_s3, 32 }
  0x7f   :  { %p7994_p9 = scmp.ne.s32.totalorder %s189_s3, %s7993_s25  ;;  %p7998_p10 = scmp.lt.s32.totalorder %s189_s3, %s189_s3 }
  0x80   :  { %p7999_p11 = scmp.lt.s32.totalorder %s7997_s26, %s7993_s25 }
  0x82   :  { %p8000_p12 = por %p7999_p11, %p7998_p10 }
  0x84   :  { %p8001_p13 = pnand %p8000_p12, %p7994_p9 }
  0x86   :  { %8004 = shalt.err (!%p8001_p13)
}
  0x87   :  { %191 = dma.hbm_to_vmem [thread:$0]  %s9460_s17, 16, %s189_s3, [#allocation28]  }
  0x88   :  { %s8254_s27 = smov [#allocation6]   ;;  %s8255_s23 = smov [#allocation11]  }
  0x89   :  { %s46_s6 = sshll.u32 %s8254_s27, 4  ;;  %s68_s28 = sshll.u32 %s8255_s23, 4  ;;  %s47_s6 = int_to_ptr.vmem [resolvable:$true] %s46_s6  ;;  %s69_s28 = int_to_ptr.vmem [resolvable:$true] %s68_s28 }
  0x8a   :  { %s9479_s22 = sld [smem:[#allocation48_spill]] }
  0x90   :  { %s8005_s0 = scalar_lea.hbm %s9479_s22, 128 }
  0x91   :  { %p8006_p0 = scmp.ne.s32.totalorder %s9479_s22, %s8005_s0  ;;  %p8009_p1 = scmp.lt.u32.totalorder %s8005_s0, %s9479_s22 }
  0x93   :  { %p8011_p2 = pnand %p8009_p1, %p8006_p0 }
  0x95   :  { %8014 = shalt.err (!%p8011_p2)
}
  0x96   :  { %s8015_s17 = scalar_lea.vmem %s47_s6, 128  ;;  %p8020_p4 = scmp.lt.s32.totalorder %s47_s6, %s47_s6 }
  0x97   :  { %p8016_p3 = scmp.ne.s32.totalorder %s47_s6, %s8015_s17  ;;  %p8021_p5 = scmp.lt.s32.totalorder %s8015_s17, %s8015_s17 }
  0x99   :  { %p8022_p6 = por %p8021_p5, %p8020_p4 }
  0x9b   :  { %p8023_p7 = pnand %p8022_p6, %p8016_p3 }
  0x9d   :  { %8026 = shalt.err (!%p8023_p7)
}
  0x9e   :  { %49 = dma.hbm_to_vmem [thread:$0]  %s9479_s22, 128, %s47_s6, [#allocation7]  }
  0x9f   :  { %s8027_s25 = scalar_lea.hbm %s9448_s5, 16 }
  0xa0   :  { %p8028_p8 = scmp.ne.s32.totalorder %s9448_s5, %s8027_s25  ;;  %p8031_p9 = scmp.lt.u32.totalorder %s8027_s25, %s9448_s5 }
  0xa2   :  { %p8033_p10 = pnand %p8031_p9, %p8028_p8 }
  0xa4   :  { %8036 = shalt.err (!%p8033_p10)
}
  0xa5   :  { %s8037_s23 = scalar_lea.vmem %s69_s28, 16  ;;  %s8041_s13 = scalar_lea.vmem %s69_s28, 32 }
  0xa6   :  { %p8038_p11 = scmp.ne.s32.totalorder %s69_s28, %s8037_s23  ;;  %p8042_p12 = scmp.lt.s32.totalorder %s69_s28, %s69_s28 }
  0xa7   :  { %p8043_p13 = scmp.lt.s32.totalorder %s8041_s13, %s8037_s23 }
  0xa9   :  { %p8044_p0 = por %p8043_p13, %p8042_p12 }
  0xab   :  { %p8045_p1 = pnand %p8044_p0, %p8038_p11 }
  0xad   :  { %8048 = shalt.err (!%p8045_p1)
}
  0xae   :  { %71 = dma.hbm_to_vmem [thread:$0]  %s9448_s5, 16, %s69_s28, [#allocation10]  }
  0xaf   :  { %s8256_s22 = smov [#allocation14]   ;;  %s8257_s21 = smov [#allocation17]  }
  0xb0   :  { %s88_s0 = sshll.u32 %s8256_s22, 4  ;;  %s110_s1 = sshll.u32 %s8257_s21, 4  ;;  %s89_s0 = int_to_ptr.vmem [resolvable:$true] %s88_s0  ;;  %s111_s1 = int_to_ptr.vmem [resolvable:$true] %s110_s1 }
  0xb1   :  { %s8049_s17 = scalar_lea.hbm %s9451_s8, 16 }
  0xb2   :  { %p8050_p2 = scmp.ne.s32.totalorder %s9451_s8, %s8049_s17  ;;  %p8053_p3 = scmp.lt.u32.totalorder %s8049_s17, %s9451_s8 }
  0xb4   :  { %p8055_p4 = pnand %p8053_p3, %p8050_p2 }
  0xb6   :  { %8058 = shalt.err (!%p8055_p4)
}
  0xb7   :  { %s8059_s5 = scalar_lea.vmem %s89_s0, 16  ;;  %s8063_s28 = scalar_lea.vmem %s89_s0, 32 }
  0xb8   :  { %p8060_p5 = scmp.ne.s32.totalorder %s89_s0, %s8059_s5  ;;  %p8064_p6 = scmp.lt.s32.totalorder %s89_s0, %s89_s0 }
  0xb9   :  { %p8065_p7 = scmp.lt.s32.totalorder %s8063_s28, %s8059_s5 }
  0xbb   :  { %p8066_p8 = por %p8065_p7, %p8064_p6 }
  0xbd   :  { %p8067_p9 = pnand %p8066_p8, %p8060_p5 }
  0xbf   :  { %8070 = shalt.err (!%p8067_p9)
}
  0xc0   :  { %91 = dma.hbm_to_vmem [thread:$0]  %s9451_s8, 16, %s89_s0, [#allocation13]  }
  0xc1   :  { %s8071_s27 = scalar_lea.hbm %s9453_s10, 16 }
  0xc2   :  { %p8072_p10 = scmp.ne.s32.totalorder %s9453_s10, %s8071_s27  ;;  %p8075_p11 = scmp.lt.u32.totalorder %s8071_s27, %s9453_s10 }
  0xc4   :  { %p8077_p12 = pnand %p8075_p11, %p8072_p10 }
  0xc6   :  { %8080 = shalt.err (!%p8077_p12)
}
  0xc7   :  { %s8081_s22 = scalar_lea.vmem %s111_s1, 16  ;;  %s8085_s21 = scalar_lea.vmem %s111_s1, 32 }
  0xc8   :  { %p8082_p13 = scmp.ne.s32.totalorder %s111_s1, %s8081_s22  ;;  %p8086_p0 = scmp.lt.s32.totalorder %s111_s1, %s111_s1 }
  0xc9   :  { %p8087_p1 = scmp.lt.s32.totalorder %s8085_s21, %s8081_s22 }
  0xcb   :  { %p8088_p2 = por %p8087_p1, %p8086_p0 }
  0xcd   :  { %p8089_p3 = pnand %p8088_p2, %p8082_p13 }
  0xcf   :  { %8092 = shalt.err (!%p8089_p3)
}
  0xd0   :  { %113 = dma.hbm_to_vmem [thread:$0]  %s9453_s10, 16, %s111_s1, [#allocation16]  }
  0xd1   :  { %s8258_s11 = smov [#allocation20]   ;;  %s8259_s17 = smov [#allocation23]  }
  0xd2   :  { %s132_s4 = sshll.u32 %s8258_s11, 4  ;;  %s153_s3 = sshll.u32 %s8259_s17, 4  ;;  %s133_s4 = int_to_ptr.vmem [resolvable:$true] %s132_s4  ;;  %s154_s3 = int_to_ptr.vmem [resolvable:$true] %s153_s3 }
  0xd3   :  { %s8093_s9 = scalar_lea.hbm %s9455_s12, 16 }
  0xd4   :  { %p8094_p4 = scmp.ne.s32.totalorder %s9455_s12, %s8093_s9  ;;  %p8097_p5 = scmp.lt.u32.totalorder %s8093_s9, %s9455_s12 }
  0xd6   :  { %p8099_p6 = pnand %p8097_p5, %p8094_p4 }
  0xd8   :  { %8102 = shalt.err (!%p8099_p6)
}
  0xd9   :  { %s8103_s10 = scalar_lea.vmem %s133_s4, 16  ;;  %s8107_s1 = scalar_lea.vmem %s133_s4, 32 }
  0xda   :  { %p8104_p7 = scmp.ne.s32.totalorder %s133_s4, %s8103_s10  ;;  %p8108_p8 = scmp.lt.s32.totalorder %s133_s4, %s133_s4 }
  0xdb   :  { %p8109_p9 = scmp.lt.s32.totalorder %s8107_s1, %s8103_s10 }
  0xdd   :  { %p8110_p10 = por %p8109_p9, %p8108_p8 }
  0xdf   :  { %p8111_p11 = pnand %p8110_p10, %p8104_p7 }
  0xe1   :  { %8114 = shalt.err (!%p8111_p11)
}
  0xe2   :  { %135 = dma.hbm_to_vmem [thread:$0]  %s9455_s12, 16, %s133_s4, [#allocation19]  }
  0xe3   :  { %s8115_s13 = scalar_lea.hbm %s9457_s14, 2048 }
  0xe4   :  { %p8116_p12 = scmp.ne.s32.totalorder %s9457_s14, %s8115_s13  ;;  %p8119_p13 = scmp.lt.u32.totalorder %s8115_s13, %s9457_s14 }
  0xe6   :  { %p8121_p0 = pnand %p8119_p13, %p8116_p12 }
  0xe8   :  { %8124 = shalt.err (!%p8121_p0)
}
  0xe9   :  { %s8125_s8 = scalar_lea.vmem %s154_s3, 2048  ;;  %p8130_p2 = scmp.lt.s32.totalorder %s154_s3, %s154_s3 }
  0xea   :  { %p8126_p1 = scmp.ne.s32.totalorder %s154_s3, %s8125_s8  ;;  %p8131_p3 = scmp.lt.s32.totalorder %s8125_s8, %s8125_s8 }
  0xec   :  { %p8132_p4 = por %p8131_p3, %p8130_p2 }
  0xee   :  { %p8133_p5 = pnand %p8132_p4, %p8126_p1 }
  0xf0   :  { %8136 = shalt.err (!%p8133_p5)
}
  0xf1   :  { %159 = dma.hbm_to_vmem [thread:$0]  %s9457_s14, 2048, %s154_s3, [#allocation22], %s8246_s29, %s8246_s29, %s8247_s30  }
  0xf2   :  { %s8260_s11 = smov [#allocation26]   ;;  %s8261_s17 = smov [#allocation29]  }
  0xf3   :  { %s175_s4 = sshll.u32 %s8260_s11, 4  ;;  %s200_s24 = sshll.u32 %s8261_s17, 4  ;;  %s176_s4 = int_to_ptr.vmem [resolvable:$true] %s175_s4  ;;  %s201_s24 = int_to_ptr.vmem [resolvable:$true] %s200_s24 }
  0xf4   :  { %s8137_s5 = scalar_lea.hbm %s9459_s16, 2048 }
  0xf5   :  { %p8138_p6 = scmp.ne.s32.totalorder %s9459_s16, %s8137_s5  ;;  %p8141_p7 = scmp.lt.u32.totalorder %s8137_s5, %s9459_s16 }
  0xf7   :  { %p8143_p8 = pnand %p8141_p7, %p8138_p6 }
  0xf9   :  { %8146 = shalt.err (!%p8143_p8)
}
  0xfa   :  { %s8147_s14 = scalar_lea.vmem %s176_s4, 2048  ;;  %p8152_p10 = scmp.lt.s32.totalorder %s176_s4, %s176_s4 }
  0xfb   :  { %p8148_p9 = scmp.ne.s32.totalorder %s176_s4, %s8147_s14  ;;  %p8153_p11 = scmp.lt.s32.totalorder %s8147_s14, %s8147_s14 }
  0xfd   :  { %p8154_p12 = por %p8153_p11, %p8152_p10 }
  0xff   :  { %p8155_p13 = pnand %p8154_p12, %p8148_p9 }
 0x101   :  { %8158 = shalt.err (!%p8155_p13)
}
 0x102   :  { %181 = dma.hbm_to_vmem [thread:$0]  %s9459_s16, 2048, %s176_s4, [#allocation25], %s8246_s29, %s8246_s29, %s8247_s30  }
 0x103   :  { %s8159_s27 = scalar_lea.hbm %s9462_s19, 16 }
 0x104   :  { %p8160_p0 = scmp.ne.s32.totalorder %s9462_s19, %s8159_s27  ;;  %p8163_p1 = scmp.lt.u32.totalorder %s8159_s27, %s9462_s19 }
 0x106   :  { %p8165_p2 = pnand %p8163_p1, %p8160_p0 }
 0x108   :  { %8168 = shalt.err (!%p8165_p2)
}
 0x109   :  { %s8169_s22 = scalar_lea.vmem %s201_s24, 16  ;;  %s8173_s21 = scalar_lea.vmem %s201_s24, 32 }
 0x10a   :  { %p8170_p3 = scmp.ne.s32.totalorder %s201_s24, %s8169_s22  ;;  %p8174_p4 = scmp.lt.s32.totalorder %s201_s24, %s201_s24 }
 0x10b   :  { %p8175_p5 = scmp.lt.s32.totalorder %s8173_s21, %s8169_s22 }
 0x10d   :  { %p8176_p6 = por %p8175_p5, %p8174_p4 }
 0x10f   :  { %p8177_p7 = pnand %p8176_p6, %p8170_p3 }
 0x111   :  { %8180 = shalt.err (!%p8177_p7)
}
 0x112   :  { %203 = dma.hbm_to_vmem [thread:$0]  %s9462_s19, 16, %s201_s24, [#allocation28]  }
 0x113   :  { %8225 = dma.done.wait [#allocation7], 128  }
 0x114   :  { %8226 = vsyncadd [#allocation7], 4294967168 }
 0x115   :  { %8227 = dma.done.wait [#allocation10], 528  }
 0x116   :  { %8228 = vsyncadd [#allocation10], 4294966768 }
 0x117   :  { %8229 = dma.done.wait [#allocation13], 48  }
 0x118   :  { %8230 = vsyncadd [#allocation13], 4294967248 }
 0x119   :  { %8231 = dma.done.wait [#allocation16], 2064  }
 0x11a   :  { %8232 = vsyncadd [#allocation16], 4294965232 }
 0x11b   :  { %8233 = dma.done.wait [#allocation19], 2064  }
 0x11c   :  { %8234 = vsyncadd [#allocation19], 4294965232 }
 0x11d   :  { %8235 = dma.done.wait [#allocation22], 3328  }
 0x11e   :  { %8236 = vsyncadd [#allocation22], 4294963968 }
 0x11f   :  { %8237 = dma.done.wait [#allocation25], 2064  }
 0x120   :  { %8238 = vsyncadd [#allocation25], 4294965232 }
 0x121   :  { %8239 = dma.done.wait [#allocation28], 32  }
 0x122   :  { %8240 = vsyncadd [#allocation28], 4294967264  ;;  %vm308_vm0 = vcmask 64512   ;;  %v300_v0 = vld [vmem:[#allocation6] sm:$0xff]  ;;  %s9480_s8 = sld [smem:[#allocation45_spill]]  ;;  %v734_v3 = vld [vmem:[#allocation9] sm:$0xff] }
 0x123   :  { %6234 = vmatprep.subr.mxu0 %v300_v0  ;;  %v735_v4 = vld [vmem:[#allocation9 + $0x8] sm:$0xff]  ;;  %v736_v10 = vld [vmem:[#allocation9 + $0x10] sm:$0xff]  ;;  %v737_v11 = vld [vmem:[#allocation9 + $0x18] sm:$0xff]  ;;  %s9481_s27 = sld [smem:[#allocation47_spill]]  ;;  %s8262_s6 = smov 32   ;;  %vm744_vm1 = vcmask 261120  }
 0x124   :  { %6235 = vmatpush3.msra.mxu0 %v300_v0  ;;  %v8583_v6 = vpack.c.bf16 %v735_v4, %v734_v3  ;;  %v8603_v13 = vpack.c.bf16 %v737_v11, %v736_v10  ;;  %s9482_s0 = sld [smem:[#allocation46_spill]]  ;;  %v8762_v51 = vld [vmem:[#allocation11] ss:$0 sm:$0xff]  ;;  %vm1037_vm2 = vcmask 523520   ;;  %s8265_s17 = smov [#allocation4]  }
 0x125   :  { %s256_s24 = sshll.u32 %s8265_s17, 4  ;;  %s8181_s5 = scalar_lea.hbm %s9450_s7, 40960  ;;  %s257_s24 = int_to_ptr.vmem [resolvable:$true] %s256_s24 }
 0x126   :  { %6855 = vmatprep.subr.bf16.mxu0 %v8583_v6  ;;  %p8182_p8 = scmp.ne.s32.totalorder %s9450_s7, %s8181_s5  ;;  %p8185_p9 = scmp.lt.u32.totalorder %s8181_s5, %s9450_s7 }
 0x128   :  { %v260_v1 = vld [vmem:[%s9480_s8] sm:$0xff]  ;;  %v261_v2 = vld [vmem:[%s9480_s8 + $0x8] sm:$0xff]  ;;  %v262_v5 = vld [vmem:[%s9480_s8 + $0x10] sm:$0xff]  ;;  %p8187_p10 = pnand %p8185_p9, %p8182_p8 }
 0x129   :  { %6236 = vmatprep.mubr.msk.f32.mxu0 %vm308_vm0, %v260_v1  ;;  %v263_v7 = vld [vmem:[%s9480_s8 + $0x18] sm:$0xff]  ;;  %v264_v8 = vld [vmem:[%s9480_s8 + $0x20] sm:$0xff]  ;;  %v265_v9 = vld [vmem:[%s9480_s8 + $0x28] sm:$0xff] }
 0x12a   :  { %6237 = vmatmul.mubr.msk.f32.vlgmr.msra.gmra.mrb[0].mxu0 %vm308_vm0, %v261_v2  ;;  %v266_v12 = vld [vmem:[%s9480_s8 + $0x30] sm:$0xff]  ;;  %v267_v14 = vld [vmem:[%s9480_s8 + $0x38] sm:$0xff]  ;;  %v268_v15 = vld [vmem:[%s9480_s8 + $0x40] sm:$0xff] }
 0x12b   :  { %6239 = vmatprep.mubr.msk.f32.mxu0 %vm308_vm0, %v262_v5  ;;  %6857 = vmatpush3.bf16.msra.mxu0 %v8583_v6  ;;  %v740_v16 = vld [vmem:[%s9481_s27] sm:$0xff]  ;;  %v269_v17 = vld [vmem:[%s9480_s8 + $0x48] sm:$0xff]  ;;  %v270_v18 = vld [vmem:[%s9480_s8 + $0x50] sm:$0xff] }
 0x12c   :  { %6859 = vmatprep.subr.bf16.mxu0 %v8603_v13  ;;  %846 = vrot.lane.b32.xlu1 %v740_v16, %s8262_s6  ;;  %v741_v19 = vld [vmem:[%s9481_s27 + $0x8] sm:$0xff]  ;;  %v271_v20 = vld [vmem:[%s9480_s8 + $0x58] sm:$0xff]  ;;  %v272_v21 = vld [vmem:[%s9480_s8 + $0x60] sm:$0xff] }
 0x12d   :  { %v273_v22 = vld [vmem:[%s9480_s8 + $0x68] sm:$0xff]  ;;  %v274_v23 = vld [vmem:[%s9480_s8 + $0x70] sm:$0xff]  ;;  %v275_v24 = vld [vmem:[%s9480_s8 + $0x78] sm:$0xff] }
 0x12e   :  { %6240 = vmatmul.mubr.msk.f32.gmra.mrb[2].mxu0 %vm308_vm0, %v263_v7  ;;  %v276_v25 = vld [vmem:[%s9480_s8 + $0x80] sm:$0xff]  ;;  %v277_v26 = vld [vmem:[%s9480_s8 + $0x88] sm:$0xff]  ;;  %v278_v27 = vld [vmem:[%s9480_s8 + $0x90] sm:$0xff] }
 0x12f   :  { %6242 = vmatprep.mubr.msk.f32.mxu0 %vm308_vm0, %v264_v8  ;;  %6861 = vmatpush3.bf16.msra.mxu0 %v8603_v13  ;;  %v279_v28 = vld [vmem:[%s9480_s8 + $0x98] sm:$0xff]  ;;  %v280_v29 = vld [vmem:[%s9480_s8 + $0xa0] sm:$0xff]  ;;  %v281_v30 = vld [vmem:[%s9480_s8 + $0xa8] sm:$0xff] }
 0x130   :  { %6863 = vmatprep.subr.bf16.mxu0 %v8583_v6  ;;  %848 = vrot.lane.b32.xlu1 %v741_v19, %s8262_s6  ;;  %v282_v31 = vld [vmem:[%s9480_s8 + $0xb0] sm:$0xff]  ;;  %v283_v32 = vld [vmem:[%s9480_s8 + $0xb8] sm:$0xff]  ;;  %v284_v33 = vld [vmem:[%s9480_s8 + $0xc0] sm:$0xff] }
 0x131   :  { %v285_v34 = vld [vmem:[%s9480_s8 + $0xc8] sm:$0xff]  ;;  %v286_v35 = vld [vmem:[%s9480_s8 + $0xd0] sm:$0xff]  ;;  %v287_v36 = vld [vmem:[%s9480_s8 + $0xd8] sm:$0xff] }
 0x132   :  { %6243 = vmatmul.mubr.msk.f32.gmra.mrb[4].mxu0 %vm308_vm0, %v265_v9  ;;  %v288_v37 = vld [vmem:[%s9480_s8 + $0xe0] sm:$0xff]  ;;  %v289_v38 = vld [vmem:[%s9480_s8 + $0xe8] sm:$0xff]  ;;  %v290_v39 = vld [vmem:[%s9480_s8 + $0xf0] sm:$0xff] }
 0x133   :  { %6245 = vmatprep.mubr.msk.f32.mxu0 %vm308_vm0, %v266_v12  ;;  %v291_v40 = vld [vmem:[%s9480_s8 + $0xf8] sm:$0xff]  ;;  %v292_v41 = vld [vmem:[%s9480_s8 + $0x100] sm:$0xff]  ;;  %v293_v42 = vld [vmem:[%s9480_s8 + $0x108] sm:$0xff] }
 0x134   :  { %v294_v43 = vld [vmem:[%s9480_s8 + $0x110] sm:$0xff]  ;;  %v295_v44 = vld [vmem:[%s9480_s8 + $0x118] sm:$0xff]  ;;  %v296_v45 = vld [vmem:[%s9480_s8 + $0x120] sm:$0xff] }
 0x135   :  { %v297_v46 = vld [vmem:[%s9480_s8 + $0x128] sm:$0xff]  ;;  %v298_v47 = vld [vmem:[%s9480_s8 + $0x130] sm:$0xff]  ;;  %v299_v48 = vld [vmem:[%s9480_s8 + $0x138] sm:$0xff]  ;;  %s8263_s8 = smov 64  }
 0x136   :  { %6246 = vmatmul.mubr.msk.f32.gmra.mrb[6].mxu0 %vm308_vm0, %v267_v14  ;;  %v738_v49 = vld [vmem:[%s9482_s0] sm:$0xff]  ;;  %v739_v50 = vld [vmem:[%s9482_s0 + $0x8] sm:$0xff] }
 0x137   :  { %6248 = vmatprep.mubr.msk.f32.mxu0 %vm308_vm0, %v268_v15 }
 0x13a   :  { %6249 = vmatmul.mubr.msk.f32.gmra.mrb[8].mxu0 %vm308_vm0, %v269_v17 }
 0x13b   :  { %6251 = vmatprep.mubr.msk.f32.mxu0 %vm308_vm0, %v270_v18 }
 0x13e   :  { %6252 = vmatmul.mubr.msk.f32.gmra.mrb[10].mxu0 %vm308_vm0, %v271_v20 }
 0x13f   :  { %6254 = vmatprep.mubr.msk.f32.mxu0 %vm308_vm0, %v272_v21 }
 0x142   :  { %6255 = vmatmul.mubr.msk.f32.gmra.mrb[12].mxu0 %vm308_vm0, %v273_v22 }
 0x143   :  { %6257 = vmatprep.mubr.msk.f32.mxu0 %vm308_vm0, %v274_v23 }
 0x146   :  { %6258 = vmatmul.mubr.msk.f32.gmra.mrb[14].mxu0 %vm308_vm0, %v275_v24 }
 0x147   :  { %6260 = vmatprep.mubr.msk.f32.mxu0 %vm308_vm0, %v276_v25 }
 0x14a   :  { %6261 = vmatmul.mubr.msk.f32.gmra.mrb[16].mxu0 %vm308_vm0, %v277_v26 }
 0x14b   :  { %6263 = vmatprep.mubr.msk.f32.mxu0 %vm308_vm0, %v278_v27 }
 0x14e   :  { %6264 = vmatmul.mubr.msk.f32.gmra.mrb[18].mxu0 %vm308_vm0, %v279_v28 }
 0x14f   :  { %6266 = vmatprep.mubr.msk.f32.mxu0 %vm308_vm0, %v280_v29 }
 0x152   :  { %6267 = vmatmul.mubr.msk.f32.gmra.mrb[20].mxu0 %vm308_vm0, %v281_v30 }
 0x153   :  { %6269 = vmatprep.mubr.msk.f32.mxu0 %vm308_vm0, %v282_v31 }
 0x156   :  { %6270 = vmatmul.mubr.msk.f32.gmra.mrb[22].mxu0 %vm308_vm0, %v283_v32 }
 0x157   :  { %6272 = vmatprep.mubr.msk.f32.mxu0 %vm308_vm0, %v284_v33 }
 0x15a   :  { %6273 = vmatmul.mubr.msk.f32.gmra.mrb[24].mxu0 %vm308_vm0, %v285_v34 }
 0x15b   :  { %6275 = vmatprep.mubr.msk.f32.mxu0 %vm308_vm0, %v286_v35 }
 0x15e   :  { %6276 = vmatmul.mubr.msk.f32.gmra.mrb[26].mxu0 %vm308_vm0, %v287_v36 }
 0x15f   :  { %6278 = vmatprep.mubr.msk.f32.mxu0 %vm308_vm0, %v288_v37 }
 0x162   :  { %6279 = vmatmul.mubr.msk.f32.gmra.mrb[28].mxu0 %vm308_vm0, %v289_v38 }
 0x163   :  { %6281 = vmatprep.mubr.msk.f32.mxu0 %vm308_vm0, %v290_v39 }
 0x166   :  { %6282 = vmatmul.mubr.msk.f32.gmra.mrb[30].mxu0 %vm308_vm0, %v291_v40 }
 0x167   :  { %6284 = vmatprep.mubr.msk.f32.mxu0 %vm308_vm0, %v292_v41 }
 0x16a   :  { %6285 = vmatmul.mubr.msk.f32.gmra.mrb[32].mxu0 %vm308_vm0, %v293_v42 }
 0x16b   :  { %6287 = vmatprep.mubr.msk.f32.mxu0 %vm308_vm0, %v294_v43 }
 0x16e   :  { %6288 = vmatmul.mubr.msk.f32.gmra.mrb[34].mxu0 %vm308_vm0, %v295_v44 }
 0x16f   :  { %6290 = vmatprep.mubr.msk.f32.mxu0 %vm308_vm0, %v296_v45 }
 0x172   :  { %6291 = vmatmul.mubr.msk.f32.gmra.mrb[36].mxu0 %vm308_vm0, %v297_v46 }
 0x173   :  { %6293 = vmatprep.mubr.msk.f32.mxu0 %vm308_vm0, %v298_v47 }
 0x176   :  { %6294 = vmatmul.mubr.msk.f32.gmra.mrb[38].mxu0 %vm308_vm0, %v299_v48 }
 0x177   :  { %6304 = vmatprep.mubr.msk.f32.mxu0 %vm744_vm1, %v738_v49 }
 0x17a   :  { %6305 = vmatmul.mubr.msk.f32.vlgmr.msra.gmra.mrb[0].mxu0 %vm744_vm1, %v739_v50 }
 0x17b   :  { %6865 = vmatpush3.bf16.msra.mxu0 %v8583_v6 }
 0x17c   :  { %6867 = vmatprep.subr.bf16.mxu0 %v8603_v13 }
 0x17f   :  { %6869 = vmatpush3.bf16.msra.mxu0 %v8603_v13 }
 0x180   :  { %6871 = vmatprep.subr.bf16.mxu0 %v8583_v6 }
 0x19e   :  { %v847_v9 = vpop.permute.xlu1 %846 }
 0x1a2   :  { %v849_v11 = vpop.permute.xlu1 %848 }
 0x24d   :  { %v6306_v52 = vpop.f32.mrb[0].mxu0 }
 0x24e   :  { %v7501_v53 = vadd.f32 %v6306_v52, %v8762_v51  ;;  %v817_v54 = vpop.f32.mrb[1].mxu0 }
 0x24f   :  { %v7502_v55 = vadd.f32 %v8762_v51, %v817_v54 }
 0x250   :  { %v5503_v56 = vmul.f32 -1.442695, %v7501_v53 }
 0x251   :  { %v5502_v57 = vmul.f32 -1.442695, %v7502_v55 }
 0x252   :  { %7606 = vpow2.f32 %v5503_v56 }
 0x253   :  { %7608 = vpow2.f32 %v5502_v57 }
 0x25c   :  { %v7607_v58 = vpop.eup %7606 }
 0x25d   :  { %v7609_v59 = vpop.eup %7608  ;;  %v835_v60 = vadd.f32 1.0, %v7607_v58 }
 0x25e   :  { %v834_v61 = vadd.f32 1.0, %v7609_v59 }
 0x25f   :  { %7610 = vrcp.f32 %v835_v60 }
 0x260   :  { %7612 = vrcp.f32 %v834_v61 }
 0x269   :  { %v7611_v62 = vpop.eup %7610 }
 0x26a   :  { %v7613_v63 = vpop.eup %7612  ;;  %v841_v2 = vmul.f32 2.0, %v7611_v62  ;;  %v853_v15 = vmul.f32 %v7611_v62, %v849_v11 }
 0x26b   :  { %v840_v0 = vmul.f32 2.0, %v7613_v63  ;;  %v852_v10 = vmul.f32 %v7613_v63, %v847_v9 }
 0x26c   :  { %v5505_v3 = vadd.f32 -1.0, %v841_v2 }
 0x26d   :  { %v5504_v1 = vadd.f32 -1.0, %v840_v0 }
 0x26f   :  { %856 = vrot.lane.b32.xlu0 %v5504_v1, %s8263_s8 }
 0x273   :  { %858 = vrot.lane.b32.xlu0 %v5505_v3, %s8263_s8 }
 0x2e1   :  { %v857_v4 = vpop.permute.xlu0 %856 }
 0x2e2   :  { %v862_v5 = vmul.f32 %v7613_v63, %v857_v4 }
 0x2e4   :  { %866 = vrot.lane.b32.xlu0 %v862_v5, %s8262_s6 }
 0x2e5   :  { %v859_v7 = vpop.permute.xlu0 %858 }
 0x2e6   :  { %v863_v8 = vmul.f32 %v7611_v62, %v859_v7 }
 0x2e8   :  { %868 = vrot.lane.b32.xlu1 %v863_v8, %s8262_s6 }
 0x356   :  { %v867_v12 = vpop.permute.xlu0 %866 }
 0x357   :  { %v872_v14 = vadd.f32 %v867_v12, %v852_v10 }
 0x359   :  { %7614 = vtanh.f32 %v872_v14 }
 0x35a   :  { %v869_v16 = vpop.permute.xlu1 %868 }
 0x35b   :  { %v873_v17 = vadd.f32 %v869_v16, %v853_v15 }
 0x35d   :  { %7616 = vtanh.f32 %v873_v17 }
 0x363   :  { %v7615_v18 = vpop.eup %7614 }
 0x364   :  { %878 = vrot.lane.b32.xlu0 %v7615_v18, %s8263_s8 }
 0x367   :  { %v7617_v19 = vpop.eup %7616 }
 0x368   :  { %880 = vrot.lane.b32.xlu1 %v7617_v19, %s8263_s8 }
 0x3d6   :  { %v879_v20 = vpop.permute.xlu0 %878 }
 0x3d7   :  { %v884_v21 = vmul.f32 %v7613_v63, %v879_v20 }
 0x3d9   :  { %888 = vrot.lane.b32.xlu0 %v884_v21, %s8262_s6 }
 0x3da   :  { %v881_v22 = vpop.permute.xlu1 %880 }
 0x3db   :  { %v885_v23 = vmul.f32 %v7611_v62, %v881_v22 }
 0x3dd   :  { %890 = vrot.lane.b32.xlu1 %v885_v23, %s8262_s6 }
 0x44b   :  { %v889_v24 = vpop.permute.xlu0 %888 }
 0x44c   :  { %894 = vst.msk [vmem:[#allocation3] sm:$0xff] %vm744_vm1, %v889_v24  ;;  %6315 = vmatprep.mubr.msk.f32.mxu0 %vm744_vm1, %v889_v24 }
 0x44f   :  { %v891_v25 = vpop.permute.xlu1 %890 }
 0x450   :  { %895 = vst.msk [vmem:[#allocation3 + $0x28] sm:$0xff] %vm744_vm1, %v891_v25  ;;  %6316 = vmatmul.mubr.msk.f32.vlgmr.msra.gmra.mrb[2].mxu0 %vm744_vm1, %v891_v25 }
 0x451   :  { %6873 = vmatpush3.bf16.msra.mxu0 %v8583_v6 }
 0x452   :  { %6875 = vmatprep.subr.bf16.mxu0 %v8603_v13 }
 0x455   :  { %6877 = vmatpush3.bf16.msra.mxu0 %v8603_v13 }
 0x456   :  { %6879 = vmatprep.subr.bf16.mxu0 %v8583_v6 }
 0x523   :  { %v6317_v26 = vpop.f32.mrb[2].mxu0 }
 0x524   :  { %v7503_v27 = vadd.f32 %v6317_v26, %v8762_v51  ;;  %v968_v28 = vpop.f32.mrb[3].mxu0 }
 0x525   :  { %v7504_v29 = vadd.f32 %v8762_v51, %v968_v28 }
 0x526   :  { %v5509_v30 = vmul.f32 -1.442695, %v7503_v27 }
 0x527   :  { %v5508_v31 = vmul.f32 -1.442695, %v7504_v29 }
 0x528   :  { %7618 = vpow2.f32 %v5509_v30 }
 0x529   :  { %7620 = vpow2.f32 %v5508_v31 }
 0x532   :  { %v7619_v32 = vpop.eup %7618 }
 0x533   :  { %v7621_v33 = vpop.eup %7620  ;;  %v986_v34 = vadd.f32 1.0, %v7619_v32 }
 0x534   :  { %v985_v35 = vadd.f32 1.0, %v7621_v33 }
 0x535   :  { %7622 = vrcp.f32 %v986_v34 }
 0x536   :  { %7624 = vrcp.f32 %v985_v35 }
 0x53f   :  { %v7623_v36 = vpop.eup %7622 }
 0x540   :  { %v7625_v37 = vpop.eup %7624  ;;  %v992_v38 = vmul.f32 2.0, %v7623_v36  ;;  %v996_v46 = vmul.f32 %v7623_v36, %v873_v17 }
 0x541   :  { %v991_v39 = vmul.f32 2.0, %v7625_v37  ;;  %v995_v48 = vmul.f32 %v7625_v37, %v872_v14 }
 0x542   :  { %v5511_v40 = vadd.f32 -1.0, %v992_v38 }
 0x543   :  { %v5510_v41 = vadd.f32 -1.0, %v991_v39 }
 0x544   :  { %1001 = vrot.lane.b32.xlu1 %v5511_v40, %s8263_s8 }
 0x545   :  { %999 = vrot.lane.b32.xlu0 %v5510_v41, %s8263_s8 }
 0x5b6   :  { %v1002_v42 = vpop.permute.xlu1 %1001 }
 0x5b7   :  { %v1006_v43 = vmul.f32 %v7623_v36, %v1002_v42  ;;  %v1000_v44 = vpop.permute.xlu0 %999 }
 0x5b8   :  { %v1005_v45 = vmul.f32 %v7625_v37, %v1000_v44 }
 0x5b9   :  { %1011 = vrot.lane.b32.xlu1 %v1006_v43, %s8262_s6 }
 0x5ba   :  { %1009 = vrot.lane.b32.xlu0 %v1005_v45, %s8262_s6 }
 0x62b   :  { %v1012_v47 = vpop.permute.xlu1 %1011 }
 0x62c   :  { %v1016_v49 = vadd.f32 %v1012_v47, %v996_v46  ;;  %v1010_v50 = vpop.permute.xlu0 %1009 }
 0x62d   :  { %v1015_v52 = vadd.f32 %v1010_v50, %v995_v48 }
 0x62e   :  { %7626 = vtanh.f32 %v1016_v49 }
 0x62f   :  { %7628 = vtanh.f32 %v1015_v52 }
 0x638   :  { %v7627_v53 = vpop.eup %7626 }
 0x639   :  { %v7629_v54 = vpop.eup %7628  ;;  %1023 = vrot.lane.b32.xlu1 %v7627_v53, %s8263_s8 }
 0x63a   :  { %1021 = vrot.lane.b32.xlu0 %v7629_v54, %s8263_s8 }
 0x6ab   :  { %v1024_v55 = vpop.permute.xlu1 %1023 }
 0x6ac   :  { %v8790_v56 = vmul.f32 %v7623_v36, %v1024_v55  ;;  %v1022_v57 = vpop.permute.xlu0 %1021 }
 0x6ad   :  { %v8792_v58 = vmul.f32 %v7625_v37, %v1022_v57 }
 0x6ae   :  { %1044 = vrot.lane.b32.xlu1 %v8790_v56, %s8262_s6 }
 0x6af   :  { %1042 = vrot.lane.b32.xlu0 %v8792_v58, %s8262_s6 }
 0x720   :  { %v1045_v60 = vpop.permute.xlu1 %1044 }
 0x721   :  { %v1043_v59 = vpop.permute.xlu0 %1042 }
 0x722   :  { %6326 = vmatprep.mubr.msk.f32.mxu0 %vm744_vm1, %v1043_v59 }
 0x723   :  { %6327 = vmatmul.mubr.msk.f32.vlgmr.msra.gmra.mrb[4].mxu0 %vm744_vm1, %v1045_v60 }
 0x724   :  { %6881 = vmatpush3.bf16.msra.mxu0 %v8583_v6 }
 0x725   :  { %6883 = vmatprep.subr.bf16.mxu0 %v8603_v13 }
 0x728   :  { %6885 = vmatpush3.bf16.msra.mxu0 %v8603_v13 }
 0x729   :  { %6887 = vmatprep.subr.bf16.mxu0 %v8583_v6 }
 0x7f6   :  { %v6328_v61 = vpop.f32.mrb[4].mxu0 }
 0x7f7   :  { %v7505_v62 = vadd.f32 %v6328_v61, %v8762_v51  ;;  %v1116_v63 = vpop.f32.mrb[5].mxu0 }
 0x7f8   :  { %v7506_v0 = vadd.f32 %v8762_v51, %v1116_v63 }
 0x7f9   :  { %v5515_v1 = vmul.f32 -1.442695, %v7505_v62 }
 0x7fa   :  { %v5514_v2 = vmul.f32 -1.442695, %v7506_v0 }
 0x7fb   :  { %7630 = vpow2.f32 %v5515_v1 }
 0x7fc   :  { %7632 = vpow2.f32 %v5514_v2 }
 0x805   :  { %v7631_v3 = vpop.eup %7630 }
 0x806   :  { %v7633_v4 = vpop.eup %7632  ;;  %v1134_v5 = vadd.f32 1.0, %v7631_v3 }
 0x807   :  { %v1133_v7 = vadd.f32 1.0, %v7633_v4 }
 0x808   :  { %7634 = vrcp.f32 %v1134_v5 }
 0x809   :  { %7636 = vrcp.f32 %v1133_v7 }
 0x812   :  { %v7635_v8 = vpop.eup %7634 }
 0x813   :  { %v7637_v9 = vpop.eup %7636  ;;  %v1140_v10 = vmul.f32 2.0, %v7635_v8  ;;  %v1144_v19 = vmul.f32 %v7635_v8, %v1016_v49 }
 0x814   :  { %v1139_v11 = vmul.f32 2.0, %v7637_v9  ;;  %v1143_v21 = vmul.f32 %v7637_v9, %v1015_v52 }
 0x815   :  { %v5517_v12 = vadd.f32 -1.0, %v1140_v10 }
 0x816   :  { %v5516_v14 = vadd.f32 -1.0, %v1139_v11 }
 0x817   :  { %1149 = vrot.lane.b32.xlu1 %v5517_v12, %s8263_s8 }
 0x818   :  { %1147 = vrot.lane.b32.xlu0 %v5516_v14, %s8263_s8 }
 0x889   :  { %v1150_v15 = vpop.permute.xlu1 %1149 }
 0x88a   :  { %v1154_v16 = vmul.f32 %v7635_v8, %v1150_v15  ;;  %v1148_v17 = vpop.permute.xlu0 %1147 }
 0x88b   :  { %v1153_v18 = vmul.f32 %v7637_v9, %v1148_v17 }
 0x88c   :  { %1159 = vrot.lane.b32.xlu1 %v1154_v16, %s8262_s6 }
 0x88d   :  { %1157 = vrot.lane.b32.xlu0 %v1153_v18, %s8262_s6 }
 0x8fe   :  { %v1160_v20 = vpop.permute.xlu1 %1159 }
 0x8ff   :  { %v1164_v22 = vadd.f32 %v1160_v20, %v1144_v19  ;;  %v1158_v23 = vpop.permute.xlu0 %1157 }
 0x900   :  { %v1163_v24 = vadd.f32 %v1158_v23, %v1143_v21 }
 0x901   :  { %7638 = vtanh.f32 %v1164_v22 }
 0x902   :  { %7640 = vtanh.f32 %v1163_v24 }
 0x90b   :  { %v7639_v25 = vpop.eup %7638 }
 0x90c   :  { %v7641_v26 = vpop.eup %7640  ;;  %1171 = vrot.lane.b32.xlu1 %v7639_v25, %s8263_s8 }
 0x90d   :  { %1169 = vrot.lane.b32.xlu0 %v7641_v26, %s8263_s8 }
 0x97e   :  { %v1172_v27 = vpop.permute.xlu1 %1171 }
 0x97f   :  { %v8812_v28 = vmul.f32 %v7635_v8, %v1172_v27  ;;  %v1170_v29 = vpop.permute.xlu0 %1169 }
 0x980   :  { %v8814_v30 = vmul.f32 %v7637_v9, %v1170_v29 }
 0x981   :  { %1192 = vrot.lane.b32.xlu1 %v8812_v28, %s8262_s6 }
 0x982   :  { %1190 = vrot.lane.b32.xlu0 %v8814_v30, %s8262_s6 }
 0x9f3   :  { %v1193_v32 = vpop.permute.xlu1 %1192 }
 0x9f4   :  { %v1191_v31 = vpop.permute.xlu0 %1190 }
 0x9f5   :  { %6337 = vmatprep.mubr.msk.f32.mxu0 %vm744_vm1, %v1191_v31 }
 0x9f6   :  { %6338 = vmatmul.mubr.msk.f32.vlgmr.msra.gmra.mrb[6].mxu0 %vm744_vm1, %v1193_v32 }
 0x9f7   :  { %6889 = vmatpush3.bf16.msra.mxu0 %v8583_v6 }
 0x9f8   :  { %6891 = vmatprep.subr.bf16.mxu0 %v8603_v13 }
 0x9fb   :  { %6893 = vmatpush3.bf16.msra.mxu0 %v8603_v13 }
 0x9fc   :  { %6895 = vmatprep.subr.bf16.mxu0 %v8583_v6 }
 0xac9   :  { %v6339_v33 = vpop.f32.mrb[6].mxu0 }
 0xaca   :  { %v7507_v34 = vadd.f32 %v6339_v33, %v8762_v51  ;;  %v1264_v35 = vpop.f32.mrb[7].mxu0 }
 0xacb   :  { %v7508_v36 = vadd.f32 %v8762_v51, %v1264_v35 }
 0xacc   :  { %v5521_v37 = vmul.f32 -1.442695, %v7507_v34 }
 0xacd   :  { %v5520_v38 = vmul.f32 -1.442695, %v7508_v36 }
 0xace   :  { %7642 = vpow2.f32 %v5521_v37 }
 0xacf   :  { %7644 = vpow2.f32 %v5520_v38 }
 0xad8   :  { %v7643_v39 = vpop.eup %7642 }
 0xad9   :  { %v7645_v40 = vpop.eup %7644  ;;  %v1282_v41 = vadd.f32 1.0, %v7643_v39 }
 0xada   :  { %v1281_v42 = vadd.f32 1.0, %v7645_v40 }
 0xadb   :  { %7646 = vrcp.f32 %v1282_v41 }
 0xadc   :  { %7648 = vrcp.f32 %v1281_v42 }
 0xae5   :  { %v7647_v43 = vpop.eup %7646 }
 0xae6   :  { %v7649_v44 = vpop.eup %7648  ;;  %v1288_v45 = vmul.f32 2.0, %v7647_v43  ;;  %v1292_v54 = vmul.f32 %v7647_v43, %v1164_v22 }
 0xae7   :  { %v1287_v46 = vmul.f32 2.0, %v7649_v44  ;;  %v1291_v57 = vmul.f32 %v7649_v44, %v1163_v24 }
 0xae8   :  { %v5523_v47 = vadd.f32 -1.0, %v1288_v45 }
 0xae9   :  { %v5522_v48 = vadd.f32 -1.0, %v1287_v46 }
 0xaea   :  { %1297 = vrot.lane.b32.xlu1 %v5523_v47, %s8263_s8 }
 0xaeb   :  { %1295 = vrot.lane.b32.xlu0 %v5522_v48, %s8263_s8 }
 0xb5c   :  { %v1298_v49 = vpop.permute.xlu1 %1297 }
 0xb5d   :  { %v1302_v50 = vmul.f32 %v7647_v43, %v1298_v49  ;;  %v1296_v52 = vpop.permute.xlu0 %1295 }
 0xb5e   :  { %v1301_v53 = vmul.f32 %v7649_v44, %v1296_v52 }
 0xb5f   :  { %1307 = vrot.lane.b32.xlu1 %v1302_v50, %s8262_s6 }
 0xb60   :  { %1305 = vrot.lane.b32.xlu0 %v1301_v53, %s8262_s6 }
 0xbd1   :  { %v1308_v55 = vpop.permute.xlu1 %1307 }
 0xbd2   :  { %v1312_v59 = vadd.f32 %v1308_v55, %v1292_v54  ;;  %v1306_v60 = vpop.permute.xlu0 %1305 }
 0xbd3   :  { %v1311_v61 = vadd.f32 %v1306_v60, %v1291_v57 }
 0xbd4   :  { %7650 = vtanh.f32 %v1312_v59 }
 0xbd5   :  { %7652 = vtanh.f32 %v1311_v61 }
 0xbde   :  { %v7651_v62 = vpop.eup %7650 }
 0xbdf   :  { %v7653_v63 = vpop.eup %7652  ;;  %1319 = vrot.lane.b32.xlu1 %v7651_v62, %s8263_s8 }
 0xbe0   :  { %1317 = vrot.lane.b32.xlu0 %v7653_v63, %s8263_s8 }
 0xc51   :  { %v1320_v0 = vpop.permute.xlu1 %1319 }
 0xc52   :  { %v8834_v1 = vmul.f32 %v7647_v43, %v1320_v0  ;;  %v1318_v2 = vpop.permute.xlu0 %1317 }
 0xc53   :  { %v8836_v3 = vmul.f32 %v7649_v44, %v1318_v2 }
 0xc54   :  { %1334 = vrot.lane.b32.xlu1 %v8834_v1, %s8262_s6 }
 0xc55   :  { %1332 = vrot.lane.b32.xlu0 %v8836_v3, %s8262_s6 }
 0xcc6   :  { %v1335_v5 = vpop.permute.xlu1 %1334 }
 0xcc7   :  { %v1333_v4 = vpop.permute.xlu0 %1332 }
 0xcc8   :  { %6348 = vmatprep.mubr.msk.f32.mxu0 %vm744_vm1, %v1333_v4 }
 0xcc9   :  { %6349 = vmatmul.mubr.msk.f32.vlgmr.msra.gmra.mrb[8].mxu0 %vm744_vm1, %v1335_v5 }
 0xcca   :  { %6897 = vmatpush3.bf16.msra.mxu0 %v8583_v6 }
 0xccb   :  { %6899 = vmatprep.subr.bf16.mxu0 %v8603_v13 }
 0xcce   :  { %6901 = vmatpush3.bf16.msra.mxu0 %v8603_v13 }
 0xccf   :  { %6903 = vmatprep.subr.bf16.mxu0 %v8583_v6 }
 0xd9c   :  { %v6350_v7 = vpop.f32.mrb[8].mxu0 }
 0xd9d   :  { %v7509_v8 = vadd.f32 %v6350_v7, %v8762_v51  ;;  %v1406_v9 = vpop.f32.mrb[9].mxu0 }
 0xd9e   :  { %v7510_v10 = vadd.f32 %v8762_v51, %v1406_v9 }
 0xd9f   :  { %v5527_v11 = vmul.f32 -1.442695, %v7509_v8 }
 0xda0   :  { %v5526_v12 = vmul.f32 -1.442695, %v7510_v10 }
 0xda1   :  { %7654 = vpow2.f32 %v5527_v11 }
 0xda2   :  { %7656 = vpow2.f32 %v5526_v12 }
 0xdab   :  { %v7655_v14 = vpop.eup %7654 }
 0xdac   :  { %v7657_v15 = vpop.eup %7656  ;;  %v1424_v16 = vadd.f32 1.0, %v7655_v14 }
 0xdad   :  { %v1423_v17 = vadd.f32 1.0, %v7657_v15 }
 0xdae   :  { %7658 = vrcp.f32 %v1424_v16 }
 0xdaf   :  { %7660 = vrcp.f32 %v1423_v17 }
 0xdb8   :  { %v7659_v18 = vpop.eup %7658 }
 0xdb9   :  { %v7661_v19 = vpop.eup %7660  ;;  %v1430_v20 = vmul.f32 2.0, %v7659_v18  ;;  %v1434_v29 = vmul.f32 %v7659_v18, %v1312_v59 }
 0xdba   :  { %v1429_v21 = vmul.f32 2.0, %v7661_v19  ;;  %v1433_v32 = vmul.f32 %v7661_v19, %v1311_v61 }
 0xdbb   :  { %v5529_v22 = vadd.f32 -1.0, %v1430_v20 }
 0xdbc   :  { %v5528_v23 = vadd.f32 -1.0, %v1429_v21 }
 0xdbd   :  { %1439 = vrot.lane.b32.xlu1 %v5529_v22, %s8263_s8 }
 0xdbe   :  { %1437 = vrot.lane.b32.xlu0 %v5528_v23, %s8263_s8 }
 0xe2f   :  { %v1440_v24 = vpop.permute.xlu1 %1439 }
 0xe30   :  { %v1444_v25 = vmul.f32 %v7659_v18, %v1440_v24  ;;  %v1438_v26 = vpop.permute.xlu0 %1437 }
 0xe31   :  { %v1443_v27 = vmul.f32 %v7661_v19, %v1438_v26 }
 0xe32   :  { %1449 = vrot.lane.b32.xlu1 %v1444_v25, %s8262_s6 }
 0xe33   :  { %1447 = vrot.lane.b32.xlu0 %v1443_v27, %s8262_s6 }
 0xea4   :  { %v1450_v31 = vpop.permute.xlu1 %1449 }
 0xea5   :  { %v1454_v33 = vadd.f32 %v1450_v31, %v1434_v29  ;;  %v1448_v34 = vpop.permute.xlu0 %1447 }
 0xea6   :  { %v1453_v35 = vadd.f32 %v1448_v34, %v1433_v32 }
 0xea7   :  { %7662 = vtanh.f32 %v1454_v33 }
 0xea8   :  { %7664 = vtanh.f32 %v1453_v35 }
 0xeb1   :  { %v7663_v36 = vpop.eup %7662 }
 0xeb2   :  { %v7665_v37 = vpop.eup %7664  ;;  %1461 = vrot.lane.b32.xlu1 %v7663_v36, %s8263_s8 }
 0xeb3   :  { %1459 = vrot.lane.b32.xlu0 %v7665_v37, %s8263_s8 }
 0xf24   :  { %v1462_v38 = vpop.permute.xlu1 %1461 }
 0xf25   :  { %v1466_v39 = vmul.f32 %v7659_v18, %v1462_v38  ;;  %v1460_v40 = vpop.permute.xlu0 %1459 }
 0xf26   :  { %v1465_v41 = vmul.f32 %v7661_v19, %v1460_v40 }
 0xf27   :  { %1471 = vrot.lane.b32.xlu1 %v1466_v39, %s8262_s6 }
 0xf28   :  { %1469 = vrot.lane.b32.xlu0 %v1465_v41, %s8262_s6 }
 0xf99   :  { %v1472_v42 = vpop.permute.xlu1 %1471 }
 0xf9a   :  { %1476 = vst.msk [vmem:[#allocation3 + $0x30] sm:$0xff] %vm744_vm1, %v1472_v42  ;;  %v1470_v43 = vpop.permute.xlu0 %1469 }
 0xf9b   :  { %1475 = vst.msk [vmem:[#allocation3 + $0x8] sm:$0xff] %vm744_vm1, %v1470_v43  ;;  %6359 = vmatprep.mubr.msk.f32.mxu0 %vm744_vm1, %v1470_v43 }
 0xf9c   :  { %6360 = vmatmul.mubr.msk.f32.vlgmr.msra.gmra.mrb[10].mxu0 %vm744_vm1, %v1472_v42 }
 0xf9d   :  { %6905 = vmatpush3.bf16.msra.mxu0 %v8583_v6 }
 0xf9e   :  { %6907 = vmatprep.subr.bf16.mxu0 %v8603_v13 }
 0xfa1   :  { %6909 = vmatpush3.bf16.msra.mxu0 %v8603_v13 }
 0xfa2   :  { %6911 = vmatprep.subr.bf16.mxu0 %v8583_v6 }
0x106f   :  { %v6361_v44 = vpop.f32.mrb[10].mxu0 }
0x1070   :  { %v7511_v45 = vadd.f32 %v6361_v44, %v8762_v51  ;;  %v1549_v46 = vpop.f32.mrb[11].mxu0 }
0x1071   :  { %v7512_v47 = vadd.f32 %v8762_v51, %v1549_v46 }
0x1072   :  { %v5533_v48 = vmul.f32 -1.442695, %v7511_v45 }
0x1073   :  { %v5532_v49 = vmul.f32 -1.442695, %v7512_v47 }
0x1074   :  { %7666 = vpow2.f32 %v5533_v48 }
0x1075   :  { %7668 = vpow2.f32 %v5532_v49 }
0x107e   :  { %v7667_v50 = vpop.eup %7666 }
0x107f   :  { %v7669_v52 = vpop.eup %7668  ;;  %v1567_v53 = vadd.f32 1.0, %v7667_v50 }
0x1080   :  { %v1566_v54 = vadd.f32 1.0, %v7669_v52 }
0x1081   :  { %7670 = vrcp.f32 %v1567_v53 }
0x1082   :  { %7672 = vrcp.f32 %v1566_v54 }
0x108b   :  { %v7671_v55 = vpop.eup %7670 }
0x108c   :  { %v7673_v57 = vpop.eup %7672  ;;  %v1573_v59 = vmul.f32 2.0, %v7671_v55  ;;  %v1577_v5 = vmul.f32 %v7671_v55, %v1454_v33 }
0x108d   :  { %v1572_v60 = vmul.f32 2.0, %v7673_v57  ;;  %v1576_v8 = vmul.f32 %v7673_v57, %v1453_v35 }
0x108e   :  { %v5535_v61 = vadd.f32 -1.0, %v1573_v59 }
0x108f   :  { %v5534_v62 = vadd.f32 -1.0, %v1572_v60 }
0x1090   :  { %1582 = vrot.lane.b32.xlu1 %v5535_v61, %s8263_s8 }
0x1091   :  { %1580 = vrot.lane.b32.xlu0 %v5534_v62, %s8263_s8 }
0x1102   :  { %v1583_v63 = vpop.permute.xlu1 %1582 }
0x1103   :  { %v1587_v0 = vmul.f32 %v7671_v55, %v1583_v63  ;;  %v1581_v2 = vpop.permute.xlu0 %1580 }
0x1104   :  { %v1586_v4 = vmul.f32 %v7673_v57, %v1581_v2 }
0x1105   :  { %1592 = vrot.lane.b32.xlu1 %v1587_v0, %s8262_s6 }
0x1106   :  { %1590 = vrot.lane.b32.xlu0 %v1586_v4, %s8262_s6 }
0x1177   :  { %v1593_v7 = vpop.permute.xlu1 %1592 }
0x1178   :  { %v1597_v9 = vadd.f32 %v1593_v7, %v1577_v5  ;;  %v1591_v10 = vpop.permute.xlu0 %1590 }
0x1179   :  { %v1596_v11 = vadd.f32 %v1591_v10, %v1576_v8 }
0x117a   :  { %7674 = vtanh.f32 %v1597_v9 }
0x117b   :  { %7676 = vtanh.f32 %v1596_v11 }
0x1184   :  { %v7675_v12 = vpop.eup %7674 }
0x1185   :  { %v7677_v14 = vpop.eup %7676  ;;  %1604 = vrot.lane.b32.xlu1 %v7675_v12, %s8263_s8 }
0x1186   :  { %1602 = vrot.lane.b32.xlu0 %v7677_v14, %s8263_s8 }
0x11f7   :  { %v1605_v15 = vpop.permute.xlu1 %1604 }
0x11f8   :  { %v8874_v16 = vmul.f32 %v7671_v55, %v1605_v15  ;;  %v1603_v17 = vpop.permute.xlu0 %1602 }
0x11f9   :  { %v8876_v18 = vmul.f32 %v7673_v57, %v1603_v17 }
0x11fa   :  { %1624 = vrot.lane.b32.xlu1 %v8874_v16, %s8262_s6 }
0x11fb   :  { %1622 = vrot.lane.b32.xlu0 %v8876_v18, %s8262_s6 }
0x126c   :  { %v1625_v20 = vpop.permute.xlu1 %1624 }
0x126d   :  { %v1623_v19 = vpop.permute.xlu0 %1622 }
0x126e   :  { %6370 = vmatprep.mubr.msk.f32.mxu0 %vm744_vm1, %v1623_v19 }
0x126f   :  { %6371 = vmatmul.mubr.msk.f32.vlgmr.msra.gmra.mrb[12].mxu0 %vm744_vm1, %v1625_v20 }
0x1270   :  { %6913 = vmatpush3.bf16.msra.mxu0 %v8583_v6 }
0x1271   :  { %6915 = vmatprep.subr.bf16.mxu0 %v8603_v13 }
0x1274   :  { %6917 = vmatpush3.bf16.msra.mxu0 %v8603_v13 }
0x1275   :  { %6919 = vmatprep.subr.bf16.mxu0 %v8583_v6 }
0x1342   :  { %v6372_v21 = vpop.f32.mrb[12].mxu0 }
0x1343   :  { %v7513_v22 = vadd.f32 %v6372_v21, %v8762_v51  ;;  %v1696_v23 = vpop.f32.mrb[13].mxu0 }
0x1344   :  { %v7514_v24 = vadd.f32 %v8762_v51, %v1696_v23 }
0x1345   :  { %v5539_v25 = vmul.f32 -1.442695, %v7513_v22 }
0x1346   :  { %v5538_v26 = vmul.f32 -1.442695, %v7514_v24 }
0x1347   :  { %7678 = vpow2.f32 %v5539_v25 }
0x1348   :  { %7680 = vpow2.f32 %v5538_v26 }
0x1351   :  { %v7679_v27 = vpop.eup %7678 }
0x1352   :  { %v7681_v29 = vpop.eup %7680  ;;  %v1714_v31 = vadd.f32 1.0, %v7679_v27 }
0x1353   :  { %v1713_v32 = vadd.f32 1.0, %v7681_v29 }
0x1354   :  { %7682 = vrcp.f32 %v1714_v31 }
0x1355   :  { %7684 = vrcp.f32 %v1713_v32 }
0x135e   :  { %v7683_v33 = vpop.eup %7682 }
0x135f   :  { %v7685_v34 = vpop.eup %7684  ;;  %v1720_v35 = vmul.f32 2.0, %v7683_v33  ;;  %v1724_v43 = vmul.f32 %v7683_v33, %v1597_v9 }
0x1360   :  { %v1719_v36 = vmul.f32 2.0, %v7685_v34  ;;  %v1723_v45 = vmul.f32 %v7685_v34, %v1596_v11 }
0x1361   :  { %v5541_v37 = vadd.f32 -1.0, %v1720_v35 }
0x1362   :  { %v5540_v38 = vadd.f32 -1.0, %v1719_v36 }
0x1363   :  { %1729 = vrot.lane.b32.xlu1 %v5541_v37, %s8263_s8 }
0x1364   :  { %1727 = vrot.lane.b32.xlu0 %v5540_v38, %s8263_s8 }
0x13d5   :  { %v1730_v39 = vpop.permute.xlu1 %1729 }
0x13d6   :  { %v1734_v40 = vmul.f32 %v7683_v33, %v1730_v39  ;;  %v1728_v41 = vpop.permute.xlu0 %1727 }
0x13d7   :  { %v1733_v42 = vmul.f32 %v7685_v34, %v1728_v41 }
0x13d8   :  { %1739 = vrot.lane.b32.xlu1 %v1734_v40, %s8262_s6 }
0x13d9   :  { %1737 = vrot.lane.b32.xlu0 %v1733_v42, %s8262_s6 }
0x144a   :  { %v1740_v44 = vpop.permute.xlu1 %1739 }
0x144b   :  { %v1744_v46 = vadd.f32 %v1740_v44, %v1724_v43  ;;  %v1738_v47 = vpop.permute.xlu0 %1737 }
0x144c   :  { %v1743_v48 = vadd.f32 %v1738_v47, %v1723_v45 }
0x144d   :  { %7686 = vtanh.f32 %v1744_v46 }
0x144e   :  { %7688 = vtanh.f32 %v1743_v48 }
0x1457   :  { %v7687_v49 = vpop.eup %7686 }
0x1458   :  { %v7689_v50 = vpop.eup %7688  ;;  %1751 = vrot.lane.b32.xlu1 %v7687_v49, %s8263_s8 }
0x1459   :  { %1749 = vrot.lane.b32.xlu0 %v7689_v50, %s8263_s8 }
0x14ca   :  { %v1752_v52 = vpop.permute.xlu1 %1751 }
0x14cb   :  { %v8896_v53 = vmul.f32 %v7683_v33, %v1752_v52  ;;  %v1750_v54 = vpop.permute.xlu0 %1749 }
0x14cc   :  { %v8898_v55 = vmul.f32 %v7685_v34, %v1750_v54 }
0x14cd   :  { %1771 = vrot.lane.b32.xlu1 %v8896_v53, %s8262_s6 }
0x14ce   :  { %1769 = vrot.lane.b32.xlu0 %v8898_v55, %s8262_s6 }
0x153f   :  { %v1772_v59 = vpop.permute.xlu1 %1771 }
0x1540   :  { %v1770_v57 = vpop.permute.xlu0 %1769 }
0x1541   :  { %6381 = vmatprep.mubr.msk.f32.mxu0 %vm744_vm1, %v1770_v57 }
0x1542   :  { %6382 = vmatmul.mubr.msk.f32.vlgmr.msra.gmra.mrb[14].mxu0 %vm744_vm1, %v1772_v59 }
0x1543   :  { %6921 = vmatpush3.bf16.msra.mxu0 %v8583_v6 }
0x1544   :  { %6923 = vmatprep.subr.bf16.mxu0 %v8603_v13 }
0x1547   :  { %6925 = vmatpush3.bf16.msra.mxu0 %v8603_v13 }
0x1548   :  { %6927 = vmatprep.subr.bf16.mxu0 %v8583_v6 }
0x1615   :  { %v6383_v60 = vpop.f32.mrb[14].mxu0 }
0x1616   :  { %v7515_v61 = vadd.f32 %v6383_v60, %v8762_v51  ;;  %v1843_v62 = vpop.f32.mrb[15].mxu0 }
0x1617   :  { %v7516_v63 = vadd.f32 %v8762_v51, %v1843_v62 }
0x1618   :  { %v5545_v0 = vmul.f32 -1.442695, %v7515_v61 }
0x1619   :  { %v5544_v2 = vmul.f32 -1.442695, %v7516_v63 }
0x161a   :  { %7690 = vpow2.f32 %v5545_v0 }
0x161b   :  { %7692 = vpow2.f32 %v5544_v2 }
0x1624   :  { %v7691_v4 = vpop.eup %7690 }
0x1625   :  { %v7693_v5 = vpop.eup %7692  ;;  %v1861_v7 = vadd.f32 1.0, %v7691_v4 }
0x1626   :  { %v1860_v8 = vadd.f32 1.0, %v7693_v5 }
0x1627   :  { %7694 = vrcp.f32 %v1861_v7 }
0x1628   :  { %7696 = vrcp.f32 %v1860_v8 }
0x1631   :  { %v7695_v9 = vpop.eup %7694 }
0x1632   :  { %v7697_v10 = vpop.eup %7696  ;;  %v1867_v11 = vmul.f32 2.0, %v7695_v9  ;;  %v1871_v22 = vmul.f32 %v7695_v9, %v1744_v46 }
0x1633   :  { %v1866_v12 = vmul.f32 2.0, %v7697_v10  ;;  %v1870_v24 = vmul.f32 %v7697_v10, %v1743_v48 }
0x1634   :  { %v5547_v14 = vadd.f32 -1.0, %v1867_v11 }
0x1635   :  { %v5546_v15 = vadd.f32 -1.0, %v1866_v12 }
0x1636   :  { %1876 = vrot.lane.b32.xlu1 %v5547_v14, %s8263_s8 }
0x1637   :  { %1874 = vrot.lane.b32.xlu0 %v5546_v15, %s8263_s8 }
0x16a8   :  { %v1877_v17 = vpop.permute.xlu1 %1876 }
0x16a9   :  { %v1881_v19 = vmul.f32 %v7695_v9, %v1877_v17  ;;  %v1875_v20 = vpop.permute.xlu0 %1874 }
0x16aa   :  { %v1880_v21 = vmul.f32 %v7697_v10, %v1875_v20 }
0x16ab   :  { %1886 = vrot.lane.b32.xlu1 %v1881_v19, %s8262_s6 }
0x16ac   :  { %1884 = vrot.lane.b32.xlu0 %v1880_v21, %s8262_s6 }
0x171d   :  { %v1887_v23 = vpop.permute.xlu1 %1886 }
0x171e   :  { %v1891_v25 = vadd.f32 %v1887_v23, %v1871_v22  ;;  %v1885_v26 = vpop.permute.xlu0 %1884 }
0x171f   :  { %v1890_v27 = vadd.f32 %v1885_v26, %v1870_v24 }
0x1720   :  { %7698 = vtanh.f32 %v1891_v25 }
0x1721   :  { %7700 = vtanh.f32 %v1890_v27 }
0x172a   :  { %v7699_v29 = vpop.eup %7698 }
0x172b   :  { %v7701_v31 = vpop.eup %7700  ;;  %1898 = vrot.lane.b32.xlu1 %v7699_v29, %s8263_s8 }
0x172c   :  { %1896 = vrot.lane.b32.xlu0 %v7701_v31, %s8263_s8 }
0x179d   :  { %v1899_v32 = vpop.permute.xlu1 %1898 }
0x179e   :  { %v8918_v33 = vmul.f32 %v7695_v9, %v1899_v32  ;;  %v1897_v34 = vpop.permute.xlu0 %1896 }
0x179f   :  { %v8920_v35 = vmul.f32 %v7697_v10, %v1897_v34 }
0x17a0   :  { %1912 = vrot.lane.b32.xlu1 %v8918_v33, %s8262_s6 }
0x17a1   :  { %1910 = vrot.lane.b32.xlu0 %v8920_v35, %s8262_s6 }
0x1812   :  { %v1913_v37 = vpop.permute.xlu1 %1912 }
0x1813   :  { %v1911_v36 = vpop.permute.xlu0 %1910 }
0x1814   :  { %6392 = vmatprep.mubr.msk.f32.mxu0 %vm744_vm1, %v1911_v36 }
0x1815   :  { %6393 = vmatmul.mubr.msk.f32.vlgmr.msra.gmra.mrb[16].mxu0 %vm744_vm1, %v1913_v37 }
0x1816   :  { %6929 = vmatpush3.bf16.msra.mxu0 %v8583_v6 }
0x1817   :  { %6931 = vmatprep.subr.bf16.mxu0 %v8603_v13 }
0x181a   :  { %6933 = vmatpush3.bf16.msra.mxu0 %v8603_v13 }
0x181b   :  { %6935 = vmatprep.subr.bf16.mxu0 %v8583_v6 }
0x18e8   :  { %v6394_v38 = vpop.f32.mrb[16].mxu0 }
0x18e9   :  { %v7517_v39 = vadd.f32 %v6394_v38, %v8762_v51  ;;  %v1984_v40 = vpop.f32.mrb[17].mxu0 }
0x18ea   :  { %v7518_v41 = vadd.f32 %v8762_v51, %v1984_v40 }
0x18eb   :  { %v5551_v42 = vmul.f32 -1.442695, %v7517_v39 }
0x18ec   :  { %v5550_v43 = vmul.f32 -1.442695, %v7518_v41 }
0x18ed   :  { %7702 = vpow2.f32 %v5551_v42 }
0x18ee   :  { %7704 = vpow2.f32 %v5550_v43 }
0x18f7   :  { %v7703_v44 = vpop.eup %7702 }
0x18f8   :  { %v7705_v45 = vpop.eup %7704  ;;  %v2002_v46 = vadd.f32 1.0, %v7703_v44 }
0x18f9   :  { %v2001_v47 = vadd.f32 1.0, %v7705_v45 }
0x18fa   :  { %7706 = vrcp.f32 %v2002_v46 }
0x18fb   :  { %7708 = vrcp.f32 %v2001_v47 }
0x1904   :  { %v7707_v48 = vpop.eup %7706 }
0x1905   :  { %v7709_v49 = vpop.eup %7708  ;;  %v2008_v50 = vmul.f32 2.0, %v7707_v48  ;;  %v2012_v63 = vmul.f32 %v7707_v48, %v1891_v25 }
0x1906   :  { %v2007_v52 = vmul.f32 2.0, %v7709_v49  ;;  %v2011_v2 = vmul.f32 %v7709_v49, %v1890_v27 }
0x1907   :  { %v5553_v54 = vadd.f32 -1.0, %v2008_v50 }
0x1908   :  { %v5552_v57 = vadd.f32 -1.0, %v2007_v52 }
0x1909   :  { %2017 = vrot.lane.b32.xlu1 %v5553_v54, %s8263_s8 }
0x190a   :  { %2015 = vrot.lane.b32.xlu0 %v5552_v57, %s8263_s8 }
0x197b   :  { %v2018_v59 = vpop.permute.xlu1 %2017 }
0x197c   :  { %v2022_v60 = vmul.f32 %v7707_v48, %v2018_v59  ;;  %v2016_v61 = vpop.permute.xlu0 %2015 }
0x197d   :  { %v2021_v62 = vmul.f32 %v7709_v49, %v2016_v61 }
0x197e   :  { %2027 = vrot.lane.b32.xlu1 %v2022_v60, %s8262_s6 }
0x197f   :  { %2025 = vrot.lane.b32.xlu0 %v2021_v62, %s8262_s6  ;;  %v8972_v62 = vld [vmem:[#allocation11] ss:$0 sm:$0xff] }
0x19f0   :  { %v2028_v0 = vpop.permute.xlu1 %2027 }
0x19f1   :  { %v2032_v4 = vadd.f32 %v2028_v0, %v2012_v63  ;;  %v2026_v5 = vpop.permute.xlu0 %2025 }
0x19f2   :  { %v2031_v7 = vadd.f32 %v2026_v5, %v2011_v2 }
0x19f3   :  { %7710 = vtanh.f32 %v2032_v4 }
0x19f4   :  { %7712 = vtanh.f32 %v2031_v7 }
0x19fd   :  { %v7711_v8 = vpop.eup %7710 }
0x19fe   :  { %v7713_v9 = vpop.eup %7712  ;;  %2039 = vrot.lane.b32.xlu1 %v7711_v8, %s8263_s8 }
0x19ff   :  { %2037 = vrot.lane.b32.xlu0 %v7713_v9, %s8263_s8 }
0x1a70   :  { %v2040_v10 = vpop.permute.xlu1 %2039 }
0x1a71   :  { %v2044_v11 = vmul.f32 %v7707_v48, %v2040_v10  ;;  %v2038_v12 = vpop.permute.xlu0 %2037 }
0x1a72   :  { %v2043_v14 = vmul.f32 %v7709_v49, %v2038_v12 }
0x1a73   :  { %2049 = vrot.lane.b32.xlu1 %v2044_v11, %s8262_s6 }
0x1a74   :  { %2047 = vrot.lane.b32.xlu0 %v2043_v14, %s8262_s6 }
0x1ae5   :  { %v2050_v15 = vpop.permute.xlu1 %2049 }
0x1ae6   :  { %2054 = vst.msk [vmem:[#allocation3 + $0x38] sm:$0xff] %vm744_vm1, %v2050_v15  ;;  %v2048_v17 = vpop.permute.xlu0 %2047 }
0x1ae7   :  { %2053 = vst.msk [vmem:[#allocation3 + $0x10] sm:$0xff] %vm744_vm1, %v2048_v17  ;;  %6403 = vmatprep.mubr.msk.f32.mxu0 %vm744_vm1, %v2048_v17 }
0x1ae8   :  { %6404 = vmatmul.mubr.msk.f32.vlgmr.msra.gmra.mrb[18].mxu0 %vm744_vm1, %v2050_v15 }
0x1ae9   :  { %6937 = vmatpush3.bf16.msra.mxu0 %v8583_v6 }
0x1aea   :  { %6939 = vmatprep.subr.bf16.mxu0 %v8603_v13 }
0x1aed   :  { %6941 = vmatpush3.bf16.msra.mxu0 %v8603_v13 }
0x1aee   :  { %6943 = vmatprep.subr.bf16.mxu0 %v8583_v6 }
0x1bbb   :  { %v6405_v19 = vpop.f32.mrb[18].mxu0 }
0x1bbc   :  { %v7519_v20 = vadd.f32 %v6405_v19, %v8762_v51  ;;  %v2127_v21 = vpop.f32.mrb[19].mxu0 }
0x1bbd   :  { %v7520_v22 = vadd.f32 %v8762_v51, %v2127_v21 }
0x1bbe   :  { %v5557_v23 = vmul.f32 -1.442695, %v7519_v20 }
0x1bbf   :  { %v5556_v24 = vmul.f32 -1.442695, %v7520_v22 }
0x1bc0   :  { %7714 = vpow2.f32 %v5557_v23 }
0x1bc1   :  { %7716 = vpow2.f32 %v5556_v24 }
0x1bca   :  { %v7715_v25 = vpop.eup %7714 }
0x1bcb   :  { %v7717_v26 = vpop.eup %7716  ;;  %v2145_v27 = vadd.f32 1.0, %v7715_v25 }
0x1bcc   :  { %v2144_v29 = vadd.f32 1.0, %v7717_v26 }
0x1bcd   :  { %7718 = vrcp.f32 %v2145_v27 }
0x1bce   :  { %7720 = vrcp.f32 %v2144_v29 }
0x1bd7   :  { %v7719_v31 = vpop.eup %7718 }
0x1bd8   :  { %v7721_v32 = vpop.eup %7720  ;;  %v2151_v34 = vmul.f32 2.0, %v7719_v31  ;;  %v2155_v42 = vmul.f32 %v7719_v31, %v2032_v4 }
0x1bd9   :  { %v2150_v36 = vmul.f32 2.0, %v7721_v32  ;;  %v2154_v44 = vmul.f32 %v7721_v32, %v2031_v7 }
0x1bda   :  { %v5559_v37 = vadd.f32 -1.0, %v2151_v34 }
0x1bdb   :  { %v5558_v38 = vadd.f32 -1.0, %v2150_v36 }
0x1bdc   :  { %2160 = vrot.lane.b32.xlu1 %v5559_v37, %s8263_s8 }
0x1bdd   :  { %2158 = vrot.lane.b32.xlu0 %v5558_v38, %s8263_s8 }
0x1c4e   :  { %v2161_v51 = vpop.permute.xlu1 %2160 }
0x1c4f   :  { %v2165_v39 = vmul.f32 %v7719_v31, %v2161_v51  ;;  %v2159_v40 = vpop.permute.xlu0 %2158 }
0x1c50   :  { %v2164_v41 = vmul.f32 %v7721_v32, %v2159_v40 }
0x1c51   :  { %2170 = vrot.lane.b32.xlu1 %v2165_v39, %s8262_s6 }
0x1c52   :  { %2168 = vrot.lane.b32.xlu0 %v2164_v41, %s8262_s6 }
0x1cc3   :  { %v2171_v43 = vpop.permute.xlu1 %2170 }
0x1cc4   :  { %v2175_v45 = vadd.f32 %v2171_v43, %v2155_v42  ;;  %v2169_v46 = vpop.permute.xlu0 %2168 }
0x1cc5   :  { %v2174_v47 = vadd.f32 %v2169_v46, %v2154_v44 }
0x1cc6   :  { %7722 = vtanh.f32 %v2175_v45 }
0x1cc7   :  { %7724 = vtanh.f32 %v2174_v47 }
0x1cd0   :  { %v7723_v48 = vpop.eup %7722 }
0x1cd1   :  { %v7725_v49 = vpop.eup %7724  ;;  %2182 = vrot.lane.b32.xlu1 %v7723_v48, %s8263_s8 }
0x1cd2   :  { %2180 = vrot.lane.b32.xlu0 %v7725_v49, %s8263_s8 }
0x1d43   :  { %v2183_v50 = vpop.permute.xlu1 %2182 }
0x1d44   :  { %v8958_v52 = vmul.f32 %v7719_v31, %v2183_v50  ;;  %v2181_v54 = vpop.permute.xlu0 %2180 }
0x1d45   :  { %v8960_v57 = vmul.f32 %v7721_v32, %v2181_v54 }
0x1d46   :  { %2202 = vrot.lane.b32.xlu1 %v8958_v52, %s8262_s6 }
0x1d47   :  { %2200 = vrot.lane.b32.xlu0 %v8960_v57, %s8262_s6 }
0x1db8   :  { %v2203_v60 = vpop.permute.xlu1 %2202 }
0x1db9   :  { %v2201_v59 = vpop.permute.xlu0 %2200 }
0x1dba   :  { %6414 = vmatprep.mubr.msk.f32.mxu0 %vm744_vm1, %v2201_v59 }
0x1dbb   :  { %6415 = vmatmul.mubr.msk.f32.vlgmr.msra.gmra.mrb[20].mxu0 %vm744_vm1, %v2203_v60 }
0x1dbc   :  { %6945 = vmatpush3.bf16.msra.mxu0 %v8583_v6 }
0x1dbd   :  { %6947 = vmatprep.subr.bf16.mxu0 %v8603_v13 }
0x1dc0   :  { %6949 = vmatpush3.bf16.msra.mxu0 %v8603_v13 }
0x1dc1   :  { %6951 = vmatprep.subr.bf16.mxu0 %v8583_v6 }
0x1e8e   :  { %v6416_v61 = vpop.f32.mrb[20].mxu0 }
0x1e8f   :  { %v7521_v63 = vadd.f32 %v8972_v62, %v6416_v61  ;;  %v2274_v0 = vpop.f32.mrb[21].mxu0 }
0x1e90   :  { %v7522_v2 = vadd.f32 %v8972_v62, %v2274_v0 }
0x1e91   :  { %v5563_v4 = vmul.f32 -1.442695, %v7521_v63 }
0x1e92   :  { %v5562_v5 = vmul.f32 -1.442695, %v7522_v2 }
0x1e93   :  { %7726 = vpow2.f32 %v5563_v4 }
0x1e94   :  { %7728 = vpow2.f32 %v5562_v5 }
0x1e9d   :  { %v7727_v7 = vpop.eup %7726 }
0x1e9e   :  { %v7729_v8 = vpop.eup %7728  ;;  %v2292_v9 = vadd.f32 1.0, %v7727_v7 }
0x1e9f   :  { %v2291_v10 = vadd.f32 1.0, %v7729_v8 }
0x1ea0   :  { %7730 = vrcp.f32 %v2292_v9 }
0x1ea1   :  { %7732 = vrcp.f32 %v2291_v10 }
0x1eaa   :  { %v7731_v11 = vpop.eup %7730 }
0x1eab   :  { %v7733_v12 = vpop.eup %7732  ;;  %v2298_v14 = vmul.f32 2.0, %v7731_v11  ;;  %v2302_v24 = vmul.f32 %v7731_v11, %v2175_v45 }
0x1eac   :  { %v2297_v15 = vmul.f32 2.0, %v7733_v12  ;;  %v2301_v26 = vmul.f32 %v7733_v12, %v2174_v47 }
0x1ead   :  { %v5565_v17 = vadd.f32 -1.0, %v2298_v14 }
0x1eae   :  { %v5564_v19 = vadd.f32 -1.0, %v2297_v15 }
0x1eaf   :  { %2307 = vrot.lane.b32.xlu1 %v5565_v17, %s8263_s8 }
0x1eb0   :  { %2305 = vrot.lane.b32.xlu0 %v5564_v19, %s8263_s8 }
0x1f21   :  { %v2308_v20 = vpop.permute.xlu1 %2307 }
0x1f22   :  { %v2312_v21 = vmul.f32 %v7731_v11, %v2308_v20  ;;  %v2306_v22 = vpop.permute.xlu0 %2305 }
0x1f23   :  { %v2311_v23 = vmul.f32 %v7733_v12, %v2306_v22 }
0x1f24   :  { %2317 = vrot.lane.b32.xlu1 %v2312_v21, %s8262_s6 }
0x1f25   :  { %2315 = vrot.lane.b32.xlu0 %v2311_v23, %s8262_s6 }
0x1f96   :  { %v2318_v25 = vpop.permute.xlu1 %2317 }
0x1f97   :  { %v2322_v27 = vadd.f32 %v2318_v25, %v2302_v24  ;;  %v2316_v29 = vpop.permute.xlu0 %2315 }
0x1f98   :  { %v2321_v31 = vadd.f32 %v2316_v29, %v2301_v26 }
0x1f99   :  { %7734 = vtanh.f32 %v2322_v27 }
0x1f9a   :  { %7736 = vtanh.f32 %v2321_v31 }
0x1fa3   :  { %v7735_v32 = vpop.eup %7734 }
0x1fa4   :  { %v7737_v34 = vpop.eup %7736  ;;  %2329 = vrot.lane.b32.xlu1 %v7735_v32, %s8263_s8 }
0x1fa5   :  { %2327 = vrot.lane.b32.xlu0 %v7737_v34, %s8263_s8 }
0x2016   :  { %v2330_v36 = vpop.permute.xlu1 %2329 }
0x2017   :  { %v8982_v37 = vmul.f32 %v7731_v11, %v2330_v36  ;;  %v2328_v38 = vpop.permute.xlu0 %2327 }
0x2018   :  { %v8984_v51 = vmul.f32 %v7733_v12, %v2328_v38 }
0x2019   :  { %2349 = vrot.lane.b32.xlu1 %v8982_v37, %s8262_s6 }
0x201a   :  { %2347 = vrot.lane.b32.xlu0 %v8984_v51, %s8262_s6 }
0x208b   :  { %v2350_v40 = vpop.permute.xlu1 %2349 }
0x208c   :  { %v2348_v39 = vpop.permute.xlu0 %2347 }
0x208d   :  { %6425 = vmatprep.mubr.msk.f32.mxu0 %vm744_vm1, %v2348_v39 }
0x208e   :  { %6426 = vmatmul.mubr.msk.f32.vlgmr.msra.gmra.mrb[22].mxu0 %vm744_vm1, %v2350_v40 }
0x208f   :  { %6953 = vmatpush3.bf16.msra.mxu0 %v8583_v6 }
0x2090   :  { %6955 = vmatprep.subr.bf16.mxu0 %v8603_v13 }
0x2093   :  { %6957 = vmatpush3.bf16.msra.mxu0 %v8603_v13 }
0x2094   :  { %6959 = vmatprep.subr.bf16.mxu0 %v8583_v6 }
0x2161   :  { %v6427_v41 = vpop.f32.mrb[22].mxu0 }
0x2162   :  { %v7523_v42 = vadd.f32 %v8972_v62, %v6427_v41  ;;  %v2421_v43 = vpop.f32.mrb[23].mxu0 }
0x2163   :  { %v7524_v44 = vadd.f32 %v8972_v62, %v2421_v43 }
0x2164   :  { %v5569_v45 = vmul.f32 -1.442695, %v7523_v42 }
0x2165   :  { %v5568_v46 = vmul.f32 -1.442695, %v7524_v44 }
0x2166   :  { %7738 = vpow2.f32 %v5569_v45 }
0x2167   :  { %7740 = vpow2.f32 %v5568_v46 }
0x2170   :  { %v7739_v47 = vpop.eup %7738 }
0x2171   :  { %v7741_v48 = vpop.eup %7740  ;;  %v2439_v49 = vadd.f32 1.0, %v7739_v47 }
0x2172   :  { %v2438_v50 = vadd.f32 1.0, %v7741_v48 }
0x2173   :  { %7742 = vrcp.f32 %v2439_v49 }
0x2174   :  { %7744 = vrcp.f32 %v2438_v50 }
0x217d   :  { %v7743_v54 = vpop.eup %7742 }
0x217e   :  { %v7745_v59 = vpop.eup %7744  ;;  %v2445_v60 = vmul.f32 2.0, %v7743_v54  ;;  %v2449_v8 = vmul.f32 %v7743_v54, %v2322_v27 }
0x217f   :  { %v2444_v61 = vmul.f32 2.0, %v7745_v59  ;;  %v2448_v10 = vmul.f32 %v7745_v59, %v2321_v31 }
0x2180   :  { %v5571_v63 = vadd.f32 -1.0, %v2445_v60 }
0x2181   :  { %v5570_v0 = vadd.f32 -1.0, %v2444_v61 }
0x2182   :  { %2454 = vrot.lane.b32.xlu1 %v5571_v63, %s8263_s8 }
0x2183   :  { %2452 = vrot.lane.b32.xlu0 %v5570_v0, %s8263_s8 }
0x21f4   :  { %v2455_v2 = vpop.permute.xlu1 %2454 }
0x21f5   :  { %v2459_v4 = vmul.f32 %v7743_v54, %v2455_v2  ;;  %v2453_v5 = vpop.permute.xlu0 %2452 }
0x21f6   :  { %v2458_v7 = vmul.f32 %v7745_v59, %v2453_v5 }
0x21f7   :  { %2464 = vrot.lane.b32.xlu1 %v2459_v4, %s8262_s6 }
0x21f8   :  { %2462 = vrot.lane.b32.xlu0 %v2458_v7, %s8262_s6 }
0x2269   :  { %v2465_v9 = vpop.permute.xlu1 %2464 }
0x226a   :  { %v2469_v11 = vadd.f32 %v2465_v9, %v2449_v8  ;;  %v2463_v12 = vpop.permute.xlu0 %2462 }
0x226b   :  { %v2468_v14 = vadd.f32 %v2463_v12, %v2448_v10 }
0x226c   :  { %7746 = vtanh.f32 %v2469_v11 }
0x226d   :  { %7748 = vtanh.f32 %v2468_v14 }
0x2276   :  { %v7747_v15 = vpop.eup %7746 }
0x2277   :  { %v7749_v17 = vpop.eup %7748  ;;  %2476 = vrot.lane.b32.xlu1 %v7747_v15, %s8263_s8 }
0x2278   :  { %2474 = vrot.lane.b32.xlu0 %v7749_v17, %s8263_s8 }
0x22e9   :  { %v2477_v19 = vpop.permute.xlu1 %2476 }
0x22ea   :  { %v9004_v20 = vmul.f32 %v7743_v54, %v2477_v19  ;;  %v2475_v21 = vpop.permute.xlu0 %2474 }
0x22eb   :  { %v9006_v22 = vmul.f32 %v7745_v59, %v2475_v21 }
0x22ec   :  { %2490 = vrot.lane.b32.xlu1 %v9004_v20, %s8262_s6 }
0x22ed   :  { %2488 = vrot.lane.b32.xlu0 %v9006_v22, %s8262_s6 }
0x235e   :  { %v2491_v24 = vpop.permute.xlu1 %2490 }
0x235f   :  { %v2489_v23 = vpop.permute.xlu0 %2488 }
0x2360   :  { %6436 = vmatprep.mubr.msk.f32.mxu0 %vm744_vm1, %v2489_v23 }
0x2361   :  { %6437 = vmatmul.mubr.msk.f32.vlgmr.msra.gmra.mrb[24].mxu0 %vm744_vm1, %v2491_v24 }
0x2362   :  { %6961 = vmatpush3.bf16.msra.mxu0 %v8583_v6 }
0x2363   :  { %6963 = vmatprep.subr.bf16.mxu0 %v8603_v13 }
0x2366   :  { %6965 = vmatpush3.bf16.msra.mxu0 %v8603_v13 }
0x2367   :  { %6967 = vmatprep.subr.bf16.mxu0 %v8583_v6 }
0x2434   :  { %v6438_v25 = vpop.f32.mrb[24].mxu0 }
0x2435   :  { %v7525_v26 = vadd.f32 %v8972_v62, %v6438_v25  ;;  %v2562_v27 = vpop.f32.mrb[25].mxu0 }
0x2436   :  { %v7526_v29 = vadd.f32 %v8972_v62, %v2562_v27 }
0x2437   :  { %v5575_v31 = vmul.f32 -1.442695, %v7525_v26 }
0x2438   :  { %v5574_v32 = vmul.f32 -1.442695, %v7526_v29 }
0x2439   :  { %7750 = vpow2.f32 %v5575_v31 }
0x243a   :  { %7752 = vpow2.f32 %v5574_v32 }
0x2443   :  { %v7751_v34 = vpop.eup %7750 }
0x2444   :  { %v7753_v36 = vpop.eup %7752  ;;  %v2580_v38 = vadd.f32 1.0, %v7751_v34 }
0x2445   :  { %v2579_v39 = vadd.f32 1.0, %v7753_v36 }
0x2446   :  { %7754 = vrcp.f32 %v2580_v38 }
0x2447   :  { %7756 = vrcp.f32 %v2579_v39 }
0x2450   :  { %v7755_v40 = vpop.eup %7754 }
0x2451   :  { %v7757_v41 = vpop.eup %7756  ;;  %v2586_v42 = vmul.f32 2.0, %v7755_v40  ;;  %v2590_v50 = vmul.f32 %v7755_v40, %v2469_v11 }
0x2452   :  { %v2585_v43 = vmul.f32 2.0, %v7757_v41  ;;  %v2589_v59 = vmul.f32 %v7757_v41, %v2468_v14 }
0x2453   :  { %v5577_v44 = vadd.f32 -1.0, %v2586_v42 }
0x2454   :  { %v5576_v45 = vadd.f32 -1.0, %v2585_v43 }
0x2455   :  { %2595 = vrot.lane.b32.xlu1 %v5577_v44, %s8263_s8 }
0x2456   :  { %2593 = vrot.lane.b32.xlu0 %v5576_v45, %s8263_s8 }
0x24c7   :  { %v2596_v46 = vpop.permute.xlu1 %2595 }
0x24c8   :  { %v2600_v47 = vmul.f32 %v7755_v40, %v2596_v46  ;;  %v2594_v48 = vpop.permute.xlu0 %2593 }
0x24c9   :  { %v2599_v49 = vmul.f32 %v7757_v41, %v2594_v48 }
0x24ca   :  { %2605 = vrot.lane.b32.xlu1 %v2600_v47, %s8262_s6 }
0x24cb   :  { %2603 = vrot.lane.b32.xlu0 %v2599_v49, %s8262_s6 }
0x253c   :  { %v2606_v54 = vpop.permute.xlu1 %2605 }
0x253d   :  { %v2610_v60 = vadd.f32 %v2606_v54, %v2590_v50  ;;  %v2604_v61 = vpop.permute.xlu0 %2603 }
0x253e   :  { %v2609_v63 = vadd.f32 %v2604_v61, %v2589_v59 }
0x253f   :  { %7758 = vtanh.f32 %v2610_v60 }
0x2540   :  { %7760 = vtanh.f32 %v2609_v63 }
0x2549   :  { %v7759_v0 = vpop.eup %7758 }
0x254a   :  { %v7761_v2 = vpop.eup %7760  ;;  %2617 = vrot.lane.b32.xlu1 %v7759_v0, %s8263_s8 }
0x254b   :  { %2615 = vrot.lane.b32.xlu0 %v7761_v2, %s8263_s8 }
0x25bc   :  { %v2618_v4 = vpop.permute.xlu1 %2617 }
0x25bd   :  { %v2622_v5 = vmul.f32 %v7755_v40, %v2618_v4  ;;  %v2616_v7 = vpop.permute.xlu0 %2615 }
0x25be   :  { %v2621_v8 = vmul.f32 %v7757_v41, %v2616_v7 }
0x25bf   :  { %2627 = vrot.lane.b32.xlu1 %v2622_v5, %s8262_s6 }
0x25c0   :  { %2625 = vrot.lane.b32.xlu0 %v2621_v8, %s8262_s6 }
0x2631   :  { %v2628_v9 = vpop.permute.xlu1 %2627 }
0x2632   :  { %2632 = vst.msk [vmem:[#allocation3 + $0x40] sm:$0xff] %vm744_vm1, %v2628_v9  ;;  %v2626_v10 = vpop.permute.xlu0 %2625 }
0x2633   :  { %2631 = vst.msk [vmem:[#allocation3 + $0x18] sm:$0xff] %vm744_vm1, %v2626_v10  ;;  %6447 = vmatprep.mubr.msk.f32.mxu0 %vm744_vm1, %v2626_v10 }
0x2634   :  { %6448 = vmatmul.mubr.msk.f32.vlgmr.msra.gmra.mrb[26].mxu0 %vm744_vm1, %v2628_v9 }
0x2635   :  { %6969 = vmatpush3.bf16.msra.mxu0 %v8583_v6 }
0x2636   :  { %6971 = vmatprep.subr.bf16.mxu0 %v8603_v13 }
0x2639   :  { %6973 = vmatpush3.bf16.msra.mxu0 %v8603_v13 }
0x263a   :  { %6975 = vmatprep.subr.bf16.mxu0 %v8583_v6 }
0x2707   :  { %v6449_v11 = vpop.f32.mrb[26].mxu0 }
0x2708   :  { %v7527_v12 = vadd.f32 %v8972_v62, %v6449_v11  ;;  %v2705_v14 = vpop.f32.mrb[27].mxu0 }
0x2709   :  { %v7528_v15 = vadd.f32 %v8972_v62, %v2705_v14 }
0x270a   :  { %v5581_v17 = vmul.f32 -1.442695, %v7527_v12 }
0x270b   :  { %v5580_v19 = vmul.f32 -1.442695, %v7528_v15 }
0x270c   :  { %7762 = vpow2.f32 %v5581_v17 }
0x270d   :  { %7764 = vpow2.f32 %v5580_v19 }
0x2716   :  { %v7763_v21 = vpop.eup %7762 }
0x2717   :  { %v7765_v23 = vpop.eup %7764  ;;  %v2723_v24 = vadd.f32 1.0, %v7763_v21 }
0x2718   :  { %v2722_v25 = vadd.f32 1.0, %v7765_v23 }
0x2719   :  { %7766 = vrcp.f32 %v2723_v24 }
0x271a   :  { %7768 = vrcp.f32 %v2722_v25 }
0x2723   :  { %v7767_v26 = vpop.eup %7766 }
0x2724   :  { %v7769_v27 = vpop.eup %7768  ;;  %v2729_v29 = vmul.f32 2.0, %v7767_v26  ;;  %v2733_v41 = vmul.f32 %v7767_v26, %v2610_v60 }
0x2725   :  { %v2728_v31 = vmul.f32 2.0, %v7769_v27  ;;  %v2732_v43 = vmul.f32 %v7769_v27, %v2609_v63 }
0x2726   :  { %v5583_v32 = vadd.f32 -1.0, %v2729_v29 }
0x2727   :  { %v5582_v34 = vadd.f32 -1.0, %v2728_v31 }
0x2728   :  { %2738 = vrot.lane.b32.xlu1 %v5583_v32, %s8263_s8 }
0x2729   :  { %2736 = vrot.lane.b32.xlu0 %v5582_v34, %s8263_s8 }
0x279a   :  { %v2739_v36 = vpop.permute.xlu1 %2738 }
0x279b   :  { %v2743_v38 = vmul.f32 %v7767_v26, %v2739_v36  ;;  %v2737_v39 = vpop.permute.xlu0 %2736 }
0x279c   :  { %v2742_v40 = vmul.f32 %v7769_v27, %v2737_v39 }
0x279d   :  { %2748 = vrot.lane.b32.xlu1 %v2743_v38, %s8262_s6 }
0x279e   :  { %2746 = vrot.lane.b32.xlu0 %v2742_v40, %s8262_s6 }
0x280f   :  { %v2749_v42 = vpop.permute.xlu1 %2748 }
0x2810   :  { %v2753_v44 = vadd.f32 %v2749_v42, %v2733_v41  ;;  %v2747_v45 = vpop.permute.xlu0 %2746 }
0x2811   :  { %v2752_v46 = vadd.f32 %v2747_v45, %v2732_v43 }
0x2812   :  { %7770 = vtanh.f32 %v2753_v44 }
0x2813   :  { %7772 = vtanh.f32 %v2752_v46 }
0x281c   :  { %v7771_v47 = vpop.eup %7770 }
0x281d   :  { %v7773_v48 = vpop.eup %7772  ;;  %2760 = vrot.lane.b32.xlu1 %v7771_v47, %s8263_s8 }
0x281e   :  { %2758 = vrot.lane.b32.xlu0 %v7773_v48, %s8263_s8 }
0x288f   :  { %v2761_v49 = vpop.permute.xlu1 %2760 }
0x2890   :  { %v9044_v50 = vmul.f32 %v7767_v26, %v2761_v49  ;;  %v2759_v54 = vpop.permute.xlu0 %2758 }
0x2891   :  { %v9046_v59 = vmul.f32 %v7769_v27, %v2759_v54 }
0x2892   :  { %2780 = vrot.lane.b32.xlu1 %v9044_v50, %s8262_s6 }
0x2893   :  { %2778 = vrot.lane.b32.xlu0 %v9046_v59, %s8262_s6 }
0x2904   :  { %v2781_v61 = vpop.permute.xlu1 %2780 }
0x2905   :  { %v2779_v60 = vpop.permute.xlu0 %2778 }
0x2906   :  { %6458 = vmatprep.mubr.msk.f32.mxu0 %vm744_vm1, %v2779_v60 }
0x2907   :  { %6459 = vmatmul.mubr.msk.f32.vlgmr.msra.gmra.mrb[28].mxu0 %vm744_vm1, %v2781_v61 }
0x2908   :  { %6977 = vmatpush3.bf16.msra.mxu0 %v8583_v6 }
0x2909   :  { %6979 = vmatprep.subr.bf16.mxu0 %v8603_v13 }
0x290c   :  { %6981 = vmatpush3.bf16.msra.mxu0 %v8603_v13 }
0x290d   :  { %6983 = vmatprep.subr.bf16.mxu0 %v8583_v6 }
0x29da   :  { %v6460_v63 = vpop.f32.mrb[28].mxu0 }
0x29db   :  { %v7529_v0 = vadd.f32 %v8972_v62, %v6460_v63  ;;  %v2852_v2 = vpop.f32.mrb[29].mxu0 }
0x29dc   :  { %v7530_v4 = vadd.f32 %v8972_v62, %v2852_v2 }
0x29dd   :  { %v5587_v5 = vmul.f32 -1.442695, %v7529_v0 }
0x29de   :  { %v5586_v7 = vmul.f32 -1.442695, %v7530_v4 }
0x29df   :  { %7774 = vpow2.f32 %v5587_v5 }
0x29e0   :  { %7776 = vpow2.f32 %v5586_v7 }
0x29e9   :  { %v7775_v8 = vpop.eup %7774 }
0x29ea   :  { %v7777_v9 = vpop.eup %7776  ;;  %v2870_v10 = vadd.f32 1.0, %v7775_v8 }
0x29eb   :  { %v2869_v11 = vadd.f32 1.0, %v7777_v9 }
0x29ec   :  { %7778 = vrcp.f32 %v2870_v10 }
0x29ed   :  { %7780 = vrcp.f32 %v2869_v11 }
0x29f6   :  { %v7779_v12 = vpop.eup %7778 }
0x29f7   :  { %v7781_v14 = vpop.eup %7780  ;;  %v2876_v15 = vmul.f32 2.0, %v7779_v12  ;;  %v2880_v27 = vmul.f32 %v7779_v12, %v2753_v44 }
0x29f8   :  { %v2875_v17 = vmul.f32 2.0, %v7781_v14  ;;  %v2879_v31 = vmul.f32 %v7781_v14, %v2752_v46 }
0x29f9   :  { %v5589_v19 = vadd.f32 -1.0, %v2876_v15 }
0x29fa   :  { %v5588_v21 = vadd.f32 -1.0, %v2875_v17 }
0x29fb   :  { %2885 = vrot.lane.b32.xlu1 %v5589_v19, %s8263_s8 }
0x29fc   :  { %2883 = vrot.lane.b32.xlu0 %v5588_v21, %s8263_s8 }
0x2a6d   :  { %v2886_v23 = vpop.permute.xlu1 %2885 }
0x2a6e   :  { %v2890_v24 = vmul.f32 %v7779_v12, %v2886_v23  ;;  %v2884_v25 = vpop.permute.xlu0 %2883 }
0x2a6f   :  { %v2889_v26 = vmul.f32 %v7781_v14, %v2884_v25 }
0x2a70   :  { %2895 = vrot.lane.b32.xlu1 %v2890_v24, %s8262_s6 }
0x2a71   :  { %2893 = vrot.lane.b32.xlu0 %v2889_v26, %s8262_s6 }
0x2ae2   :  { %v2896_v29 = vpop.permute.xlu1 %2895 }
0x2ae3   :  { %v2900_v32 = vadd.f32 %v2896_v29, %v2880_v27  ;;  %v2894_v34 = vpop.permute.xlu0 %2893 }
0x2ae4   :  { %v2899_v36 = vadd.f32 %v2894_v34, %v2879_v31 }
0x2ae5   :  { %7782 = vtanh.f32 %v2900_v32 }
0x2ae6   :  { %7784 = vtanh.f32 %v2899_v36 }
0x2aef   :  { %v7783_v38 = vpop.eup %7782 }
0x2af0   :  { %v7785_v39 = vpop.eup %7784  ;;  %2907 = vrot.lane.b32.xlu1 %v7783_v38, %s8263_s8 }
0x2af1   :  { %2905 = vrot.lane.b32.xlu0 %v7785_v39, %s8263_s8 }
0x2b62   :  { %v2908_v40 = vpop.permute.xlu1 %2907 }
0x2b63   :  { %v9066_v41 = vmul.f32 %v7779_v12, %v2908_v40  ;;  %v2906_v42 = vpop.permute.xlu0 %2905 }
0x2b64   :  { %v9068_v43 = vmul.f32 %v7781_v14, %v2906_v42 }
0x2b65   :  { %2927 = vrot.lane.b32.xlu1 %v9066_v41, %s8262_s6 }
0x2b66   :  { %2925 = vrot.lane.b32.xlu0 %v9068_v43, %s8262_s6 }
0x2bd7   :  { %v2928_v45 = vpop.permute.xlu1 %2927 }
0x2bd8   :  { %v2926_v44 = vpop.permute.xlu0 %2925 }
0x2bd9   :  { %6469 = vmatprep.mubr.msk.f32.mxu0 %vm744_vm1, %v2926_v44 }
0x2bda   :  { %6470 = vmatmul.mubr.msk.f32.vlgmr.msra.gmra.mrb[30].mxu0 %vm744_vm1, %v2928_v45 }
0x2bdb   :  { %6985 = vmatpush3.bf16.msra.mxu0 %v8583_v6 }
0x2bdc   :  { %6987 = vmatprep.subr.bf16.mxu0 %v8603_v13 }
0x2bdf   :  { %6989 = vmatpush3.bf16.msra.mxu0 %v8603_v13 }
0x2be0   :  { %6991 = vmatprep.subr.bf16.mxu0 %v8583_v6 }
0x2cad   :  { %v6471_v46 = vpop.f32.mrb[30].mxu0 }
0x2cae   :  { %v7531_v47 = vadd.f32 %v8972_v62, %v6471_v46  ;;  %v2999_v48 = vpop.f32.mrb[31].mxu0 }
0x2caf   :  { %v7532_v49 = vadd.f32 %v8972_v62, %v2999_v48 }
0x2cb0   :  { %v5593_v54 = vmul.f32 -1.442695, %v7531_v47 }
0x2cb1   :  { %v5592_v60 = vmul.f32 -1.442695, %v7532_v49 }
0x2cb2   :  { %7786 = vpow2.f32 %v5593_v54 }
0x2cb3   :  { %7788 = vpow2.f32 %v5592_v60 }
0x2cbc   :  { %v7787_v61 = vpop.eup %7786 }
0x2cbd   :  { %v7789_v63 = vpop.eup %7788  ;;  %v3017_v0 = vadd.f32 1.0, %v7787_v61 }
0x2cbe   :  { %v3016_v2 = vadd.f32 1.0, %v7789_v63 }
0x2cbf   :  { %7790 = vrcp.f32 %v3017_v0 }
0x2cc0   :  { %7792 = vrcp.f32 %v3016_v2 }
0x2cc9   :  { %v7791_v4 = vpop.eup %7790 }
0x2cca   :  { %v7793_v5 = vpop.eup %7792  ;;  %v3023_v7 = vmul.f32 2.0, %v7791_v4  ;;  %v3027_v17 = vmul.f32 %v7791_v4, %v2900_v32 }
0x2ccb   :  { %v3022_v8 = vmul.f32 2.0, %v7793_v5  ;;  %v3026_v21 = vmul.f32 %v7793_v5, %v2899_v36 }
0x2ccc   :  { %v5595_v9 = vadd.f32 -1.0, %v3023_v7 }
0x2ccd   :  { %v5594_v10 = vadd.f32 -1.0, %v3022_v8 }
0x2cce   :  { %3032 = vrot.lane.b32.xlu1 %v5595_v9, %s8263_s8 }
0x2ccf   :  { %3030 = vrot.lane.b32.xlu0 %v5594_v10, %s8263_s8 }
0x2d40   :  { %v3033_v11 = vpop.permute.xlu1 %3032 }
0x2d41   :  { %v3037_v12 = vmul.f32 %v7791_v4, %v3033_v11  ;;  %v3031_v14 = vpop.permute.xlu0 %3030 }
0x2d42   :  { %v3036_v15 = vmul.f32 %v7793_v5, %v3031_v14 }
0x2d43   :  { %3042 = vrot.lane.b32.xlu1 %v3037_v12, %s8262_s6 }
0x2d44   :  { %3040 = vrot.lane.b32.xlu0 %v3036_v15, %s8262_s6 }
0x2db5   :  { %v3043_v19 = vpop.permute.xlu1 %3042 }
0x2db6   :  { %v3047_v23 = vadd.f32 %v3043_v19, %v3027_v17  ;;  %v3041_v24 = vpop.permute.xlu0 %3040 }
0x2db7   :  { %v3046_v25 = vadd.f32 %v3041_v24, %v3026_v21 }
0x2db8   :  { %7794 = vtanh.f32 %v3047_v23 }
0x2db9   :  { %7796 = vtanh.f32 %v3046_v25 }
0x2dc2   :  { %v7795_v26 = vpop.eup %7794 }
0x2dc3   :  { %v7797_v27 = vpop.eup %7796  ;;  %3054 = vrot.lane.b32.xlu1 %v7795_v26, %s8263_s8 }
0x2dc4   :  { %3052 = vrot.lane.b32.xlu0 %v7797_v27, %s8263_s8 }
0x2e35   :  { %v3055_v29 = vpop.permute.xlu1 %3054 }
0x2e36   :  { %v9088_v31 = vmul.f32 %v7791_v4, %v3055_v29  ;;  %v3053_v34 = vpop.permute.xlu0 %3052 }
0x2e37   :  { %v9090_v38 = vmul.f32 %v7793_v5, %v3053_v34 }
0x2e38   :  { %3068 = vrot.lane.b32.xlu1 %v9088_v31, %s8262_s6 }
0x2e39   :  { %3066 = vrot.lane.b32.xlu0 %v9090_v38, %s8262_s6 }
0x2eaa   :  { %v3069_v36 = vpop.permute.xlu1 %3068 }
0x2eab   :  { %v3067_v32 = vpop.permute.xlu0 %3066 }
0x2eac   :  { %6480 = vmatprep.mubr.msk.f32.mxu0 %vm744_vm1, %v3067_v32 }
0x2ead   :  { %6481 = vmatmul.mubr.msk.f32.vlgmr.msra.gmra.mrb[32].mxu0 %vm744_vm1, %v3069_v36 }
0x2eae   :  { %6993 = vmatpush3.bf16.msra.mxu0 %v8583_v6 }
0x2eaf   :  { %6995 = vmatprep.subr.bf16.mxu0 %v8603_v13 }
0x2eb2   :  { %6997 = vmatpush3.bf16.msra.mxu0 %v8603_v13 }
0x2eb3   :  { %6999 = vmatprep.subr.bf16.mxu0 %v8583_v6 }
0x2f80   :  { %v6482_v39 = vpop.f32.mrb[32].mxu0 }
0x2f81   :  { %v7533_v40 = vadd.f32 %v8972_v62, %v6482_v39  ;;  %v3140_v42 = vpop.f32.mrb[33].mxu0 }
0x2f82   :  { %v7534_v44 = vadd.f32 %v8972_v62, %v3140_v42 }
0x2f83   :  { %v5599_v45 = vmul.f32 -1.442695, %v7533_v40 }
0x2f84   :  { %v5598_v46 = vmul.f32 -1.442695, %v7534_v44 }
0x2f85   :  { %7798 = vpow2.f32 %v5599_v45 }
0x2f86   :  { %7800 = vpow2.f32 %v5598_v46 }
0x2f8f   :  { %v7799_v47 = vpop.eup %7798 }
0x2f90   :  { %v7801_v48 = vpop.eup %7800  ;;  %v3158_v49 = vadd.f32 1.0, %v7799_v47 }
0x2f91   :  { %v3157_v54 = vadd.f32 1.0, %v7801_v48 }
0x2f92   :  { %7802 = vrcp.f32 %v3158_v49 }
0x2f93   :  { %7804 = vrcp.f32 %v3157_v54 }
0x2f9c   :  { %v7803_v60 = vpop.eup %7802 }
0x2f9d   :  { %v7805_v61 = vpop.eup %7804  ;;  %v3164_v63 = vmul.f32 2.0, %v7803_v60  ;;  %v3168_v10 = vmul.f32 %v7803_v60, %v3047_v23 }
0x2f9e   :  { %v3163_v0 = vmul.f32 2.0, %v7805_v61  ;;  %v3167_v12 = vmul.f32 %v7805_v61, %v3046_v25 }
0x2f9f   :  { %v5601_v2 = vadd.f32 -1.0, %v3164_v63 }
0x2fa0   :  { %v5600_v4 = vadd.f32 -1.0, %v3163_v0 }
0x2fa1   :  { %3173 = vrot.lane.b32.xlu1 %v5601_v2, %s8263_s8 }
0x2fa2   :  { %3171 = vrot.lane.b32.xlu0 %v5600_v4, %s8263_s8 }
0x3013   :  { %v3174_v5 = vpop.permute.xlu1 %3173 }
0x3014   :  { %v3178_v7 = vmul.f32 %v7803_v60, %v3174_v5  ;;  %v3172_v8 = vpop.permute.xlu0 %3171 }
0x3015   :  { %v3177_v9 = vmul.f32 %v7805_v61, %v3172_v8 }
0x3016   :  { %3183 = vrot.lane.b32.xlu1 %v3178_v7, %s8262_s6 }
0x3017   :  { %3181 = vrot.lane.b32.xlu0 %v3177_v9, %s8262_s6 }
0x3088   :  { %v3184_v11 = vpop.permute.xlu1 %3183 }
0x3089   :  { %v3188_v14 = vadd.f32 %v3184_v11, %v3168_v10  ;;  %v3182_v15 = vpop.permute.xlu0 %3181 }
0x308a   :  { %v3187_v17 = vadd.f32 %v3182_v15, %v3167_v12 }
0x308b   :  { %7806 = vtanh.f32 %v3188_v14 }
0x308c   :  { %7808 = vtanh.f32 %v3187_v17 }
0x3095   :  { %v7807_v19 = vpop.eup %7806 }
0x3096   :  { %v7809_v21 = vpop.eup %7808  ;;  %3195 = vrot.lane.b32.xlu1 %v7807_v19, %s8263_s8 }
0x3097   :  { %3193 = vrot.lane.b32.xlu0 %v7809_v21, %s8263_s8 }
0x3108   :  { %v3196_v24 = vpop.permute.xlu1 %3195 }
0x3109   :  { %v3200_v26 = vmul.f32 %v7803_v60, %v3196_v24  ;;  %v3194_v27 = vpop.permute.xlu0 %3193 }
0x310a   :  { %v3199_v29 = vmul.f32 %v7805_v61, %v3194_v27 }
0x310b   :  { %3205 = vrot.lane.b32.xlu1 %v3200_v26, %s8262_s6 }
0x310c   :  { %3203 = vrot.lane.b32.xlu0 %v3199_v29, %s8262_s6 }
0x317d   :  { %v3206_v23 = vpop.permute.xlu1 %3205 }
0x317e   :  { %3210 = vst.msk [vmem:[#allocation3 + $0x48] sm:$0xff] %vm744_vm1, %v3206_v23  ;;  %v3204_v25 = vpop.permute.xlu0 %3203 }
0x317f   :  { %3209 = vst.msk [vmem:[#allocation3 + $0x20] sm:$0xff] %vm744_vm1, %v3204_v25  ;;  %6491 = vmatprep.mubr.msk.f32.mxu0 %vm744_vm1, %v3204_v25 }
0x3180   :  { %6492 = vmatmul.mubr.msk.f32.vlgmr.msra.gmra.mrb[34].mxu0 %vm744_vm1, %v3206_v23 }
0x3181   :  { %7001 = vmatpush3.bf16.msra.mxu0 %v8583_v6 }
0x3182   :  { %7003 = vmatprep.subr.bf16.mxu0 %v8603_v13 }
0x3185   :  { %7005 = vmatpush3.bf16.msra.mxu0 %v8603_v13 }
0x3186   :  { %7007 = vmatprep.subr.bf16.mxu0 %v8583_v6 }
0x3253   :  { %v6493_v34 = vpop.f32.mrb[34].mxu0 }
0x3254   :  { %v7535_v32 = vadd.f32 %v8972_v62, %v6493_v34  ;;  %v3283_v36 = vpop.f32.mrb[35].mxu0 }
0x3255   :  { %v7536_v39 = vadd.f32 %v8972_v62, %v3283_v36 }
0x3256   :  { %v5605_v40 = vmul.f32 -1.442695, %v7535_v32 }
0x3257   :  { %v5604_v42 = vmul.f32 -1.442695, %v7536_v39 }
0x3258   :  { %7810 = vpow2.f32 %v5605_v40 }
0x3259   :  { %7812 = vpow2.f32 %v5604_v42 }
0x3262   :  { %v7811_v44 = vpop.eup %7810 }
0x3263   :  { %v7813_v45 = vpop.eup %7812  ;;  %v3301_v46 = vadd.f32 1.0, %v7811_v44 }
0x3264   :  { %v3300_v47 = vadd.f32 1.0, %v7813_v45 }
0x3265   :  { %7814 = vrcp.f32 %v3301_v46 }
0x3266   :  { %7816 = vrcp.f32 %v3300_v47 }
0x326f   :  { %v7815_v48 = vpop.eup %7814 }
0x3270   :  { %v7817_v49 = vpop.eup %7816  ;;  %v3307_v54 = vmul.f32 2.0, %v7815_v48  ;;  %v3311_v7 = vmul.f32 %v7815_v48, %v3188_v14 }
0x3271   :  { %v3306_v60 = vmul.f32 2.0, %v7817_v49  ;;  %v3310_v9 = vmul.f32 %v7817_v49, %v3187_v17 }
0x3272   :  { %v5607_v61 = vadd.f32 -1.0, %v3307_v54 }
0x3273   :  { %v5606_v63 = vadd.f32 -1.0, %v3306_v60 }
0x3274   :  { %3316 = vrot.lane.b32.xlu1 %v5607_v61, %s8263_s8 }
0x3275   :  { %3314 = vrot.lane.b32.xlu0 %v5606_v63, %s8263_s8 }
0x32e6   :  { %v3317_v0 = vpop.permute.xlu1 %3316 }
0x32e7   :  { %v3321_v2 = vmul.f32 %v7815_v48, %v3317_v0  ;;  %v3315_v4 = vpop.permute.xlu0 %3314 }
0x32e8   :  { %v3320_v5 = vmul.f32 %v7817_v49, %v3315_v4 }
0x32e9   :  { %3326 = vrot.lane.b32.xlu1 %v3321_v2, %s8262_s6 }
0x32ea   :  { %3324 = vrot.lane.b32.xlu0 %v3320_v5, %s8262_s6 }
0x335b   :  { %v3327_v8 = vpop.permute.xlu1 %3326 }
0x335c   :  { %v3331_v10 = vadd.f32 %v3327_v8, %v3311_v7  ;;  %v3325_v11 = vpop.permute.xlu0 %3324 }
0x335d   :  { %v3330_v12 = vadd.f32 %v3325_v11, %v3310_v9 }
0x335e   :  { %7818 = vtanh.f32 %v3331_v10 }
0x335f   :  { %7820 = vtanh.f32 %v3330_v12 }
0x3368   :  { %v7819_v15 = vpop.eup %7818 }
0x3369   :  { %v7821_v19 = vpop.eup %7820  ;;  %3338 = vrot.lane.b32.xlu1 %v7819_v15, %s8263_s8 }
0x336a   :  { %3336 = vrot.lane.b32.xlu0 %v7821_v19, %s8263_s8 }
0x33db   :  { %v3339_v21 = vpop.permute.xlu1 %3338 }
0x33dc   :  { %v9128_v24 = vmul.f32 %v7815_v48, %v3339_v21  ;;  %v3337_v26 = vpop.permute.xlu0 %3336 }
0x33dd   :  { %v9130_v27 = vmul.f32 %v7817_v49, %v3337_v26 }
0x33de   :  { %3358 = vrot.lane.b32.xlu1 %v9128_v24, %s8262_s6 }
0x33df   :  { %3356 = vrot.lane.b32.xlu0 %v9130_v27, %s8262_s6 }
0x3450   :  { %v3359_v17 = vpop.permute.xlu1 %3358 }
0x3451   :  { %v3357_v14 = vpop.permute.xlu0 %3356 }
0x3452   :  { %6502 = vmatprep.mubr.msk.f32.mxu0 %vm744_vm1, %v3357_v14 }
0x3453   :  { %6503 = vmatmul.mubr.msk.f32.vlgmr.msra.gmra.mrb[36].mxu0 %vm744_vm1, %v3359_v17 }
0x3454   :  { %7009 = vmatpush3.bf16.msra.mxu0 %v8583_v6 }
0x3455   :  { %7011 = vmatprep.subr.bf16.mxu0 %v8603_v13 }
0x3458   :  { %7013 = vmatpush3.bf16.msra.mxu0 %v8603_v13 }
0x3526   :  { %v6504_v29 = vpop.f32.mrb[36].mxu0 }
0x3527   :  { %v7537_v23 = vadd.f32 %v8972_v62, %v6504_v29  ;;  %v3430_v25 = vpop.f32.mrb[37].mxu0 }
0x3528   :  { %v7538_v34 = vadd.f32 %v8972_v62, %v3430_v25 }
0x3529   :  { %v5611_v32 = vmul.f32 -1.442695, %v7537_v23 }
0x352a   :  { %v5610_v36 = vmul.f32 -1.442695, %v7538_v34 }
0x352b   :  { %7822 = vpow2.f32 %v5611_v32 }
0x352c   :  { %7824 = vpow2.f32 %v5610_v36 }
0x3535   :  { %v7823_v39 = vpop.eup %7822 }
0x3536   :  { %v7825_v40 = vpop.eup %7824  ;;  %v3448_v42 = vadd.f32 1.0, %v7823_v39 }
0x3537   :  { %v3447_v44 = vadd.f32 1.0, %v7825_v40 }
0x3538   :  { %7826 = vrcp.f32 %v3448_v42 }
0x3539   :  { %7828 = vrcp.f32 %v3447_v44 }
0x3542   :  { %v7827_v6 = vpop.eup %7826 }
0x3543   :  { %v7829_v45 = vpop.eup %7828  ;;  %v3454_v46 = vmul.f32 2.0, %v7827_v6  ;;  %v3458_v63 = vmul.f32 %v7827_v6, %v3331_v10 }
0x3544   :  { %v3453_v13 = vmul.f32 2.0, %v7829_v45  ;;  %v3457_v2 = vmul.f32 %v7829_v45, %v3330_v12 }
0x3545   :  { %v5613_v47 = vadd.f32 -1.0, %v3454_v46 }
0x3546   :  { %v5612_v48 = vadd.f32 -1.0, %v3453_v13 }
0x3547   :  { %3463 = vrot.lane.b32.xlu1 %v5613_v47, %s8263_s8 }
0x3548   :  { %3461 = vrot.lane.b32.xlu0 %v5612_v48, %s8263_s8 }
0x35b9   :  { %v3464_v49 = vpop.permute.xlu1 %3463 }
0x35ba   :  { %v3468_v54 = vmul.f32 %v7827_v6, %v3464_v49  ;;  %v3462_v60 = vpop.permute.xlu0 %3461 }
0x35bb   :  { %v3467_v61 = vmul.f32 %v7829_v45, %v3462_v60 }
0x35bc   :  { %3473 = vrot.lane.b32.xlu1 %v3468_v54, %s8262_s6 }
0x35bd   :  { %3471 = vrot.lane.b32.xlu0 %v3467_v61, %s8262_s6 }
0x362e   :  { %v3474_v0 = vpop.permute.xlu1 %3473 }
0x362f   :  { %v9147_v4 = vadd.f32 %v3474_v0, %v3458_v63  ;;  %v3472_v5 = vpop.permute.xlu0 %3471 }
0x3630   :  { %v9149_v7 = vadd.f32 %v3472_v5, %v3457_v2 }
0x3631   :  { %7830 = vtanh.f32 %v9147_v4 }
0x3632   :  { %7832 = vtanh.f32 %v9149_v7 }
0x363b   :  { %v7831_v8 = vpop.eup %7830 }
0x363c   :  { %v7833_v9 = vpop.eup %7832  ;;  %3485 = vrot.lane.b32.xlu1 %v7831_v8, %s8263_s8 }
0x363d   :  { %3483 = vrot.lane.b32.xlu0 %v7833_v9, %s8263_s8 }
0x36ae   :  { %v3486_v11 = vpop.permute.xlu1 %3485 }
0x36af   :  { %v9155_v15 = vmul.f32 %v7827_v6, %v3486_v11  ;;  %v3484_v10 = vpop.permute.xlu0 %3483 }
0x36b0   :  { %v9157_v12 = vmul.f32 %v7829_v45, %v3484_v10 }
0x36b1   :  { %3505 = vrot.lane.b32.xlu1 %v9155_v15, %s8262_s6 }
0x36b2   :  { %3503 = vrot.lane.b32.xlu0 %v9157_v12, %s8262_s6 }
0x3723   :  { %v3506_v21 = vpop.permute.xlu1 %3505 }
0x3724   :  { %v3504_v19 = vpop.permute.xlu0 %3503 }
0x3725   :  { %6513 = vmatprep.mubr.msk.f32.mxu0 %vm744_vm1, %v3504_v19 }
0x3726   :  { %6514 = vmatmul.mubr.msk.f32.vlgmr.msra.gmra.mrb[38].mxu0 %vm744_vm1, %v3506_v21 }
0x37f9   :  { %v6515_v26 = vpop.f32.mrb[38].mxu0 }
0x37fa   :  { %v7539_v14 = vadd.f32 %v8972_v62, %v6515_v26  ;;  %v3577_v17 = vpop.f32.mrb[39].mxu0 }
0x37fb   :  { %v7540_v29 = vadd.f32 %v8972_v62, %v3577_v17 }
0x37fc   :  { %v5617_v23 = vmul.f32 -1.442695, %v7539_v14 }
0x37fd   :  { %v5616_v25 = vmul.f32 -1.442695, %v7540_v29 }
0x37fe   :  { %7834 = vpow2.f32 %v5617_v23 }
0x37ff   :  { %7836 = vpow2.f32 %v5616_v25 }
0x3808   :  { %v7835_v34 = vpop.eup %7834 }
0x3809   :  { %v7837_v32 = vpop.eup %7836  ;;  %v3595_v36 = vadd.f32 1.0, %v7835_v34 }
0x380a   :  { %v3594_v39 = vadd.f32 1.0, %v7837_v32 }
0x380b   :  { %7838 = vrcp.f32 %v3595_v36 }
0x380c   :  { %7840 = vrcp.f32 %v3594_v39 }
0x3815   :  { %v9167_v40 = vpop.eup %7838 }
0x3816   :  { %v9169_v42 = vpop.eup %7840  ;;  %v3601_v44 = vmul.f32 2.0, %v9167_v40 }
0x3817   :  { %v3600_v6 = vmul.f32 2.0, %v9169_v42 }
0x3818   :  { %v5619_v45 = vadd.f32 -1.0, %v3601_v44 }
0x3819   :  { %v5618_v62 = vadd.f32 -1.0, %v3600_v6 }
0x381a   :  { %3610 = vrot.lane.b32.xlu1 %v5619_v45, %s8263_s8 }
0x381b   :  { %3608 = vrot.lane.b32.xlu0 %v5618_v62, %s8263_s8 }
0x388c   :  { %v3611_v46 = vpop.permute.xlu1 %3610 }
0x388d   :  { %v3615_v13 = vmul.f32 %v9167_v40, %v3611_v46  ;;  %v3609_v47 = vpop.permute.xlu0 %3608 }
0x388e   :  { %v3614_v48 = vmul.f32 %v9169_v42, %v3609_v47 }
0x388f   :  { %3620 = vrot.lane.b32.xlu1 %v3615_v13, %s8262_s6 }
0x3890   :  { %3618 = vrot.lane.b32.xlu0 %v3614_v48, %s8262_s6  ;;  %s8264_s6 = smov 96  }
0x3893   :  { %1033 = vrot.lane.b32.xlu1 %v8790_v56, %s8263_s8  ;;  %v3605_v56 = vmul.f32 %v9167_v40, %v9147_v4 }
0x3894   :  { %1031 = vrot.lane.b32.xlu0 %v8792_v58, %s8263_s8 }
0x3897   :  { %1614 = vrot.lane.b32.xlu1 %v8874_v16, %s8263_s8 }
0x3898   :  { %1612 = vrot.lane.b32.xlu0 %v8876_v18, %s8263_s8 }
0x389b   :  { %2192 = vrot.lane.b32.xlu1 %v8958_v52, %s8263_s8 }
0x389c   :  { %2190 = vrot.lane.b32.xlu0 %v8960_v57, %s8263_s8 }
0x389f   :  { %2770 = vrot.lane.b32.xlu1 %v9044_v50, %s8263_s8 }
0x38a0   :  { %2768 = vrot.lane.b32.xlu0 %v9046_v59, %s8263_s8 }
0x38a3   :  { %3348 = vrot.lane.b32.xlu1 %v9128_v24, %s8263_s8 }
0x38a4   :  { %3346 = vrot.lane.b32.xlu0 %v9130_v27, %s8263_s8 }
0x38a7   :  { %1181 = vrot.lane.b32.xlu1 %v8812_v28, %s8264_s6  ;;  %v3604_v28 = vmul.f32 %v9169_v42, %v9149_v7 }
0x38a8   :  { %1179 = vrot.lane.b32.xlu0 %v8814_v30, %s8264_s6 }
0x38ab   :  { %1761 = vrot.lane.b32.xlu1 %v8896_v53, %s8264_s6 }
0x38ac   :  { %1759 = vrot.lane.b32.xlu0 %v8898_v55, %s8264_s6 }
0x38af   :  { %2339 = vrot.lane.b32.xlu1 %v8982_v37, %s8264_s6 }
0x38b0   :  { %2337 = vrot.lane.b32.xlu0 %v8984_v51, %s8264_s6 }
0x38b3   :  { %2917 = vrot.lane.b32.xlu1 %v9066_v41, %s8264_s6 }
0x38b4   :  { %2915 = vrot.lane.b32.xlu0 %v9068_v43, %s8264_s6 }
0x3901   :  { %v3621_v58 = vpop.permute.xlu1 %3620 }
0x3902   :  { %v3625_v30 = vadd.f32 %v3621_v58, %v3605_v56  ;;  %v3619_v16 = vpop.permute.xlu0 %3618 }
0x3903   :  { %v3624_v18 = vadd.f32 %v3619_v16, %v3604_v28 }
0x3904   :  { %7842 = vtanh.f32 %v3625_v30 }
0x3905   :  { %7844 = vtanh.f32 %v3624_v18  ;;  %v1034_v53 = vpop.permute.xlu1 %1033 }
0x3906   :  { %1039 = vst.msk [vmem:[#allocation3 + $0x28] sm:$0xff] %vm1037_vm2, %v1034_v53  ;;  %v1032_v55 = vpop.permute.xlu0 %1031 }
0x3907   :  { %1038 = vst.msk [vmem:[#allocation3] sm:$0xff] %vm1037_vm2, %v1032_v55 }
0x3908   :  { %8190 = shalt.err (!%p8187_p10)  }
0x3909   :  { %s8191_s14 = scalar_lea.vmem %s257_s24, 40960  ;;  %p8196_p12 = scmp.lt.s32.totalorder %s257_s24, %s257_s24 }
0x390a   :  { %p8192_p11 = scmp.ne.s32.totalorder %s257_s24, %s8191_s14  ;;  %p8197_p13 = scmp.lt.s32.totalorder %s8191_s14, %s8191_s14 }
0x390c   :  { %p8198_p0 = por %p8197_p13, %p8196_p12 }
0x390e   :  { %p8199_p1 = pnand %p8198_p0, %p8192_p11 }
0x3910   :  { %8202 = shalt.err (!%p8199_p1)  }
0x3911   :  { %259 = dma.hbm_to_vmem [thread:$0]  %s9450_s7, 40960, %s257_s24, [#allocation5]  ;;  %v1615_v52 = vpop.permute.xlu1 %1614  ;;  %v1613_v57 = vpop.permute.xlu0 %1612  ;;  %vm1185_vm3 = vcmask 785920   ;;  %vm1325_vm4 = vcmask 1048320  }
0x3912   :  { %1619 = vst.msk [vmem:[#allocation3 + $0x30] sm:$0xff] %vm1037_vm2, %v1615_v52  ;;  %1618 = vst.msk [vmem:[#allocation3 + $0x8] sm:$0xff] %vm1037_vm2, %v1613_v57  ;;  %v7843_v51 = vpop.eup %7842 }
0x3913   :  { %v7845_v59 = vpop.eup %7844  ;;  %3632 = vrot.lane.b32.xlu1 %v7843_v51, %s8263_s8 }
0x3914   :  { %3630 = vrot.lane.b32.xlu0 %v7845_v59, %s8263_s8 }
0x3915   :  { %v2193_v37 = vpop.permute.xlu1 %2192  ;;  %v2191_v50 = vpop.permute.xlu0 %2190 }
0x3916   :  { %2197 = vst.msk [vmem:[#allocation3 + $0x38] sm:$0xff] %vm1037_vm2, %v2193_v37  ;;  %2196 = vst.msk [vmem:[#allocation3 + $0x10] sm:$0xff] %vm1037_vm2, %v2191_v50 }
0x3917   :  { %3495 = vrot.lane.b32.xlu1 %v9155_v15, %s8264_s6 }
0x3918   :  { %3493 = vrot.lane.b32.xlu0 %v9157_v12, %s8264_s6 }
0x3919   :  { %v2771_v41 = vpop.permute.xlu1 %2770  ;;  %v2769_v43 = vpop.permute.xlu0 %2768 }
0x391a   :  { %2775 = vst.msk [vmem:[#allocation3 + $0x40] sm:$0xff] %vm1037_vm2, %v2771_v41  ;;  %2774 = vst.msk [vmem:[#allocation3 + $0x18] sm:$0xff] %vm1037_vm2, %v2769_v43 }
0x391d   :  { %v3349_v24 = vpop.permute.xlu1 %3348  ;;  %v3347_v27 = vpop.permute.xlu0 %3346 }
0x391e   :  { %3353 = vst.msk [vmem:[#allocation3 + $0x48] sm:$0xff] %vm1037_vm2, %v3349_v24  ;;  %3352 = vst.msk [vmem:[#allocation3 + $0x20] sm:$0xff] %vm1037_vm2, %v3347_v27 }
0x3921   :  { %v1182_v49 = vpop.permute.xlu1 %1181  ;;  %v1180_v54 = vpop.permute.xlu0 %1179 }
0x3922   :  { %1187 = vst.msk [vmem:[#allocation3 + $0x28] sm:$0xff] %vm1185_vm3, %v1182_v49  ;;  %1186 = vst.msk [vmem:[#allocation3] sm:$0xff] %vm1185_vm3, %v1180_v54 }
0x3923   :  { %1327 = vst.msk [vmem:[#allocation3 + $0x28] sm:$0xff] %vm1325_vm4, %v8834_v1  ;;  %1326 = vst.msk [vmem:[#allocation3] sm:$0xff] %vm1325_vm4, %v8836_v3 }
0x3925   :  { %v1762_v60 = vpop.permute.xlu1 %1761  ;;  %v1760_v61 = vpop.permute.xlu0 %1759 }
0x3926   :  { %1766 = vst.msk [vmem:[#allocation3 + $0x30] sm:$0xff] %vm1185_vm3, %v1762_v60  ;;  %1765 = vst.msk [vmem:[#allocation3 + $0x8] sm:$0xff] %vm1185_vm3, %v1760_v61 }
0x3927   :  { %1905 = vst.msk [vmem:[#allocation3 + $0x30] sm:$0xff] %vm1325_vm4, %v8918_v33  ;;  %1904 = vst.msk [vmem:[#allocation3 + $0x8] sm:$0xff] %vm1325_vm4, %v8920_v35 }
0x3929   :  { %v2340_v63 = vpop.permute.xlu1 %2339  ;;  %v2338_v1 = vpop.permute.xlu0 %2337 }
0x392a   :  { %2344 = vst.msk [vmem:[#allocation3 + $0x38] sm:$0xff] %vm1185_vm3, %v2340_v63  ;;  %2343 = vst.msk [vmem:[#allocation3 + $0x10] sm:$0xff] %vm1185_vm3, %v2338_v1 }
0x392b   :  { %2483 = vst.msk [vmem:[#allocation3 + $0x38] sm:$0xff] %vm1325_vm4, %v9004_v20  ;;  %2482 = vst.msk [vmem:[#allocation3 + $0x10] sm:$0xff] %vm1325_vm4, %v9006_v22 }
0x392d   :  { %v2918_v3 = vpop.permute.xlu1 %2917  ;;  %v2916_v33 = vpop.permute.xlu0 %2915 }
0x392e   :  { %2922 = vst.msk [vmem:[#allocation3 + $0x40] sm:$0xff] %vm1185_vm3, %v2918_v3  ;;  %2921 = vst.msk [vmem:[#allocation3 + $0x18] sm:$0xff] %vm1185_vm3, %v2916_v33 }
0x392f   :  { %3061 = vst.msk [vmem:[#allocation3 + $0x40] sm:$0xff] %vm1325_vm4, %v9088_v31  ;;  %3060 = vst.msk [vmem:[#allocation3 + $0x18] sm:$0xff] %vm1325_vm4, %v9090_v38 }
0x3985   :  { %v3633_v35 = vpop.permute.xlu1 %3632 }
0x3986   :  { %v3631_v0 = vpop.permute.xlu0 %3630  ;;  %v3637_v20 = vmul.f32 %v9167_v40, %v3633_v35 }
0x3987   :  { %v3636_v4 = vmul.f32 %v9169_v42, %v3631_v0 }
0x3989   :  { %v3496_v2 = vpop.permute.xlu1 %3495 }
0x398a   :  { %3500 = vst.msk [vmem:[#allocation3 + $0x48] sm:$0xff] %vm1185_vm3, %v3496_v2  ;;  %v3494_v22 = vpop.permute.xlu0 %3493 }
0x398b   :  { %3639 = vst.msk [vmem:[#allocation3 + $0x48] sm:$0xff] %vm1325_vm4, %v3637_v20 }
0x398c   :  { %3499 = vst.msk [vmem:[#allocation3 + $0x20] sm:$0xff] %vm1185_vm3, %v3494_v22 }
0x398d   :  { %3638 = vst.msk [vmem:[#allocation3 + $0x20] sm:$0xff] %vm1325_vm4, %v3636_v4 }
0x398e   :  { %8241 = dma.done.wait [#allocation5], 40960 }
0x398f   :  { %8242 = vsyncadd [#allocation5], 4294926336  ;;  %v8266_v31 = vmov 0.0|0.0   ;;  %vm8267_vm5 = vmmov 0   ;;  %v8268_v38 = vmov 0.0   ;;  %v3749_v5 = vld [vmem:[#allocation4 + $0x300] sm:$0xff] }
0x3990   :  { %7254 = vmatprep.subr.bf16.mxu0 %v8266_v31  ;;  %6618 = vmatprep.mubr.msk.f32.mxu0 %vm8267_vm5, %v8268_v38  ;;  %v3750_v7 = vld [vmem:[#allocation4 + $0x308] sm:$0xff]  ;;  %v3733_v8 = vld [vmem:[#allocation4 + $0x280] sm:$0xff]  ;;  %v3751_v15 = vld [vmem:[#allocation4 + $0x310] sm:$0xff]  ;;  %vm5153_vm6 = vcmask 654336   ;;  %s9483_s18 = sld [smem:[#allocation50_spill]]  ;;  %s8269_s27 = smov [#allocation30]  }
0x3991   :  { %v7014_v9 = vpack.c.bf16 %v3750_v7, %v3749_v5  ;;  %v3734_v11 = vld [vmem:[#allocation4 + $0x288] sm:$0xff]  ;;  %v3752_v10 = vld [vmem:[#allocation4 + $0x318] sm:$0xff]  ;;  %v3735_v21 = vld [vmem:[#allocation4 + $0x290] sm:$0xff]  ;;  %s5437_s23 = sshll.u32 %s8269_s27, 4  ;;  %vm5429_vm7 = vcmask 58368   ;;  %s5438_s23 = int_to_ptr.vmem [resolvable:$true] %s5437_s23 }
0x3992   :  { %v7016_v12 = vpack.c.bf16 %v3734_v11, %v3733_v8  ;;  %v7018_v19 = vpack.c.bf16 %v3752_v10, %v3751_v15  ;;  %v3736_v26 = vld [vmem:[#allocation4 + $0x298] sm:$0xff]  ;;  %v3753_v14 = vld [vmem:[#allocation4 + $0x320] sm:$0xff]  ;;  %v3754_v17 = vld [vmem:[#allocation4 + $0x328] sm:$0xff]  ;;  %p8208_p3 = scmp.lt.s32.totalorder %s5438_s23, %s5438_s23 }
0x3993   :  { %7015 = vmatprep.subr.bf16.mxu1 %v7014_v9  ;;  %v7020_v29 = vpack.c.bf16 %v3736_v26, %v3735_v21  ;;  %v7022_v23 = vpack.c.bf16 %v3754_v17, %v3753_v14  ;;  %v3737_v25 = vld [vmem:[#allocation4 + $0x2a0] sm:$0xff]  ;;  %v3738_v34 = vld [vmem:[#allocation4 + $0x2a8] sm:$0xff]  ;;  %v3755_v32 = vld [vmem:[#allocation4 + $0x330] sm:$0xff] }
0x3994   :  { %7017 = vmatpush3.bf16.msra.mxu1 %v7016_v12  ;;  %v3756_v36 = vld [vmem:[#allocation4 + $0x338] sm:$0xff]  ;;  %v7024_v39 = vpack.c.bf16 %v3738_v34, %v3737_v25  ;;  %v3739_v42 = vld [vmem:[#allocation4 + $0x2b0] sm:$0xff]  ;;  %v3757_v6 = vld [vmem:[#allocation4 + $0x340] sm:$0xff] }
0x3995   :  { %7019 = vmatprep.subr.bf16.mxu1 %v7018_v19  ;;  %v7026_v40 = vpack.c.bf16 %v3756_v36, %v3755_v32  ;;  %v3740_v44 = vld [vmem:[#allocation4 + $0x2b8] sm:$0xff]  ;;  %v3758_v45 = vld [vmem:[#allocation4 + $0x348] sm:$0xff]  ;;  %v3741_v48 = vld [vmem:[#allocation4 + $0x2c0] sm:$0xff] }
0x3996   :  { %v3729_v62 = vld [vmem:[#allocation3 + $0x8] sm:$0xf0]  ;;  %v7028_v13 = vpack.c.bf16 %v3740_v44, %v3739_v42  ;;  %v7030_v47 = vpack.c.bf16 %v3758_v45, %v3757_v6  ;;  %v3742_v56 = vld [vmem:[#allocation4 + $0x2c8] sm:$0xff]  ;;  %v3759_v58 = vld [vmem:[#allocation4 + $0x350] sm:$0xff] }
0x3997   :  { %v3819_v46 = vrot.slane %v3729_v62, 4  ;;  %v3760_v28 = vld [vmem:[#allocation4 + $0x358] sm:$0xff]  ;;  %v7032_v30 = vpack.c.bf16 %v3742_v56, %v3741_v48  ;;  %v3743_v18 = vld [vmem:[#allocation4 + $0x2d0] sm:$0xff]  ;;  %v3761_v55 = vld [vmem:[#allocation4 + $0x360] sm:$0xff] }
0x3998   :  { %7021 = vmatpush3.bf16.msra.mxu1 %v7020_v29  ;;  %v7034_v16 = vpack.c.bf16 %v3760_v28, %v3759_v58  ;;  %v3744_v53 = vld [vmem:[#allocation4 + $0x2d8] sm:$0xff]  ;;  %v3762_v52 = vld [vmem:[#allocation4 + $0x368] sm:$0xff]  ;;  %v3745_v51 = vld [vmem:[#allocation4 + $0x2e0] sm:$0xff] }
0x3999   :  { %7023 = vmatprep.subr.bf16.mxu1 %v7022_v23  ;;  %3892 = vmatprep.mubr.f32.mxu1 %v3819_v46  ;;  %v7036_v57 = vpack.c.bf16 %v3744_v53, %v3743_v18  ;;  %v7038_v37 = vpack.c.bf16 %v3762_v52, %v3761_v55  ;;  %v3746_v50 = vld [vmem:[#allocation4 + $0x2e8] sm:$0xff]  ;;  %v3763_v59 = vld [vmem:[#allocation4 + $0x370] sm:$0xff]  ;;  %v3764_v41 = vld [vmem:[#allocation4 + $0x378] sm:$0xff] }
0x399a   :  { %v7040_v43 = vpack.c.bf16 %v3746_v50, %v3745_v51  ;;  %v7042_v24 = vpack.c.bf16 %v3764_v41, %v3763_v59  ;;  %v3747_v27 = vld [vmem:[#allocation4 + $0x2f0] sm:$0xff]  ;;  %v3748_v49 = vld [vmem:[#allocation4 + $0x2f8] sm:$0xff]  ;;  %v3781_v54 = vld [vmem:[#allocation4 + $0x400] sm:$0xff] }
0x399b   :  { %v3782_v60 = vld [vmem:[#allocation4 + $0x408] sm:$0xff]  ;;  %v7044_v61 = vpack.c.bf16 %v3748_v49, %v3747_v27  ;;  %v3728_v63 = vld [vmem:[#allocation3] sm:$0xf0]  ;;  %v3765_v3 = vld [vmem:[#allocation4 + $0x380] sm:$0xff] }
0x399c   :  { %7025 = vmatpush3.bf16.msra.mxu1 %v7024_v39  ;;  %v7046_v1 = vpack.c.bf16 %v3782_v60, %v3781_v54  ;;  %v3766_v33 = vld [vmem:[#allocation4 + $0x388] sm:$0xff]  ;;  %v3783_v0 = vld [vmem:[#allocation4 + $0x410] sm:$0xff]  ;;  %v3784_v20 = vld [vmem:[#allocation4 + $0x418] sm:$0xff]  ;;  %v3818_v2 = vrot.slane %v3728_v63, 4 }
0x399d   :  { %7027 = vmatprep.subr.bf16.mxu1 %v7026_v40  ;;  %v3731_v35 = vld [vmem:[#allocation3 + $0x18] sm:$0xf0]  ;;  %v7048_v4 = vpack.c.bf16 %v3766_v33, %v3765_v3  ;;  %v7050_v5 = vpack.c.bf16 %v3784_v20, %v3783_v0  ;;  %v3767_v7 = vld [vmem:[#allocation4 + $0x390] sm:$0xff]  ;;  %v3768_v8 = vld [vmem:[#allocation4 + $0x398] sm:$0xff] }
0x399e   :  { %v3821_v22 = vrot.slane %v3731_v35, 4  ;;  %v3785_v9 = vld [vmem:[#allocation4 + $0x420] sm:$0xff]  ;;  %v3786_v11 = vld [vmem:[#allocation4 + $0x428] sm:$0xff]  ;;  %v7052_v15 = vpack.c.bf16 %v3768_v8, %v3767_v7  ;;  %v3787_v21 = vld [vmem:[#allocation4 + $0x430] sm:$0xff] }
0x399f   :  { %v7054_v10 = vpack.c.bf16 %v3786_v11, %v3785_v9  ;;  %v3769_v12 = vld [vmem:[#allocation4 + $0x3a0] sm:$0xff]  ;;  %v3770_v19 = vld [vmem:[#allocation4 + $0x3a8] sm:$0xff]  ;;  %v3788_v26 = vld [vmem:[#allocation4 + $0x438] sm:$0xff] }
0x39a0   :  { %7029 = vmatpush3.bf16.msra.mxu1 %v7028_v13  ;;  %v7056_v14 = vpack.c.bf16 %v3770_v19, %v3769_v12  ;;  %v7058_v17 = vpack.c.bf16 %v3788_v26, %v3787_v21  ;;  %v3771_v29 = vld [vmem:[#allocation4 + $0x3b0] sm:$0xff]  ;;  %v3772_v23 = vld [vmem:[#allocation4 + $0x3b8] sm:$0xff]  ;;  %v3789_v25 = vld [vmem:[#allocation4 + $0x440] sm:$0xff] }
0x39a1   :  { %7031 = vmatprep.subr.bf16.mxu1 %v7030_v47  ;;  %v3790_v34 = vld [vmem:[#allocation4 + $0x448] sm:$0xff]  ;;  %v7060_v32 = vpack.c.bf16 %v3772_v23, %v3771_v29  ;;  %v3773_v39 = vld [vmem:[#allocation4 + $0x3c0] sm:$0xff]  ;;  %v3791_v42 = vld [vmem:[#allocation4 + $0x450] sm:$0xff] }
0x39a2   :  { %v7062_v36 = vpack.c.bf16 %v3790_v34, %v3789_v25  ;;  %v3774_v40 = vld [vmem:[#allocation4 + $0x3c8] sm:$0xff]  ;;  %v3792_v44 = vld [vmem:[#allocation4 + $0x458] sm:$0xff]  ;;  %v3775_v62 = vld [vmem:[#allocation4 + $0x3d0] sm:$0xff] }
0x39a3   :  { %v7064_v6 = vpack.c.bf16 %v3774_v40, %v3773_v39  ;;  %v7066_v45 = vpack.c.bf16 %v3792_v44, %v3791_v42  ;;  %v3776_v46 = vld [vmem:[#allocation4 + $0x3d8] sm:$0xff]  ;;  %v3793_v13 = vld [vmem:[#allocation4 + $0x460] sm:$0xff]  ;;  %v3794_v47 = vld [vmem:[#allocation4 + $0x468] sm:$0xff] }
0x39a4   :  { %7033 = vmatpush3.bf16.msra.mxu1 %v7032_v30  ;;  %v7068_v48 = vpack.c.bf16 %v3776_v46, %v3775_v62  ;;  %v7070_v56 = vpack.c.bf16 %v3794_v47, %v3793_v13  ;;  %v3777_v58 = vld [vmem:[#allocation4 + $0x3e0] sm:$0xff]  ;;  %v3778_v28 = vld [vmem:[#allocation4 + $0x3e8] sm:$0xff]  ;;  %v3795_v30 = vld [vmem:[#allocation4 + $0x470] sm:$0xff] }
0x39a5   :  { %7035 = vmatprep.subr.bf16.mxu1 %v7034_v16  ;;  %v3796_v16 = vld [vmem:[#allocation4 + $0x478] sm:$0xff]  ;;  %v7072_v18 = vpack.c.bf16 %v3778_v28, %v3777_v58  ;;  %v3779_v55 = vld [vmem:[#allocation4 + $0x3f0] sm:$0xff]  ;;  %v3797_v51 = vld [vmem:[#allocation4 + $0x480] sm:$0xff] }
0x39a6   :  { %v7074_v53 = vpack.c.bf16 %v3796_v16, %v3795_v30  ;;  %v3780_v52 = vld [vmem:[#allocation4 + $0x3f8] sm:$0xff]  ;;  %v3798_v50 = vld [vmem:[#allocation4 + $0x488] sm:$0xff]  ;;  %v3801_v49 = vld [vmem:[#allocation4 + $0x4a0] sm:$0xff] }
0x39a7   :  { %v7079_v41 = vpack.c.bf16 %v3798_v50, %v3797_v51  ;;  %v3802_v54 = vld [vmem:[#allocation4 + $0x4a8] sm:$0xff]  ;;  %v3804_v63 = vld [vmem:[#allocation4 + $0x4b8] sm:$0xff]  ;;  %v3805_v3 = vld [vmem:[#allocation4 + $0x4c0] sm:$0xff] }
0x39a8   :  { %7037 = vmatpush3.bf16.msra.mxu1 %v7036_v57  ;;  %v7076_v57 = vpack.c.bf16 %v3780_v52, %v3779_v55  ;;  %v7085_v60 = vpack.c.bf16 %v3802_v54, %v3801_v49  ;;  %v3806_v33 = vld [vmem:[#allocation4 + $0x4c8] sm:$0xff]  ;;  %v3807_v0 = vld [vmem:[#allocation4 + $0x4d0] sm:$0xff]  ;;  %v3808_v20 = vld [vmem:[#allocation4 + $0x4d8] sm:$0xff] }
0x39a9   :  { %7039 = vmatprep.subr.bf16.mxu1 %v7038_v37  ;;  %v3730_v37 = vld [vmem:[#allocation3 + $0x10] sm:$0xf0]  ;;  %v7091_v35 = vpack.c.bf16 %v3806_v33, %v3805_v3  ;;  %v3811_v7 = vld [vmem:[#allocation4 + $0x4f0] sm:$0xff]  ;;  %v3812_v8 = vld [vmem:[#allocation4 + $0x4f8] sm:$0xff] }
0x39aa   :  { %v3820_v59 = vrot.slane %v3730_v37, 4  ;;  %v3664_v9 = vld [vmem:[#allocation4 + $0x80] sm:$0xff]  ;;  %v3665_v11 = vld [vmem:[#allocation4 + $0x88] sm:$0xff]  ;;  %v3666_v26 = vld [vmem:[#allocation4 + $0x90] sm:$0xff] }
0x39ab   :  { %v7102_v12 = vpack.c.bf16 %v3665_v11, %v3664_v9  ;;  %v3648_v19 = vld [vmem:[#allocation4] sm:$0xff]  ;;  %v3649_v21 = vld [vmem:[#allocation4 + $0x8] sm:$0xff]  ;;  %v3650_v23 = vld [vmem:[#allocation4 + $0x10] sm:$0xff] }
0x39ac   :  { %7041 = vmatpush3.bf16.msra.mxu1 %v7040_v43  ;;  %v3799_v43 = vld [vmem:[#allocation4 + $0x490] sm:$0xff]  ;;  %v7104_v29 = vpack.c.bf16 %v3649_v21, %v3648_v19  ;;  %v3651_v34 = vld [vmem:[#allocation4 + $0x18] sm:$0xff]  ;;  %v3669_v39 = vld [vmem:[#allocation4 + $0xa8] sm:$0xff] }
0x39ad   :  { %7043 = vmatprep.subr.bf16.mxu1 %v7042_v24  ;;  %v3800_v24 = vld [vmem:[#allocation4 + $0x498] sm:$0xff]  ;;  %v4317_v40 = vld [vmem:[#allocation4 + $0x700] sm:$0xff]  ;;  %v4318_v42 = vld [vmem:[#allocation4 + $0x708] sm:$0xff] }
0x39ae   :  { %v7082_v27 = vpack.c.bf16 %v3800_v24, %v3799_v43  ;;  %v7255_v44 = vpack.c.bf16 %v4318_v42, %v4317_v40  ;;  %v3652_v62 = vld [vmem:[#allocation4 + $0x20] sm:$0xff]  ;;  %v3653_v46 = vld [vmem:[#allocation4 + $0x28] sm:$0xff]  ;;  %v4319_v13 = vld [vmem:[#allocation4 + $0x710] sm:$0xff] }
0x39af   :  { %v3670_v47 = vld [vmem:[#allocation4 + $0xb0] sm:$0xff]  ;;  %v7112_v28 = vpack.c.bf16 %v3653_v46, %v3652_v62  ;;  %v3672_v55 = vld [vmem:[#allocation4 + $0xc0] sm:$0xff]  ;;  %v3673_v52 = vld [vmem:[#allocation4 + $0xc8] sm:$0xff] }
0x39b0   :  { %7045 = vmatpush3.bf16.msra.mxu1 %v7044_v61  ;;  %v3803_v61 = vld [vmem:[#allocation4 + $0x4b0] sm:$0xff]  ;;  %7256 = vmatpush3.bf16.msra.mxu0 %v7255_v44  ;;  %v7118_v50 = vpack.c.bf16 %v3673_v52, %v3672_v55  ;;  %v4324_v49 = vld [vmem:[#allocation4 + $0x738] sm:$0xff]  ;;  %v4325_v3 = vld [vmem:[#allocation4 + $0x740] sm:$0xff] }
0x39b1   :  { %7047 = vmatprep.subr.bf16.mxu1 %v7046_v1  ;;  %v7088_v1 = vpack.c.bf16 %v3804_v63, %v3803_v61  ;;  %7257 = vmatprep.subr.bf16.mxu0 %v8266_v31  ;;  %v3654_v16 = vld [vmem:[#allocation4 + $0x30] sm:$0xff]  ;;  %v3676_v33 = vld [vmem:[#allocation4 + $0xe0] sm:$0xff]  ;;  %v3679_v9 = vld [vmem:[#allocation4 + $0xf8] sm:$0xff] }
0x39b2   :  { %v4323_v43 = vld [vmem:[#allocation4 + $0x730] sm:$0xff]  ;;  %v4328_v11 = vld [vmem:[#allocation4 + $0x758] sm:$0xff]  ;;  %v4582_v55 = vld [vmem:[#allocation4 + $0x888] sm:$0xff] }
0x39b3   :  { %3893 = vmatmul.mubr.f32.vlgmr.msra.gmra.mrb[0].mxu1 %v3818_v2  ;;  %v7094_v2 = vpack.c.bf16 %v3808_v20, %v3807_v0  ;;  %v3674_v24 = vld [vmem:[#allocation4 + $0xd0] sm:$0xff]  ;;  %v7264_v54 = vpack.c.bf16 %v4324_v49, %v4323_v43  ;;  %v4326_v0 = vld [vmem:[#allocation4 + $0x748] sm:$0xff]  ;;  %v3663_v21 = vld [vmem:[#allocation4 + $0x78] sm:$0xff] }
0x39b4   :  { %7049 = vmatpush3.bf16.msra.mxu1 %v7048_v4  ;;  %3962 = vmatprep.mubr.f32.mxu1 %v3821_v22  ;;  %v3809_v4 = vld [vmem:[#allocation4 + $0x4e0] sm:$0xff]  ;;  %v3810_v22 = vld [vmem:[#allocation4 + $0x4e8] sm:$0xff]  ;;  %v3658_v63 = vld [vmem:[#allocation4 + $0x50] sm:$0xff]  ;;  %v7267_v20 = vpack.c.bf16 %v4326_v0, %v4325_v3 }
0x39b5   :  { %7051 = vmatprep.subr.bf16.mxu1 %v7050_v5  ;;  %v7097_v5 = vpack.c.bf16 %v3810_v22, %v3809_v4  ;;  %v3660_v22 = vld [vmem:[#allocation4 + $0x60] sm:$0xff]  ;;  %v3662_v19 = vld [vmem:[#allocation4 + $0x70] sm:$0xff]  ;;  %v3699_v42 = vld [vmem:[#allocation4 + $0x198] sm:$0xff] }
0x39b6   :  { %v3698_v40 = vld [vmem:[#allocation4 + $0x190] sm:$0xff]  ;;  %v4332_v44 = vld [vmem:[#allocation4 + $0x778] sm:$0xff]  ;;  %v4602_v0 = vld [vmem:[#allocation4 + $0x928] sm:$0xff] }
0x39b7   :  { %v3682_v46 = vld [vmem:[#allocation4 + $0x110] sm:$0xff]  ;;  %v4600_v43 = vld [vmem:[#allocation4 + $0x918] sm:$0xff] }
0x39b8   :  { %7053 = vmatpush3.bf16.msra.mxu1 %v7052_v15  ;;  %v7100_v15 = vpack.c.bf16 %v3812_v8, %v3811_v7  ;;  %v4327_v7 = vld [vmem:[#allocation4 + $0x750] sm:$0xff] }
0x39b9   :  { %7055 = vmatprep.subr.bf16.mxu1 %v7054_v10  ;;  %v3732_v10 = vld [vmem:[#allocation3 + $0x20] sm:$0xf0] }
0x39ba   :  { %v3678_v8 = vld [vmem:[#allocation4 + $0xf0] sm:$0xff] }
0x39bb   :  { %v4583_v49 = vld [vmem:[#allocation4 + $0x890] sm:$0xff] }
0x39bc   :  { %7057 = vmatpush3.bf16.msra.mxu1 %v7056_v14  ;;  %v3667_v14 = vld [vmem:[#allocation4 + $0x98] sm:$0xff] }
0x39bd   :  { %7059 = vmatprep.subr.bf16.mxu1 %v7058_v17  ;;  %v3822_v17 = vrot.slane %v3732_v10, 4  ;;  %v7106_v25 = vpack.c.bf16 %v3667_v14, %v3666_v26  ;;  %v4329_v26 = vld [vmem:[#allocation4 + $0x760] sm:$0xff] }
0x39be   :  { %v3696_v14 = vld [vmem:[#allocation4 + $0x180] sm:$0xff] }
0x39c0   :  { %7061 = vmatpush3.bf16.msra.mxu1 %v7060_v32  ;;  %v3668_v32 = vld [vmem:[#allocation4 + $0xa0] sm:$0xff] }
0x39c1   :  { %7063 = vmatprep.subr.bf16.mxu1 %v7062_v36  ;;  %v3644_v36 = vld [vmem:[#allocation3 + $0x8] sm:$0xf] }
0x39c4   :  { %7065 = vmatpush3.bf16.msra.mxu1 %v7064_v6  ;;  %v7108_v6 = vpack.c.bf16 %v3651_v34, %v3650_v23 }
0x39c5   :  { %7067 = vmatprep.subr.bf16.mxu1 %v7066_v45  ;;  %v7110_v45 = vpack.c.bf16 %v3669_v39, %v3668_v32  ;;  %v3680_v32 = vld [vmem:[#allocation4 + $0x100] sm:$0xff]  ;;  %v4331_v39 = vld [vmem:[#allocation4 + $0x770] sm:$0xff] }
0x39c8   :  { %7069 = vmatpush3.bf16.msra.mxu1 %v7068_v48  ;;  %v3671_v48 = vld [vmem:[#allocation4 + $0xb8] sm:$0xff] }
0x39c9   :  { %7071 = vmatprep.subr.bf16.mxu1 %v7070_v56  ;;  %v4320_v56 = vld [vmem:[#allocation4 + $0x718] sm:$0xff]  ;;  %v7114_v30 = vpack.c.bf16 %v3671_v48, %v3670_v47  ;;  %v7138_v47 = vpack.c.bf16 %v3699_v42, %v3698_v40  ;;  %v3646_v48 = vld [vmem:[#allocation3 + $0x18] sm:$0xf] }
0x39ca   :  { %v7258_v58 = vpack.c.bf16 %v4320_v56, %v4319_v13  ;;  %v3683_v13 = vld [vmem:[#allocation4 + $0x118] sm:$0xff]  ;;  %v4597_v56 = vld [vmem:[#allocation4 + $0x900] sm:$0xff]  ;;  %v3709_v40 = vld [vmem:[#allocation4 + $0x1e8] sm:$0xff] }
0x39cb   :  { %v7140_v52 = vpack.c.bf16 %v3683_v13, %v3682_v46  ;;  %v3692_v46 = vld [vmem:[#allocation4 + $0x160] sm:$0xff]  ;;  %v4607_v13 = vld [vmem:[#allocation4 + $0x950] sm:$0xff] }
0x39cc   :  { %7073 = vmatpush3.bf16.msra.mxu1 %v7072_v18  ;;  %v3655_v18 = vld [vmem:[#allocation4 + $0x38] sm:$0xff]  ;;  %7259 = vmatpush3.bf16.msra.mxu0 %v7258_v58  ;;  %v4598_v58 = vld [vmem:[#allocation4 + $0x908] sm:$0xff] }
0x39cd   :  { %7075 = vmatprep.subr.bf16.mxu1 %v7074_v53  ;;  %v4321_v53 = vld [vmem:[#allocation4 + $0x720] sm:$0xff]  ;;  %7260 = vmatprep.subr.bf16.mxu0 %v8266_v31  ;;  %v7116_v51 = vpack.c.bf16 %v3655_v18, %v3654_v16  ;;  %v7310_v16 = vpack.c.bf16 %v4598_v58, %v4597_v56  ;;  %v3710_v56 = vld [vmem:[#allocation4 + $0x1f0] sm:$0xff]  ;;  %v4608_v58 = vld [vmem:[#allocation4 + $0x958] sm:$0xff] }
0x39ce   :  { %v4581_v18 = vld [vmem:[#allocation4 + $0x880] sm:$0xff] }
0x39d0   :  { %7077 = vmatpush3.bf16.msra.mxu1 %v7076_v57  ;;  %v4322_v57 = vld [vmem:[#allocation4 + $0x728] sm:$0xff] }
0x39d1   :  { %7078 = vmatprep.subr.bf16.mxu1 %v8266_v31  ;;  %v7261_v37 = vpack.c.bf16 %v4322_v57, %v4321_v53  ;;  %v4252_v53 = vld [vmem:[#allocation3 + $0x48] sm:$0xf]  ;;  %v3684_v57 = vld [vmem:[#allocation4 + $0x120] sm:$0xff] }
0x39d3   :  { %3963 = vmatmul.mubr.f32.vlgmr.msra.gmra.mrb[2].mxu1 %v3820_v59  ;;  %v3656_v59 = vld [vmem:[#allocation4 + $0x40] sm:$0xff]  ;;  %7262 = vmatpush3.bf16.msra.mxu0 %v7261_v37  ;;  %v7312_v37 = vpack.c.bf16 %v4582_v55, %v4581_v18  ;;  %v4592_v18 = vld [vmem:[#allocation4 + $0x8d8] sm:$0xff] }
0x39d4   :  { %7080 = vmatpush3.bf16.msra.mxu1 %v7079_v41  ;;  %6548 = vmatprep.mubr.msk.f32.mxu1 %vm8267_vm5, %v8268_v38  ;;  %v3657_v41 = vld [vmem:[#allocation4 + $0x48] sm:$0xff] }
0x39d5   :  { %7081 = vmatprep.subr.bf16.mxu1 %v8266_v31  ;;  %7263 = vmatprep.subr.bf16.mxu0 %v8266_v31 }
0x39d7   :  { %7265 = vmatpush3.bf16.msra.mxu0 %v7264_v54  ;;  %v4584_v54 = vld [vmem:[#allocation4 + $0x898] sm:$0xff] }
0x39d8   :  { %7083 = vmatpush3.bf16.msra.mxu1 %v7082_v27  ;;  %v3675_v27 = vld [vmem:[#allocation4 + $0xd8] sm:$0xff]  ;;  %7266 = vmatprep.subr.bf16.mxu0 %v8266_v31 }
0x39d9   :  { %7084 = vmatprep.subr.bf16.mxu1 %v8266_v31  ;;  %v7122_v61 = vpack.c.bf16 %v3675_v27, %v3674_v24  ;;  %v3703_v24 = vld [vmem:[#allocation4 + $0x1b8] sm:$0xff] }
0x39db   :  { %7268 = vmatpush3.bf16.msra.mxu0 %v7267_v20  ;;  %v3705_v20 = vld [vmem:[#allocation4 + $0x1c8] sm:$0xff] }
0x39dc   :  { %7086 = vmatpush3.bf16.msra.mxu1 %v7085_v60  ;;  %v7120_v60 = vpack.c.bf16 %v3657_v41, %v3656_v59  ;;  %7269 = vmatprep.subr.bf16.mxu0 %v8266_v31  ;;  %v3685_v59 = vld [vmem:[#allocation4 + $0x128] sm:$0xff]  ;;  %v3702_v41 = vld [vmem:[#allocation4 + $0x1b0] sm:$0xff] }
0x39dd   :  { %7087 = vmatprep.subr.bf16.mxu1 %v8266_v31  ;;  %v7146_v3 = vpack.c.bf16 %v3703_v24, %v3702_v41  ;;  %v4593_v41 = vld [vmem:[#allocation4 + $0x8e0] sm:$0xff] }
0x39e0   :  { %7089 = vmatpush3.bf16.msra.mxu1 %v7088_v1  ;;  %v3659_v1 = vld [vmem:[#allocation4 + $0x58] sm:$0xff] }
0x39e1   :  { %7090 = vmatprep.subr.bf16.mxu1 %v8266_v31 }
0x39e4   :  { %7092 = vmatpush3.bf16.msra.mxu1 %v7091_v35  ;;  %v3677_v35 = vld [vmem:[#allocation4 + $0xe8] sm:$0xff] }
0x39e5   :  { %7093 = vmatprep.subr.bf16.mxu1 %v8266_v31  ;;  %v7126_v4 = vpack.c.bf16 %v3677_v35, %v3676_v33  ;;  %v3687_v33 = vld [vmem:[#allocation4 + $0x138] sm:$0xff]  ;;  %v3704_v35 = vld [vmem:[#allocation4 + $0x1c0] sm:$0xff] }
0x39e8   :  { %7095 = vmatpush3.bf16.msra.mxu1 %v7094_v2  ;;  %v7124_v2 = vpack.c.bf16 %v3659_v1, %v3658_v63  ;;  %v3686_v63 = vld [vmem:[#allocation4 + $0x130] sm:$0xff]  ;;  %v4601_v1 = vld [vmem:[#allocation4 + $0x920] sm:$0xff] }
0x39e9   :  { %7096 = vmatprep.subr.bf16.mxu1 %v8266_v31 }
0x39ec   :  { %7098 = vmatpush3.bf16.msra.mxu1 %v7097_v5  ;;  %v3661_v5 = vld [vmem:[#allocation4 + $0x68] sm:$0xff] }
0x39ed   :  { %7099 = vmatprep.subr.bf16.mxu1 %v8266_v31  ;;  %v7128_v10 = vpack.c.bf16 %v3661_v5, %v3660_v22  ;;  %v4586_v22 = vld [vmem:[#allocation4 + $0x8a8] sm:$0xff] }
0x39f0   :  { %7101 = vmatpush3.bf16.msra.mxu1 %v7100_v15  ;;  %v7270_v15 = vpack.c.bf16 %v4328_v11, %v4327_v7  ;;  %v7148_v7 = vpack.c.bf16 %v3687_v33, %v3686_v63  ;;  %v7150_v11 = vpack.c.bf16 %v3705_v20, %v3704_v35  ;;  %v4547_v35 = vld [vmem:[#allocation3 + $0x40] sm:$0xf0] }
0x39f1   :  { %7103 = vmatprep.subr.bf16.mxu1 %v7102_v12  ;;  %v7130_v12 = vpack.c.bf16 %v3679_v9, %v3678_v8  ;;  %v3688_v8 = vld [vmem:[#allocation4 + $0x140] sm:$0xff]  ;;  %v4603_v9 = vld [vmem:[#allocation4 + $0x930] sm:$0xff] }
0x39f2   :  { %7271 = vmatpush3.bf16.msra.mxu0 %v7270_v15  ;;  %v3689_v15 = vld [vmem:[#allocation4 + $0x148] sm:$0xff] }
0x39f3   :  { %6549 = vmatmul.mubr.f32.vlgmr.msra.gmra.mrb[4].mxu1 %v3822_v17  ;;  %v3697_v17 = vld [vmem:[#allocation4 + $0x188] sm:$0xff]  ;;  %7272 = vmatprep.subr.bf16.mxu0 %v8266_v31 }
0x39f4   :  { %7105 = vmatpush3.bf16.msra.mxu1 %v7104_v29  ;;  %4102 = vmatprep.mubr.f32.mxu1 %v3644_v36  ;;  %v4330_v29 = vld [vmem:[#allocation4 + $0x768] sm:$0xff]  ;;  %v7134_v34 = vpack.c.bf16 %v3697_v17, %v3696_v14  ;;  %v4588_v14 = vld [vmem:[#allocation4 + $0x8b8] sm:$0xff] }
0x39f5   :  { %7107 = vmatprep.subr.bf16.mxu1 %v7106_v25  ;;  %v7273_v23 = vpack.c.bf16 %v4330_v29, %v4329_v26  ;;  %v7132_v25 = vpack.c.bf16 %v3663_v21, %v3662_v19  ;;  %v3681_v36 = vld [vmem:[#allocation4 + $0x108] sm:$0xff]  ;;  %v3707_v19 = vld [vmem:[#allocation4 + $0x1d8] sm:$0xff]  ;;  %v4587_v26 = vld [vmem:[#allocation4 + $0x8b0] sm:$0xff]  ;;  %v7152_v29 = vpack.c.bf16 %v3689_v15, %v3688_v8 }
0x39f6   :  { %v7136_v62 = vpack.c.bf16 %v3681_v36, %v3680_v32  ;;  %v7324_v17 = vpack.c.bf16 %v4588_v14, %v4587_v26  ;;  %v3691_v32 = vld [vmem:[#allocation4 + $0x158] sm:$0xff]  ;;  %v3708_v36 = vld [vmem:[#allocation4 + $0x1e0] sm:$0xff]  ;;  %v3721_v26 = vld [vmem:[#allocation4 + $0x248] sm:$0xff] }
0x39f7   :  { %7274 = vmatpush3.bf16.msra.mxu0 %v7273_v23  ;;  %v3690_v23 = vld [vmem:[#allocation4 + $0x150] sm:$0xff] }
0x39f8   :  { %7109 = vmatpush3.bf16.msra.mxu1 %v7108_v6  ;;  %7275 = vmatprep.subr.bf16.mxu0 %v8266_v31  ;;  %v7276_v6 = vpack.c.bf16 %v4332_v44, %v4331_v39  ;;  %v4606_v39 = vld [vmem:[#allocation4 + $0x948] sm:$0xff]  ;;  %v4589_v44 = vld [vmem:[#allocation4 + $0x8c0] sm:$0xff] }
0x39f9   :  { %7111 = vmatprep.subr.bf16.mxu1 %v7110_v45  ;;  %v3643_v45 = vld [vmem:[#allocation3] sm:$0xf] }
0x39fb   :  { %7277 = vmatpush3.bf16.msra.mxu0 %v7276_v6  ;;  %v4590_v6 = vld [vmem:[#allocation4 + $0x8c8] sm:$0xff] }
0x39fc   :  { %7113 = vmatpush3.bf16.msra.mxu1 %v7112_v28  ;;  %v3700_v28 = vld [vmem:[#allocation4 + $0x1a0] sm:$0xff]  ;;  %7311 = vmatprep.subr.bf16.mxu0 %v7310_v16  ;;  %v4591_v16 = vld [vmem:[#allocation4 + $0x8d0] sm:$0xff] }
0x39fd   :  { %7115 = vmatprep.subr.bf16.mxu1 %v7114_v30  ;;  %v3701_v30 = vld [vmem:[#allocation4 + $0x1a8] sm:$0xff] }
0x39fe   :  { %6619 = vmatmul.mubr.f32.vlgmr.msra.gmra.mrb[40].mxu0 %v4252_v53  ;;  %v7332_v53 = vpack.c.bf16 %v4592_v18, %v4591_v16  ;;  %v4273_v16 = vld [vmem:[#allocation4 + $0x5a0] sm:$0xff]  ;;  %v4274_v18 = vld [vmem:[#allocation4 + $0x5a8] sm:$0xff] }
0x39ff   :  { %7313 = vmatpush3.bf16.msra.mxu0 %v7312_v37  ;;  %v3694_v37 = vld [vmem:[#allocation4 + $0x170] sm:$0xff] }
0x3a00   :  { %7117 = vmatpush3.bf16.msra.mxu1 %v7116_v51  ;;  %v4599_v51 = vld [vmem:[#allocation4 + $0x910] sm:$0xff] }
0x3a01   :  { %7119 = vmatprep.subr.bf16.mxu1 %v7118_v50  ;;  %v7142_v50 = vpack.c.bf16 %v3701_v30, %v3700_v28  ;;  %v7314_v27 = vpack.c.bf16 %v4600_v43, %v4599_v51  ;;  %v3711_v28 = vld [vmem:[#allocation4 + $0x1f8] sm:$0xff]  ;;  %v7330_v30 = vpack.c.bf16 %v4608_v58, %v4607_v13  ;;  %v4594_v43 = vld [vmem:[#allocation4 + $0x8e8] sm:$0xff]  ;;  %v4255_v58 = vld [vmem:[#allocation4 + $0x510] sm:$0xff] }
0x3a02   :  { %v3695_v51 = vld [vmem:[#allocation4 + $0x178] sm:$0xff]  ;;  %v7336_v24 = vpack.c.bf16 %v4594_v43, %v4593_v41  ;;  %v4259_v41 = vld [vmem:[#allocation4 + $0x530] sm:$0xff] }
0x3a03   :  { %7315 = vmatprep.subr.bf16.mxu0 %v7314_v27  ;;  %v7164_v27 = vpack.c.bf16 %v3695_v51, %v3694_v37  ;;  %v4272_v13 = vld [vmem:[#allocation4 + $0x598] sm:$0xff]  ;;  %v4275_v37 = vld [vmem:[#allocation4 + $0x5b0] sm:$0xff] }
0x3a04   :  { %7121 = vmatpush3.bf16.msra.mxu1 %v7120_v60  ;;  %v7316_v60 = vpack.c.bf16 %v4584_v54, %v4583_v49  ;;  %v4611_v49 = vld [vmem:[#allocation4 + $0x970] sm:$0xff]  ;;  %v3712_v54 = vld [vmem:[#allocation4 + $0x200] sm:$0xff]  ;;  %v4276_v51 = vld [vmem:[#allocation4 + $0x5b8] sm:$0xff] }
0x3a05   :  { %7123 = vmatprep.subr.bf16.mxu1 %v7122_v61  ;;  %v7144_v61 = vpack.c.bf16 %v3685_v59, %v3684_v57  ;;  %v7162_v57 = vpack.c.bf16 %v3711_v28, %v3710_v56  ;;  %v4256_v28 = vld [vmem:[#allocation4 + $0x518] sm:$0xff] }
0x3a06   :  { %7317 = vmatpush3.bf16.msra.mxu0 %v7316_v60  ;;  %v3713_v60 = vld [vmem:[#allocation4 + $0x208] sm:$0xff]  ;;  %v4260_v43 = vld [vmem:[#allocation4 + $0x538] sm:$0xff] }
0x3a07   :  { %v7167_v20 = vpack.c.bf16 %v3713_v60, %v3712_v54  ;;  %v4261_v60 = vld [vmem:[#allocation4 + $0x540] sm:$0xff] }
0x3a08   :  { %7125 = vmatpush3.bf16.msra.mxu1 %v7124_v2  ;;  %v7318_v2 = vpack.c.bf16 %v4602_v0, %v4601_v1  ;;  %v4595_v1 = vld [vmem:[#allocation4 + $0x8f0] sm:$0xff]  ;;  %v3645_v0 = vld [vmem:[#allocation3 + $0x10] sm:$0xf] }
0x3a09   :  { %7127 = vmatprep.subr.bf16.mxu1 %v7126_v4  ;;  %v4585_v4 = vld [vmem:[#allocation4 + $0x8a0] sm:$0xff] }
0x3a0a   :  { %v7320_v5 = vpack.c.bf16 %v4586_v22, %v4585_v4  ;;  %7319 = vmatprep.subr.bf16.mxu0 %v7318_v2  ;;  %v4637_v2 = vrot.slane %v4547_v35, 4  ;;  %v4546_v4 = vld [vmem:[#allocation3 + $0x38] sm:$0xf0]  ;;  %v3714_v22 = vld [vmem:[#allocation4 + $0x210] sm:$0xff] }
0x3a0b   :  { %v4263_v35 = vld [vmem:[#allocation4 + $0x550] sm:$0xff] }
0x3a0c   :  { %7129 = vmatpush3.bf16.msra.mxu1 %v7128_v10  ;;  %v3706_v10 = vld [vmem:[#allocation4 + $0x1d0] sm:$0xff]  ;;  %7321 = vmatpush3.bf16.msra.mxu0 %v7320_v5  ;;  %v3715_v5 = vld [vmem:[#allocation4 + $0x218] sm:$0xff] }
0x3a0d   :  { %7131 = vmatprep.subr.bf16.mxu1 %v7130_v12  ;;  %v4604_v12 = vld [vmem:[#allocation4 + $0x938] sm:$0xff]  ;;  %4778 = vmatprep.mubr.f32.mxu0 %v4637_v2  ;;  %v7170_v8 = vpack.c.bf16 %v3715_v5, %v3714_v22  ;;  %v4282_v2 = vld [vmem:[#allocation4 + $0x5e8] sm:$0xff]  ;;  %v4265_v5 = vld [vmem:[#allocation4 + $0x560] sm:$0xff] }
0x3a0e   :  { %v7322_v21 = vpack.c.bf16 %v4604_v12, %v4603_v9  ;;  %v3716_v9 = vld [vmem:[#allocation4 + $0x220] sm:$0xff]  ;;  %v3719_v12 = vld [vmem:[#allocation4 + $0x238] sm:$0xff] }
0x3a10   :  { %7133 = vmatpush3.bf16.msra.mxu1 %v7132_v25  ;;  %7323 = vmatprep.subr.bf16.mxu0 %v7322_v21  ;;  %v4605_v25 = vld [vmem:[#allocation4 + $0x940] sm:$0xff] }
0x3a11   :  { %7135 = vmatprep.subr.bf16.mxu1 %v7134_v34  ;;  %v7154_v34 = vpack.c.bf16 %v3707_v19, %v3706_v10  ;;  %v7326_v42 = vpack.c.bf16 %v4606_v39, %v4605_v25  ;;  %7325 = vmatpush3.bf16.msra.mxu0 %v7324_v17  ;;  %v3718_v10 = vld [vmem:[#allocation4 + $0x230] sm:$0xff]  ;;  %v3720_v21 = vld [vmem:[#allocation4 + $0x240] sm:$0xff]  ;;  %v3727_v39 = vld [vmem:[#allocation4 + $0x278] sm:$0xff] }
0x3a12   :  { %v7176_v19 = vpack.c.bf16 %v3719_v12, %v3718_v10  ;;  %v7179_v14 = vpack.c.bf16 %v3721_v26, %v3720_v21  ;;  %v3722_v17 = vld [vmem:[#allocation4 + $0x250] sm:$0xff]  ;;  %v3724_v25 = vld [vmem:[#allocation4 + $0x260] sm:$0xff]  ;;  %v4268_v12 = vld [vmem:[#allocation4 + $0x578] sm:$0xff] }
0x3a13   :  { %4103 = vmatmul.mubr.f32.vlgmr.msra.gmra.mrb[6].mxu1 %v3643_v45  ;;  %v7328_v45 = vpack.c.bf16 %v4590_v6, %v4589_v44  ;;  %7327 = vmatprep.subr.bf16.mxu0 %v7326_v42  ;;  %v4270_v42 = vld [vmem:[#allocation4 + $0x588] sm:$0xff]  ;;  %v4267_v10 = vld [vmem:[#allocation4 + $0x570] sm:$0xff] }
0x3a14   :  { %7137 = vmatpush3.bf16.msra.mxu1 %v7136_v62  ;;  %4172 = vmatprep.mubr.f32.mxu1 %v3646_v48  ;;  %v7156_v62 = vpack.c.bf16 %v3691_v32, %v3690_v23  ;;  %v3693_v48 = vld [vmem:[#allocation4 + $0x168] sm:$0xff]  ;;  %v7220_v26 = vpack.c.bf16 %v4268_v12, %v4267_v10  ;;  %v4567_v10 = vld [vmem:[#allocation4 + $0x810] sm:$0xff]  ;;  %v4568_v12 = vld [vmem:[#allocation4 + $0x818] sm:$0xff] }
0x3a15   :  { %7139 = vmatprep.subr.bf16.mxu1 %v7138_v47  ;;  %v7158_v47 = vpack.c.bf16 %v3709_v40, %v3708_v36  ;;  %7329 = vmatpush3.bf16.msra.mxu0 %v7328_v45  ;;  %v7160_v55 = vpack.c.bf16 %v3693_v48, %v3692_v46  ;;  %v3726_v36 = vld [vmem:[#allocation4 + $0x270] sm:$0xff]  ;;  %v4269_v40 = vld [vmem:[#allocation4 + $0x580] sm:$0xff]  ;;  %v4302_v21 = vld [vmem:[#allocation4 + $0x688] sm:$0xff] }
0x3a16   :  { %7331 = vmatprep.subr.bf16.mxu0 %v7330_v30  ;;  %v7188_v44 = vpack.c.bf16 %v3727_v39, %v3726_v36  ;;  %v7190_v6 = vpack.c.bf16 %v4270_v42, %v4269_v40  ;;  %v4253_v45 = vld [vmem:[#allocation4 + $0x500] sm:$0xff]  ;;  %v4271_v46 = vld [vmem:[#allocation4 + $0x590] sm:$0xff]  ;;  %v4288_v40 = vld [vmem:[#allocation4 + $0x618] sm:$0xff] }
0x3a17   :  { %v7194_v56 = vpack.c.bf16 %v4272_v13, %v4271_v46  ;;  %v4249_v30 = vld [vmem:[#allocation3 + $0x30] sm:$0xf]  ;;  %v4287_v39 = vld [vmem:[#allocation4 + $0x610] sm:$0xff]  ;;  %v4290_v13 = vld [vmem:[#allocation4 + $0x628] sm:$0xff] }
0x3a18   :  { %7141 = vmatpush3.bf16.msra.mxu1 %v7140_v52  ;;  %v4609_v52 = vld [vmem:[#allocation4 + $0x960] sm:$0xff]  ;;  %v4251_v42 = vld [vmem:[#allocation3 + $0x40] sm:$0xf] }
0x3a19   :  { %7143 = vmatprep.subr.bf16.mxu1 %v7142_v50  ;;  %v4610_v50 = vld [vmem:[#allocation4 + $0x968] sm:$0xff]  ;;  %7333 = vmatpush3.bf16.msra.mxu0 %v7332_v53  ;;  %v7196_v53 = vpack.c.bf16 %v4256_v28, %v4255_v58  ;;  %v4289_v46 = vld [vmem:[#allocation4 + $0x620] sm:$0xff]  ;;  %v4291_v28 = vld [vmem:[#allocation4 + $0x630] sm:$0xff] }
0x3a1a   :  { %v7334_v59 = vpack.c.bf16 %v4610_v50, %v4609_v52  ;;  %v4257_v52 = vld [vmem:[#allocation4 + $0x520] sm:$0xff] }
0x3a1c   :  { %7145 = vmatpush3.bf16.msra.mxu1 %v7144_v61  ;;  %7335 = vmatprep.subr.bf16.mxu0 %v7334_v59  ;;  %v4612_v61 = vld [vmem:[#allocation4 + $0x978] sm:$0xff]  ;;  %v7202_v59 = vpack.c.bf16 %v4276_v51, %v4275_v37  ;;  %v4311_v37 = vld [vmem:[#allocation4 + $0x6d0] sm:$0xff] }
0x3a1d   :  { %7147 = vmatprep.subr.bf16.mxu1 %v7146_v3  ;;  %v7338_v63 = vpack.c.bf16 %v4612_v61, %v4611_v49  ;;  %v4596_v3 = vld [vmem:[#allocation4 + $0x8f8] sm:$0xff]  ;;  %7337 = vmatpush3.bf16.msra.mxu0 %v7336_v24  ;;  %v4277_v24 = vld [vmem:[#allocation4 + $0x5c0] sm:$0xff]  ;;  %v7204_v49 = vpack.c.bf16 %v4260_v43, %v4259_v41  ;;  %v4262_v61 = vld [vmem:[#allocation4 + $0x548] sm:$0xff] }
0x3a1e   :  { %v7340_v33 = vpack.c.bf16 %v4596_v3, %v4595_v1  ;;  %v4280_v1 = vld [vmem:[#allocation4 + $0x5d8] sm:$0xff]  ;;  %v7208_v3 = vpack.c.bf16 %v4262_v61, %v4261_v60  ;;  %v4295_v41 = vld [vmem:[#allocation4 + $0x650] sm:$0xff]  ;;  %v4297_v60 = vld [vmem:[#allocation4 + $0x660] sm:$0xff] }
0x3a1f   :  { %7339 = vmatprep.subr.bf16.mxu0 %v7338_v63  ;;  %v4279_v63 = vld [vmem:[#allocation4 + $0x5d0] sm:$0xff]  ;;  %v4312_v51 = vld [vmem:[#allocation4 + $0x6d8] sm:$0xff]  ;;  %v4298_v61 = vld [vmem:[#allocation4 + $0x668] sm:$0xff] }
0x3a20   :  { %7149 = vmatpush3.bf16.msra.mxu1 %v7148_v7  ;;  %v4636_v7 = vrot.slane %v4546_v4, 4  ;;  %v4296_v43 = vld [vmem:[#allocation4 + $0x658] sm:$0xff] }
0x3a21   :  { %7151 = vmatprep.subr.bf16.mxu1 %v7150_v11  ;;  %7341 = vmatpush3.bf16.msra.mxu0 %v7340_v33  ;;  %v3717_v11 = vld [vmem:[#allocation4 + $0x228] sm:$0xff]  ;;  %v7210_v33 = vpack.c.bf16 %v4280_v1, %v4279_v63  ;;  %v4315_v1 = vld [vmem:[#allocation4 + $0x6f0] sm:$0xff] }
0x3a22   :  { %7366 = vmatprep.subr.bf16.mxu0 %v8266_v31  ;;  %v7173_v15 = vpack.c.bf16 %v3717_v11, %v3716_v9  ;;  %v4284_v9 = vld [vmem:[#allocation4 + $0x5f8] sm:$0xff] }
0x3a24   :  { %7153 = vmatpush3.bf16.msra.mxu1 %v7152_v29  ;;  %4779 = vmatmul.mubr.f32.vlgmr.msra.gmra.mrb[42].mxu0 %v4636_v7  ;;  %v3723_v29 = vld [vmem:[#allocation4 + $0x258] sm:$0xff]  ;;  %v4266_v7 = vld [vmem:[#allocation4 + $0x568] sm:$0xff] }
0x3a25   :  { %7155 = vmatprep.subr.bf16.mxu1 %v7154_v34  ;;  %6688 = vmatprep.mubr.msk.f32.mxu0 %vm8267_vm5, %v8268_v38  ;;  %v7182_v23 = vpack.c.bf16 %v3723_v29, %v3722_v17  ;;  %v3725_v34 = vld [vmem:[#allocation4 + $0x268] sm:$0xff]  ;;  %v7216_v11 = vpack.c.bf16 %v4266_v7, %v4265_v5  ;;  %v4285_v17 = vld [vmem:[#allocation4 + $0x600] sm:$0xff] }
0x3a26   :  { %v7185_v32 = vpack.c.bf16 %v3725_v34, %v3724_v25  ;;  %v4286_v29 = vld [vmem:[#allocation4 + $0x608] sm:$0xff]  ;;  %v4304_v25 = vld [vmem:[#allocation4 + $0x698] sm:$0xff] }
0x3a27   :  { %v4248_v34 = vld [vmem:[#allocation3 + $0x28] sm:$0xf]  ;;  %v4566_v5 = vld [vmem:[#allocation4 + $0x808] sm:$0xff] }
0x3a28   :  { %7157 = vmatpush3.bf16.msra.mxu1 %v7156_v62  ;;  %v4254_v62 = vld [vmem:[#allocation4 + $0x508] sm:$0xff] }
0x3a29   :  { %7159 = vmatprep.subr.bf16.mxu1 %v7158_v47  ;;  %v3647_v47 = vld [vmem:[#allocation3 + $0x20] sm:$0xf]  ;;  %v7192_v48 = vpack.c.bf16 %v4254_v62, %v4253_v45  ;;  %v7228_v45 = vpack.c.bf16 %v4288_v40, %v4287_v39  ;;  %v4554_v39 = vld [vmem:[#allocation4 + $0x7a8] sm:$0xff] }
0x3a2a   :  { %v4571_v40 = vld [vmem:[#allocation4 + $0x830] sm:$0xff] }
0x3a2c   :  { %7161 = vmatpush3.bf16.msra.mxu1 %v7160_v55  ;;  %v7198_v55 = vpack.c.bf16 %v4274_v18, %v4273_v16  ;;  %v4309_v16 = vld [vmem:[#allocation4 + $0x6c0] sm:$0xff]  ;;  %v4310_v18 = vld [vmem:[#allocation4 + $0x6c8] sm:$0xff] }
0x3a2d   :  { %7163 = vmatprep.subr.bf16.mxu1 %v7162_v57  ;;  %v4258_v57 = vld [vmem:[#allocation4 + $0x528] sm:$0xff] }
0x3a2e   :  { %v7200_v50 = vpack.c.bf16 %v4258_v57, %v4257_v52  ;;  %v4293_v52 = vld [vmem:[#allocation4 + $0x640] sm:$0xff]  ;;  %v4294_v57 = vld [vmem:[#allocation4 + $0x648] sm:$0xff] }
0x3a30   :  { %7165 = vmatpush3.bf16.msra.mxu1 %v7164_v27  ;;  %v4278_v27 = vld [vmem:[#allocation4 + $0x5c8] sm:$0xff] }
0x3a31   :  { %7166 = vmatprep.subr.bf16.mxu1 %v8266_v31  ;;  %v7206_v54 = vpack.c.bf16 %v4278_v27, %v4277_v24  ;;  %v4313_v24 = vld [vmem:[#allocation4 + $0x6e0] sm:$0xff]  ;;  %v4314_v27 = vld [vmem:[#allocation4 + $0x6e8] sm:$0xff] }
0x3a33   :  { %4173 = vmatmul.mubr.f32.vlgmr.msra.gmra.mrb[8].mxu1 %v3645_v0  ;;  %v4264_v0 = vld [vmem:[#allocation4 + $0x558] sm:$0xff] }
0x3a34   :  { %7168 = vmatpush3.bf16.msra.mxu1 %v7167_v20  ;;  %6583 = vmatprep.mubr.msk.f32.mxu1 %vm8267_vm5, %v8268_v38  ;;  %v4281_v20 = vld [vmem:[#allocation4 + $0x5e0] sm:$0xff]  ;;  %v7212_v4 = vpack.c.bf16 %v4264_v0, %v4263_v35  ;;  %v7248_v0 = vpack.c.bf16 %v4298_v61, %v4297_v60  ;;  %v4563_v61 = vld [vmem:[#allocation4 + $0x7f0] sm:$0xff] }
0x3a35   :  { %7169 = vmatprep.subr.bf16.mxu1 %v8266_v31  ;;  %v7214_v22 = vpack.c.bf16 %v4282_v2, %v4281_v20  ;;  %v4299_v2 = vld [vmem:[#allocation4 + $0x670] sm:$0xff] }
0x3a38   :  { %7171 = vmatpush3.bf16.msra.mxu1 %v7170_v8  ;;  %v4283_v8 = vld [vmem:[#allocation4 + $0x5f0] sm:$0xff] }
0x3a39   :  { %7172 = vmatprep.subr.bf16.mxu1 %v8266_v31 }
0x3a3c   :  { %7174 = vmatpush3.bf16.msra.mxu1 %v7173_v15  ;;  %v7218_v15 = vpack.c.bf16 %v4284_v9, %v4283_v8  ;;  %v4549_v9 = vld [vmem:[#allocation4 + $0x780] sm:$0xff] }
0x3a3d   :  { %7175 = vmatprep.subr.bf16.mxu1 %v8266_v31 }
0x3a40   :  { %7177 = vmatpush3.bf16.msra.mxu1 %v7176_v19  ;;  %v4301_v19 = vld [vmem:[#allocation4 + $0x680] sm:$0xff] }
0x3a41   :  { %7178 = vmatprep.subr.bf16.mxu1 %v8266_v31 }
0x3a44   :  { %7180 = vmatpush3.bf16.msra.mxu1 %v7179_v14  ;;  %v7222_v14 = vpack.c.bf16 %v4302_v21, %v4301_v19  ;;  %v4250_v19 = vld [vmem:[#allocation3 + $0x38] sm:$0xf] }
0x3a45   :  { %7181 = vmatprep.subr.bf16.mxu1 %v8266_v31 }
0x3a48   :  { %7183 = vmatpush3.bf16.msra.mxu1 %v7182_v23  ;;  %v4303_v23 = vld [vmem:[#allocation4 + $0x690] sm:$0xff] }
0x3a49   :  { %7184 = vmatprep.subr.bf16.mxu1 %v8266_v31  ;;  %v7226_v36 = vpack.c.bf16 %v4304_v25, %v4303_v23  ;;  %v4569_v23 = vld [vmem:[#allocation4 + $0x820] sm:$0xff]  ;;  %v4570_v25 = vld [vmem:[#allocation4 + $0x828] sm:$0xff] }
0x3a4c   :  { %7186 = vmatpush3.bf16.msra.mxu1 %v7185_v32  ;;  %v7224_v32 = vpack.c.bf16 %v4286_v29, %v4285_v17  ;;  %v4551_v17 = vld [vmem:[#allocation4 + $0x790] sm:$0xff]  ;;  %v4552_v29 = vld [vmem:[#allocation4 + $0x798] sm:$0xff] }
0x3a4d   :  { %7187 = vmatprep.subr.bf16.mxu1 %v8266_v31 }
0x3a50   :  { %7189 = vmatpush3.bf16.msra.mxu1 %v7188_v44  ;;  %v4305_v44 = vld [vmem:[#allocation4 + $0x6a0] sm:$0xff] }
0x3a51   :  { %7191 = vmatprep.subr.bf16.mxu1 %v7190_v6  ;;  %v4306_v6 = vld [vmem:[#allocation4 + $0x6a8] sm:$0xff] }
0x3a52   :  { %v7230_v62 = vpack.c.bf16 %v4306_v6, %v4305_v44 }
0x3a53   :  { %6584 = vmatmul.mubr.f32.vlgmr.msra.gmra.mrb[10].mxu1 %v3647_v47  ;;  %v4307_v47 = vld [vmem:[#allocation4 + $0x6b0] sm:$0xff] }
0x3a54   :  { %7193 = vmatpush3.bf16.msra.mxu1 %v7192_v48  ;;  %4397 = vmatprep.mubr.f32.mxu1 %v4249_v30  ;;  %v4308_v48 = vld [vmem:[#allocation4 + $0x6b8] sm:$0xff] }
0x3a55   :  { %7195 = vmatprep.subr.bf16.mxu1 %v7194_v56  ;;  %v7232_v56 = vpack.c.bf16 %v4290_v13, %v4289_v46  ;;  %v7234_v58 = vpack.c.bf16 %v4308_v48, %v4307_v47  ;;  %v4292_v30 = vld [vmem:[#allocation4 + $0x638] sm:$0xff]  ;;  %v4573_v46 = vld [vmem:[#allocation4 + $0x840] sm:$0xff]  ;;  %v4574_v13 = vld [vmem:[#allocation4 + $0x848] sm:$0xff] }
0x3a56   :  { %v7294_v48 = vpack.c.bf16 %v4574_v13, %v4573_v46 }
0x3a58   :  { %7197 = vmatpush3.bf16.msra.mxu1 %v7196_v53  ;;  %v7236_v53 = vpack.c.bf16 %v4292_v30, %v4291_v28  ;;  %v4575_v28 = vld [vmem:[#allocation4 + $0x850] sm:$0xff]  ;;  %v4576_v30 = vld [vmem:[#allocation4 + $0x858] sm:$0xff] }
0x3a59   :  { %7199 = vmatprep.subr.bf16.mxu1 %v7198_v55  ;;  %v7238_v55 = vpack.c.bf16 %v4310_v18, %v4309_v16  ;;  %v7298_v18 = vpack.c.bf16 %v4576_v30, %v4575_v28  ;;  %v4864_v30 = vld [vmem:[#allocation15] sm:$0xff] }
0x3a5c   :  { %7201 = vmatpush3.bf16.msra.mxu1 %v7200_v50  ;;  %v7240_v50 = vpack.c.bf16 %v4294_v57, %v4293_v52  ;;  %v4577_v52 = vld [vmem:[#allocation4 + $0x860] sm:$0xff]  ;;  %v4578_v57 = vld [vmem:[#allocation4 + $0x868] sm:$0xff] }
0x3a5d   :  { %7203 = vmatprep.subr.bf16.mxu1 %v7202_v59  ;;  %v7242_v59 = vpack.c.bf16 %v4312_v51, %v4311_v37  ;;  %v7302_v51 = vpack.c.bf16 %v4578_v57, %v4577_v52  ;;  %v4867_v52 = vld [vmem:[#allocation15 + $0x18] sm:$0xff] }
0x3a60   :  { %7205 = vmatpush3.bf16.msra.mxu1 %v7204_v49  ;;  %v7244_v49 = vpack.c.bf16 %v4296_v43, %v4295_v41  ;;  %v4579_v43 = vld [vmem:[#allocation4 + $0x870] sm:$0xff] }
0x3a61   :  { %7207 = vmatprep.subr.bf16.mxu1 %v7206_v54  ;;  %v7246_v54 = vpack.c.bf16 %v4314_v27, %v4313_v24  ;;  %v4580_v24 = vld [vmem:[#allocation4 + $0x878] sm:$0xff] }
0x3a62   :  { %v7306_v60 = vpack.c.bf16 %v4580_v24, %v4579_v43  ;;  %v4870_v24 = vld [vmem:[#allocation15 + $0x30] sm:$0xff] }
0x3a64   :  { %7209 = vmatpush3.bf16.msra.mxu1 %v7208_v3  ;;  %v4316_v3 = vld [vmem:[#allocation4 + $0x6f8] sm:$0xff] }
0x3a65   :  { %7211 = vmatprep.subr.bf16.mxu1 %v7210_v33  ;;  %v7250_v20 = vpack.c.bf16 %v4316_v3, %v4315_v1 }
0x3a68   :  { %7213 = vmatpush3.bf16.msra.mxu1 %v7212_v4  ;;  %v4300_v4 = vld [vmem:[#allocation4 + $0x678] sm:$0xff] }
0x3a69   :  { %7215 = vmatprep.subr.bf16.mxu1 %v7214_v22  ;;  %v4565_v22 = vld [vmem:[#allocation4 + $0x800] sm:$0xff]  ;;  %v7252_v7 = vpack.c.bf16 %v4300_v4, %v4299_v2 }
0x3a6a   :  { %v7278_v8 = vpack.c.bf16 %v4566_v5, %v4565_v22  ;;  %v4615_v22 = vld [vmem:[#allocation4 + $0x990] sm:$0xff]  ;;  %v4616_v5 = vld [vmem:[#allocation4 + $0x998] sm:$0xff] }
0x3a6c   :  { %7217 = vmatpush3.bf16.msra.mxu1 %v7216_v11  ;;  %v4550_v11 = vld [vmem:[#allocation4 + $0x788] sm:$0xff] }
0x3a6d   :  { %7219 = vmatprep.subr.bf16.mxu1 %v7218_v15  ;;  %v4545_v15 = vld [vmem:[#allocation3 + $0x30] sm:$0xf0]  ;;  %v7280_v21 = vpack.c.bf16 %v4550_v11, %v4549_v9  ;;  %v4619_v11 = vld [vmem:[#allocation4 + $0x9b0] sm:$0xff] }
0x3a70   :  { %7221 = vmatpush3.bf16.msra.mxu1 %v7220_v26  ;;  %v4635_v26 = vrot.slane %v4545_v15, 4  ;;  %v4620_v15 = vld [vmem:[#allocation4 + $0x9b8] sm:$0xff] }
0x3a71   :  { %7223 = vmatprep.subr.bf16.mxu1 %v7222_v14  ;;  %v7282_v14 = vpack.c.bf16 %v4568_v12, %v4567_v10  ;;  %v7352_v10 = vpack.c.bf16 %v4620_v15, %v4619_v11  ;;  %v4621_v12 = vld [vmem:[#allocation4 + $0x9c0] sm:$0xff] }
0x3a72   :  { %v4960_v11 = vld [vmem:[#allocation18 + $0x10] sm:$0xff] }
0x3a73   :  { %4398 = vmatmul.mubr.f32.vlgmr.msra.gmra.mrb[12].mxu1 %v4248_v34  ;;  %v7284_v34 = vpack.c.bf16 %v4552_v29, %v4551_v17  ;;  %v4625_v29 = vld [vmem:[#allocation4 + $0x9e0] sm:$0xff] }
0x3a74   :  { %7225 = vmatpush3.bf16.msra.mxu1 %v7224_v32  ;;  %4467 = vmatprep.mubr.f32.mxu1 %v4251_v42  ;;  %v7286_v32 = vpack.c.bf16 %v4570_v25, %v4569_v23  ;;  %v4572_v42 = vld [vmem:[#allocation4 + $0x838] sm:$0xff]  ;;  %v4626_v23 = vld [vmem:[#allocation4 + $0x9e8] sm:$0xff] }
0x3a75   :  { %7227 = vmatprep.subr.bf16.mxu1 %v7226_v36  ;;  %v4553_v36 = vld [vmem:[#allocation4 + $0x7a0] sm:$0xff]  ;;  %v7290_v6 = vpack.c.bf16 %v4572_v42, %v4571_v40  ;;  %v4628_v40 = vld [vmem:[#allocation4 + $0x9f8] sm:$0xff] }
0x3a76   :  { %v7288_v44 = vpack.c.bf16 %v4554_v39, %v4553_v36  ;;  %v7361_v36 = vpack.c.bf16 %v4626_v23, %v4625_v29  ;;  %v4627_v39 = vld [vmem:[#allocation4 + $0x9f0] sm:$0xff] }
0x3a77   :  { %v7364_v42 = vpack.c.bf16 %v4628_v40, %v4627_v39  ;;  %v4966_v23 = vld [vmem:[#allocation18 + $0x40] sm:$0xff] }
0x3a78   :  { %7229 = vmatpush3.bf16.msra.mxu1 %v7228_v45  ;;  %v4555_v45 = vld [vmem:[#allocation4 + $0x7b0] sm:$0xff] }
0x3a79   :  { %7231 = vmatprep.subr.bf16.mxu1 %v7230_v62  ;;  %v4556_v62 = vld [vmem:[#allocation4 + $0x7b8] sm:$0xff]  ;;  %v4970_v40 = vld [vmem:[#allocation18 + $0x60] sm:$0xff] }
0x3a7a   :  { %v7292_v47 = vpack.c.bf16 %v4556_v62, %v4555_v45 }
0x3a7c   :  { %7233 = vmatpush3.bf16.msra.mxu1 %v7232_v56  ;;  %v4557_v56 = vld [vmem:[#allocation4 + $0x7c0] sm:$0xff] }
0x3a7d   :  { %7235 = vmatprep.subr.bf16.mxu1 %v7234_v58  ;;  %v4558_v58 = vld [vmem:[#allocation4 + $0x7c8] sm:$0xff] }
0x3a7e   :  { %v7296_v16 = vpack.c.bf16 %v4558_v58, %v4557_v56 }
0x3a80   :  { %7237 = vmatpush3.bf16.msra.mxu1 %v7236_v53  ;;  %v4559_v53 = vld [vmem:[#allocation4 + $0x7d0] sm:$0xff] }
0x3a81   :  { %7239 = vmatprep.subr.bf16.mxu1 %v7238_v55  ;;  %v4560_v55 = vld [vmem:[#allocation4 + $0x7d8] sm:$0xff] }
0x3a82   :  { %v7300_v37 = vpack.c.bf16 %v4560_v55, %v4559_v53 }
0x3a84   :  { %7241 = vmatpush3.bf16.msra.mxu1 %v7240_v50  ;;  %v4561_v50 = vld [vmem:[#allocation4 + $0x7e0] sm:$0xff] }
0x3a85   :  { %7243 = vmatprep.subr.bf16.mxu1 %v7242_v59  ;;  %v4562_v59 = vld [vmem:[#allocation4 + $0x7e8] sm:$0xff] }
0x3a86   :  { %v5822_v63 = vpop.f32.mrb[0].mxu1 }
0x3a87   :  { %v5823_v33 = vpop.f32.mrb[1].mxu1 }
0x3a88   :  { %v9310_v35 = vadd.f32 %v5823_v33, %v5822_v63  ;;  %7245 = vmatpush3.bf16.msra.mxu1 %v7244_v49  ;;  %v4564_v63 = vld [vmem:[#allocation4 + $0x7f8] sm:$0xff] }
0x3a89   :  { %7247 = vmatprep.subr.bf16.mxu1 %v7246_v54  ;;  %v7304_v54 = vpack.c.bf16 %v4562_v59, %v4561_v50  ;;  %v7308_v3 = vpack.c.bf16 %v4564_v63, %v4563_v61  ;;  %v4544_v33 = vld [vmem:[#allocation3 + $0x28] sm:$0xf0]  ;;  %v4868_v59 = vld [vmem:[#allocation15 + $0x20] sm:$0xff] }
0x3a8a   :  { %v4634_v2 = vrot.slane %v4544_v33, 4  ;;  %v4874_v63 = vld [vmem:[#allocation15 + $0x50] sm:$0xff]  ;;  %v4876_v33 = vld [vmem:[#allocation15 + $0x60] sm:$0xff] }
0x3a8c   :  { %7249 = vmatpush3.bf16.msra.mxu1 %v7248_v0  ;;  %v4613_v0 = vld [vmem:[#allocation4 + $0x980] sm:$0xff] }
0x3a8d   :  { %7251 = vmatprep.subr.bf16.mxu1 %v7250_v20  ;;  %v4614_v20 = vld [vmem:[#allocation4 + $0x988] sm:$0xff] }
0x3a8e   :  { %v7343_v4 = vpack.c.bf16 %v4614_v20, %v4613_v0  ;;  %v4877_v0 = vld [vmem:[#allocation15 + $0x68] sm:$0xff] }
0x3a90   :  { %7253 = vmatpush3.bf16.msra.mxu1 %v7252_v7  ;;  %v7346_v7 = vpack.c.bf16 %v4616_v5, %v4615_v22  ;;  %v4878_v5 = vld [vmem:[#allocation15 + $0x70] sm:$0xff] }
0x3a91   :  { %7279 = vmatprep.subr.bf16.mxu1 %v7278_v8  ;;  %v4618_v8 = vld [vmem:[#allocation4 + $0x9a8] sm:$0xff] }
0x3a93   :  { %4468 = vmatmul.mubr.f32.vlgmr.msra.gmra.mrb[14].mxu1 %v4250_v19  ;;  %v4622_v19 = vld [vmem:[#allocation4 + $0x9c8] sm:$0xff] }
0x3a94   :  { %7281 = vmatpush3.bf16.msra.mxu1 %v7280_v21  ;;  %4708 = vmatprep.mubr.f32.mxu1 %v4635_v26  ;;  %v7355_v21 = vpack.c.bf16 %v4622_v19, %v4621_v12  ;;  %v4623_v26 = vld [vmem:[#allocation4 + $0x9d0] sm:$0xff] }
0x3a95   :  { %7283 = vmatprep.subr.bf16.mxu1 %v7282_v14  ;;  %v4624_v14 = vld [vmem:[#allocation4 + $0x9d8] sm:$0xff]  ;;  %v4962_v19 = vld [vmem:[#allocation18 + $0x20] sm:$0xff] }
0x3a96   :  { %v7358_v17 = vpack.c.bf16 %v4624_v14, %v4623_v26  ;;  %v4964_v14 = vld [vmem:[#allocation18 + $0x30] sm:$0xff] }
0x3a98   :  { %7285 = vmatpush3.bf16.msra.mxu1 %v7284_v34 }
0x3a99   :  { %7287 = vmatprep.subr.bf16.mxu1 %v7286_v32 }
0x3a9c   :  { %7289 = vmatpush3.bf16.msra.mxu1 %v7288_v44  ;;  %v4548_v44 = vld [vmem:[#allocation3 + $0x48] sm:$0xf0] }
0x3a9d   :  { %7291 = vmatprep.subr.bf16.mxu1 %v7290_v6  ;;  %v4638_v6 = vrot.slane %v4548_v44, 4 }
0x3aa0   :  { %7293 = vmatpush3.bf16.msra.mxu1 %v7292_v47 }
0x3aa1   :  { %7295 = vmatprep.subr.bf16.mxu1 %v7294_v48 }
0x3aa4   :  { %7297 = vmatpush3.bf16.msra.mxu1 %v7296_v16  ;;  %v4865_v16 = vld [vmem:[#allocation15 + $0x8] sm:$0xff] }
0x3aa5   :  { %7299 = vmatprep.subr.bf16.mxu1 %v7298_v18  ;;  %v4866_v18 = vld [vmem:[#allocation15 + $0x10] sm:$0xff]  ;;  %v7367_v55 = vpack.c.bf16 %v4865_v16, %v4864_v30 }
0x3aa6   :  { %v5857_v41 = vpop.f32.mrb[2].mxu1  ;;  %v7370_v50 = vpack.c.bf16 %v4867_v52, %v4866_v18 }
0x3aa7   :  { %v5858_v27 = vpop.f32.mrb[3].mxu1  ;;  %7368 = vmatpush3.bf16.msra.mxu0 %v7367_v55 }
0x3aa8   :  { %v5859_v49 = vadd.f32 %v5858_v27, %v5857_v41  ;;  %7301 = vmatpush3.bf16.msra.mxu1 %v7300_v37  ;;  %7369 = vmatprep.subr.bf16.mxu0 %v8266_v31  ;;  %v4869_v41 = vld [vmem:[#allocation15 + $0x28] sm:$0xff]  ;;  %v4871_v27 = vld [vmem:[#allocation15 + $0x38] sm:$0xff] }
0x3aa9   :  { %7303 = vmatprep.subr.bf16.mxu1 %v7302_v51  ;;  %v7373_v43 = vpack.c.bf16 %v4869_v41, %v4868_v59 }
0x3aaa   :  { %v3965_v1 = vadd.f32 %v5859_v49, %v9310_v35  ;;  %v4617_v35 = vld [vmem:[#allocation4 + $0x9a0] sm:$0xff]  ;;  %v7376_v49 = vpack.c.bf16 %v4871_v27, %v4870_v24  ;;  %v4973_v24 = vld [vmem:[#allocation18 + $0x78] sm:$0xff] }
0x3aab   :  { %v7349_v9 = vpack.c.bf16 %v4618_v8, %v4617_v35  ;;  %7371 = vmatpush3.bf16.msra.mxu0 %v7370_v50  ;;  %v4958_v8 = vld [vmem:[#allocation18] sm:$0xff]  ;;  %v5067_v27 = vld [vmem:[#allocation23] sm:$0xff] }
0x3aac   :  { %7305 = vmatpush3.bf16.msra.mxu1 %v7304_v54  ;;  %7372 = vmatprep.subr.bf16.mxu0 %v8266_v31  ;;  %v4872_v54 = vld [vmem:[#allocation15 + $0x40] sm:$0xff] }
0x3aad   :  { %7307 = vmatprep.subr.bf16.mxu1 %v7306_v60  ;;  %v4873_v60 = vld [vmem:[#allocation15 + $0x48] sm:$0xff] }
0x3aae   :  { %v7379_v61 = vpack.c.bf16 %v4873_v60, %v4872_v54  ;;  %v5070_v60 = vld [vmem:[#allocation23 + $0x18] sm:$0xff] }
0x3aaf   :  { %7374 = vmatpush3.bf16.msra.mxu0 %v7373_v43  ;;  %v4972_v43 = vld [vmem:[#allocation18 + $0x70] sm:$0xff] }
0x3ab0   :  { %7309 = vmatpush3.bf16.msra.mxu1 %v7308_v3  ;;  %7375 = vmatprep.subr.bf16.mxu0 %v8266_v31 }
0x3ab1   :  { %7342 = vmatprep.subr.bf16.mxu1 %v8266_v31 }
0x3ab3   :  { %4709 = vmatmul.mubr.f32.vlgmr.msra.gmra.mrb[16].mxu1 %v4634_v2  ;;  %7377 = vmatpush3.bf16.msra.mxu0 %v7376_v49  ;;  %v7385_v2 = vpack.c.bf16 %v4877_v0, %v4876_v33  ;;  %v5068_v49 = vld [vmem:[#allocation23 + $0x8] sm:$0xff]  ;;  %v5073_v33 = vld [vmem:[#allocation23 + $0x30] sm:$0xff]  ;;  %v5074_v0 = vld [vmem:[#allocation23 + $0x38] sm:$0xff] }
0x3ab4   :  { %7344 = vmatpush3.bf16.msra.mxu1 %v7343_v4  ;;  %6653 = vmatprep.mubr.msk.f32.mxu1 %vm8267_vm5, %v8268_v38  ;;  %v7415_v54 = vpack.c.bf16 %v5068_v49, %v5067_v27  ;;  %v5243_v27 = vld [vmem:[#allocation26 + $0x38] sm:$0xff] }
0x3ab5   :  { %7345 = vmatprep.subr.bf16.mxu1 %v8266_v31  ;;  %7378 = vmatprep.subr.bf16.mxu0 %v8266_v31 }
0x3ab7   :  { %7380 = vmatpush3.bf16.msra.mxu0 %v7379_v61 }
0x3ab8   :  { %7347 = vmatpush3.bf16.msra.mxu1 %v7346_v7  ;;  %7381 = vmatprep.subr.bf16.mxu0 %v8266_v31  ;;  %v4879_v7 = vld [vmem:[#allocation15 + $0x78] sm:$0xff] }
0x3ab9   :  { %7348 = vmatprep.subr.bf16.mxu1 %v8266_v31  ;;  %v7388_v35 = vpack.c.bf16 %v4879_v7, %v4878_v5  ;;  %v5077_v5 = vld [vmem:[#allocation23 + $0x50] sm:$0xff]  ;;  %v5078_v7 = vld [vmem:[#allocation23 + $0x58] sm:$0xff] }
0x3abc   :  { %7350 = vmatpush3.bf16.msra.mxu1 %v7349_v9  ;;  %v4959_v9 = vld [vmem:[#allocation18 + $0x8] sm:$0xff] }
0x3abd   :  { %7351 = vmatprep.subr.bf16.mxu1 %v8266_v31  ;;  %v7391_v15 = vpack.c.bf16 %v4959_v9, %v4958_v8  ;;  %v5621_v8 = vld [vmem:[#allocation17] ss:$0 sm:$0xff]  ;;  %v5057_v9 = vld [vmem:[#allocation21] sm:$0xff] }
0x3ac0   :  { %7353 = vmatpush3.bf16.msra.mxu1 %v7352_v10  ;;  %v4961_v10 = vld [vmem:[#allocation18 + $0x18] sm:$0xff] }
0x3ac1   :  { %7354 = vmatprep.subr.bf16.mxu1 %v8266_v31  ;;  %v7394_v12 = vpack.c.bf16 %v4961_v10, %v4960_v11  ;;  %v5058_v11 = vld [vmem:[#allocation21 + $0x8] sm:$0xff] }
0x3ac4   :  { %7356 = vmatpush3.bf16.msra.mxu1 %v7355_v21  ;;  %v4963_v21 = vld [vmem:[#allocation18 + $0x28] sm:$0xff] }
0x3ac5   :  { %7357 = vmatprep.subr.bf16.mxu1 %v8266_v31  ;;  %v7397_v26 = vpack.c.bf16 %v4963_v21, %v4962_v19  ;;  %v7439_v19 = vpack.c.bf16 %v5058_v11, %v5057_v9  ;;  %v5333_v9 = vld [vmem:[%s9483_s18 + $0x18] sm:$0xff] }
0x3ac6   :  { %v4034_v25 = vpop.f32.mrb[4].mxu1 }
0x3ac7   :  { %v4035_v34 = vadd.f32 %v4034_v25, %v3965_v1  ;;  %v6550_v32 = vpop.f32.mrb[5].mxu1  ;;  %v4875_v1 = vld [vmem:[#allocation15 + $0x58] sm:$0xff]  ;;  %v4967_v25 = vld [vmem:[#allocation18 + $0x48] sm:$0xff] }
0x3ac8   :  { %7359 = vmatpush3.bf16.msra.mxu1 %v7358_v17  ;;  %v7382_v3 = vpack.c.bf16 %v4875_v1, %v4874_v63  ;;  %v4965_v17 = vld [vmem:[#allocation18 + $0x38] sm:$0xff]  ;;  %v4968_v32 = vld [vmem:[#allocation18 + $0x50] sm:$0xff] }
0x3ac9   :  { %7360 = vmatprep.subr.bf16.mxu1 %v8266_v31  ;;  %v7400_v29 = vpack.c.bf16 %v4965_v17, %v4964_v14  ;;  %v5071_v63 = vld [vmem:[#allocation23 + $0x20] sm:$0xff]  ;;  %v5072_v1 = vld [vmem:[#allocation23 + $0x28] sm:$0xff] }
0x3aca   :  { %7383 = vmatpush3.bf16.msra.mxu0 %v7382_v3  ;;  %v7421_v3 = vpack.c.bf16 %v5072_v1, %v5071_v63  ;;  %v5060_v14 = vld [vmem:[#allocation21 + $0x18] sm:$0xff] }
0x3acb   :  { %7384 = vmatprep.subr.bf16.mxu0 %v8266_v31  ;;  %v5248_v1 = vld [vmem:[#allocation26 + $0x60] sm:$0xff] }
0x3acc   :  { %7362 = vmatpush3.bf16.msra.mxu1 %v7361_v36  ;;  %v4969_v36 = vld [vmem:[#allocation18 + $0x58] sm:$0xff] }
0x3acd   :  { %7363 = vmatprep.subr.bf16.mxu1 %v8266_v31  ;;  %v7406_v39 = vpack.c.bf16 %v4969_v36, %v4968_v32  ;;  %v5064_v32 = vld [vmem:[#allocation21 + $0x38] sm:$0xff] }
0x3ace   :  { %7386 = vmatpush3.bf16.msra.mxu0 %v7385_v2  ;;  %v5075_v2 = vld [vmem:[#allocation23 + $0x40] sm:$0xff] }
0x3acf   :  { %7387 = vmatprep.subr.bf16.mxu0 %v8266_v31 }
0x3ad0   :  { %7365 = vmatpush3.bf16.msra.mxu1 %v7364_v42  ;;  %v4971_v42 = vld [vmem:[#allocation18 + $0x68] sm:$0xff] }
0x3ad1   :  { %7390 = vmatprep.subr.bf16.mxu1 %v8266_v31  ;;  %v9326_v47 = vpop.f32.mrb[40].mxu0 }
0x3ad2   :  { %v6620_v48 = vpop.f32.mrb[41].mxu0  ;;  %7389 = vmatpush3.bf16.msra.mxu0 %v7388_v35  ;;  %v7430_v35 = vpack.c.bf16 %v5078_v7, %v5077_v5  ;;  %v5330_v5 = vld [vmem:[%s9483_s18] sm:$0xff]  ;;  %v5331_v7 = vld [vmem:[%s9483_s18 + $0x8] sm:$0xff] }
0x3ad3   :  { %6654 = vmatmul.mubr.f32.vlgmr.msra.gmra.mrb[18].mxu1 %v4638_v6  ;;  %7414 = vmatprep.subr.bf16.mxu0 %v8266_v31  ;;  %v7409_v6 = vpack.c.bf16 %v4971_v42, %v4970_v40  ;;  %v5080_v40 = vld [vmem:[#allocation23 + $0x68] sm:$0xff] }
0x3ad4   :  { %6723 = vmatprep.mubr.msk.f32.mxu1 %vm8267_vm5, %v8268_v38  ;;  %7392 = vmatpush3.bf16.msra.mxu1 %v7391_v15 }
0x3ad5   :  { %7393 = vmatprep.subr.bf16.mxu1 %v8266_v31 }
0x3ad8   :  { %7395 = vmatpush3.bf16.msra.mxu1 %v7394_v12 }
0x3ad9   :  { %7396 = vmatprep.subr.bf16.mxu1 %v8266_v31 }
0x3adc   :  { %7398 = vmatpush3.bf16.msra.mxu1 %v7397_v26  ;;  %v5059_v26 = vld [vmem:[#allocation21 + $0x10] sm:$0xff] }
0x3add   :  { %7399 = vmatprep.subr.bf16.mxu1 %v8266_v31  ;;  %v7442_v17 = vpack.c.bf16 %v5060_v14, %v5059_v26  ;;  %v5338_v14 = vld [vmem:[%s9483_s18 + $0x40] sm:$0xff] }
0x3ae0   :  { %7401 = vmatpush3.bf16.msra.mxu1 %v7400_v29  ;;  %v5061_v29 = vld [vmem:[#allocation21 + $0x20] sm:$0xff] }
0x3ae1   :  { %7402 = vmatprep.subr.bf16.mxu1 %v8266_v31 }
0x3ae6   :  { %v5909_v45 = vpop.f32.mrb[6].mxu1 }
0x3ae7   :  { %v5910_v62 = vpop.f32.mrb[7].mxu1 }
0x3ae8   :  { %v5911_v46 = vadd.f32 %v5910_v62, %v5909_v45 }
0x3aea   :  { %v4105_v13 = vadd.f32 %v5911_v46, %v4035_v34  ;;  %v7403_v34 = vpack.c.bf16 %v4967_v25, %v4966_v23  ;;  %v5062_v23 = vld [vmem:[#allocation21 + $0x28] sm:$0xff] }
0x3aeb   :  { %v7445_v25 = vpack.c.bf16 %v5062_v23, %v5061_v29  ;;  %v5340_v23 = vld [vmem:[%s9483_s18 + $0x50] sm:$0xff] }
0x3aec   :  { %7404 = vmatpush3.bf16.msra.mxu1 %v7403_v34  ;;  %v5063_v34 = vld [vmem:[#allocation21 + $0x30] sm:$0xff] }
0x3aed   :  { %7405 = vmatprep.subr.bf16.mxu1 %v8266_v31  ;;  %v7448_v36 = vpack.c.bf16 %v5064_v32, %v5063_v34  ;;  %v5342_v32 = vld [vmem:[%s9483_s18 + $0x60] sm:$0xff] }
0x3af0   :  { %7407 = vmatpush3.bf16.msra.mxu1 %v7406_v39  ;;  %v5079_v39 = vld [vmem:[#allocation23 + $0x60] sm:$0xff] }
0x3af1   :  { %7408 = vmatprep.subr.bf16.mxu1 %v8266_v31  ;;  %v7433_v42 = vpack.c.bf16 %v5080_v40, %v5079_v39 }
0x3af4   :  { %7410 = vmatpush3.bf16.msra.mxu1 %v7409_v6  ;;  %v5066_v6 = vld [vmem:[#allocation21 + $0x48] sm:$0xff] }
0x3af5   :  { %7411 = vmatprep.subr.bf16.mxu1 %v8266_v31 }
0x3af7   :  { %v6118_v53 = vpop.f32.mrb[42].mxu0 }
0x3af8   :  { %v6119_v37 = vpop.f32.mrb[43].mxu0 }
0x3af9   :  { %v9328_v51 = vadd.f32 %v6119_v37, %v6118_v53  ;;  %v5620_v37 = vld [vmem:[#allocation14] ss:$0 sm:$0xff] }
0x3b06   :  { %v5944_v56 = vpop.f32.mrb[8].mxu1 }
0x3b07   :  { %v5945_v58 = vpop.f32.mrb[9].mxu1 }
0x3b08   :  { %v5946_v28 = vadd.f32 %v5945_v58, %v5944_v56 }
0x3b0a   :  { %v4175_v57 = vadd.f32 %v5946_v28, %v4105_v13 }
0x3b26   :  { %v4244_v20 = vpop.f32.mrb[10].mxu1 }
0x3b27   :  { %v4245_v4 = vadd.f32 %v4244_v20, %v4175_v57  ;;  %v6585_v22 = vpop.f32.mrb[11].mxu1  ;;  %v7424_v20 = vpack.c.bf16 %v5074_v0, %v5073_v33 }
0x3b46   :  { %v5996_v44 = vpop.f32.mrb[12].mxu1 }
0x3b47   :  { %v5997_v45 = vpop.f32.mrb[13].mxu1 }
0x3b48   :  { %v5998_v62 = vadd.f32 %v5997_v45, %v5996_v44  ;;  %v5065_v44 = vld [vmem:[#allocation21 + $0x40] sm:$0xff] }
0x3b49   :  { %v7451_v45 = vpack.c.bf16 %v5066_v6, %v5065_v44 }
0x3b66   :  { %v6031_v46 = vpop.f32.mrb[14].mxu1 }
0x3b67   :  { %v6032_v13 = vpop.f32.mrb[15].mxu1 }
0x3b68   :  { %v6033_v48 = vadd.f32 %v6032_v13, %v6031_v46  ;;  %v5082_v46 = vld [vmem:[#allocation23 + $0x78] sm:$0xff] }
0x3b6a   :  { %v4470_v56 = vadd.f32 %v6033_v48, %v5998_v62  ;;  %v5081_v62 = vld [vmem:[#allocation23 + $0x70] sm:$0xff]  ;;  %v5056_v48 = vld [vmem:[#allocation12] sm:$0x3] }
0x3b6b   :  { %v7436_v13 = vpack.c.bf16 %v5082_v46, %v5081_v62  ;;  %v5344_v46 = vld [vmem:[%s9483_s18 + $0x70] sm:$0xff] }
0x3b6c   :  { %v4540_v58 = vadd.f32 %v9326_v47, %v4470_v56  ;;  %v7412_v47 = vpack.c.bf16 %v4973_v24, %v4972_v43  ;;  %v5622_v56 = vld [vmem:[#allocation20] ss:$0 sm:$0xff] }
0x3b6d   :  { %v5241_v43 = vld [vmem:[#allocation26 + $0x28] sm:$0xff] }
0x3b6e   :  { %v4543_v28 = vadd.f32 %v4540_v58, %v4245_v4  ;;  %7413 = vmatpush3.bf16.msra.mxu1 %v7412_v47  ;;  %v5076_v4 = vld [vmem:[#allocation23 + $0x48] sm:$0xff]  ;;  %v5242_v47 = vld [vmem:[#allocation26 + $0x30] sm:$0xff] }
0x3b6f   :  { %7438 = vmatprep.subr.bf16.mxu1 %v8266_v31  ;;  %v7427_v22 = vpack.c.bf16 %v5076_v4, %v5075_v2  ;;  %v7463_v49 = vpack.c.bf16 %v5243_v27, %v5242_v47  ;;  %v5250_v2 = vld [vmem:[#allocation26 + $0x70] sm:$0xff]  ;;  %v5251_v4 = vld [vmem:[#allocation26 + $0x78] sm:$0xff] }
0x3b86   :  { %v6083_v30 = vpop.f32.mrb[16].mxu1 }
0x3b87   :  { %v6084_v16 = vpop.f32.mrb[17].mxu1 }
0x3b88   :  { %v6085_v18 = vadd.f32 %v6084_v16, %v6083_v30 }
0x3b8a   :  { %v4781_v53 = vadd.f32 %v9328_v51, %v6085_v18  ;;  %v5069_v51 = vld [vmem:[#allocation23 + $0x10] sm:$0xff]  ;;  %v5236_v18 = vld [vmem:[#allocation26] sm:$0xff] }
0x3b8b   :  { %v7418_v61 = vpack.c.bf16 %v5070_v60, %v5069_v51  ;;  %v5244_v51 = vld [vmem:[#allocation26 + $0x40] sm:$0xff] }
0x3ba6   :  { %v4850_v55 = vpop.f32.mrb[18].mxu1 }
0x3ba7   :  { %v4851_v52 = vadd.f32 %v4850_v55, %v4781_v53  ;;  %v6655_v57 = vpop.f32.mrb[19].mxu1  ;;  %v5237_v53 = vld [vmem:[#allocation26 + $0x8] sm:$0xff] }
0x3ba9   :  { %v4854_v50 = vadd.f32 %v4851_v52, %v4543_v28  ;;  %v7454_v52 = vpack.c.bf16 %v5237_v53, %v5236_v18 }
0x3bab   :  { %v4862_v59 = vadd.f32 %v5620_v37, %v4854_v50  ;;  %v5238_v37 = vld [vmem:[#allocation26 + $0x10] sm:$0xff]  ;;  %v5239_v50 = vld [vmem:[#allocation26 + $0x18] sm:$0xff] }
0x3bad   :  { %v4863_v41 = vmax.f32 %v4862_v59, 0.0  ;;  %v7457_v59 = vpack.c.bf16 %v5239_v50, %v5238_v37 }
0x3baf   :  { %6689 = vmatmul.mubr.f32.vlgmr.msra.gmra.mrb[44].mxu0 %v4863_v41  ;;  %v5240_v41 = vld [vmem:[#allocation26 + $0x20] sm:$0xff] }
0x3bb0   :  { %6758 = vmatprep.mubr.msk.f32.mxu0 %vm8267_vm5, %v8268_v38  ;;  %7416 = vmatpush3.bf16.msra.mxu0 %v7415_v54  ;;  %v7460_v24 = vpack.c.bf16 %v5241_v43, %v5240_v41  ;;  %v5245_v54 = vld [vmem:[#allocation26 + $0x48] sm:$0xff] }
0x3bb1   :  { %7417 = vmatprep.subr.bf16.mxu0 %v8266_v31  ;;  %v7466_v60 = vpack.c.bf16 %v5245_v54, %v5244_v51 }
0x3bb4   :  { %7419 = vmatpush3.bf16.msra.mxu0 %v7418_v61  ;;  %v5247_v61 = vld [vmem:[#allocation26 + $0x58] sm:$0xff] }
0x3bb5   :  { %7420 = vmatprep.subr.bf16.mxu0 %v8266_v31 }
0x3bb8   :  { %7422 = vmatpush3.bf16.msra.mxu0 %v7421_v3  ;;  %v5249_v3 = vld [vmem:[#allocation26 + $0x68] sm:$0xff] }
0x3bb9   :  { %7423 = vmatprep.subr.bf16.mxu0 %v8266_v31  ;;  %v7472_v33 = vpack.c.bf16 %v5249_v3, %v5248_v1 }
0x3bbc   :  { %7425 = vmatpush3.bf16.msra.mxu0 %v7424_v20 }
0x3bbd   :  { %7426 = vmatprep.subr.bf16.mxu0 %v8266_v31 }
0x3bc0   :  { %7428 = vmatpush3.bf16.msra.mxu0 %v7427_v22  ;;  %v7475_v22 = vpack.c.bf16 %v5251_v4, %v5250_v2 }
0x3bc1   :  { %7429 = vmatprep.subr.bf16.mxu0 %v8266_v31 }
0x3bc4   :  { %7431 = vmatpush3.bf16.msra.mxu0 %v7430_v35  ;;  %v5332_v35 = vld [vmem:[%s9483_s18 + $0x10] sm:$0xff] }
0x3bc5   :  { %7432 = vmatprep.subr.bf16.mxu0 %v8266_v31  ;;  %v7481_v11 = vpack.c.bf16 %v5333_v9, %v5332_v35 }
0x3bc8   :  { %7434 = vmatpush3.bf16.msra.mxu0 %v7433_v42  ;;  %v5624_v42 = vld [vmem:[#allocation24] ss:$0 sm:$0xff] }
0x3bc9   :  { %7435 = vmatprep.subr.bf16.mxu0 %v8266_v31 }
0x3bcc   :  { %7437 = vmatpush3.bf16.msra.mxu0 %v7436_v13  ;;  %v5345_v13 = vld [vmem:[%s9483_s18 + $0x78] sm:$0xff] }
0x3bcd   :  { %7453 = vmatprep.subr.bf16.mxu0 %v8266_v31 }
0x3c82   :  { %v4953_v15 = vpop.f32.mrb[44].mxu0 }
0x3c83   :  { %v4954_v10 = vadd.f32 %v5621_v8, %v4953_v15  ;;  %v6690_v12 = vpop.f32.mrb[45].mxu0  ;;  %v7478_v8 = vpack.c.bf16 %v5331_v7, %v5330_v5  ;;  %v5334_v15 = vld [vmem:[%s9483_s18 + $0x20] sm:$0xff] }
0x3c85   :  { %v4957_v21 = vmax.f32 %v4954_v10, 0.0  ;;  %v5335_v10 = vld [vmem:[%s9483_s18 + $0x28] sm:$0xff] }
0x3c86   :  { %v7484_v12 = vpack.c.bf16 %v5335_v10, %v5334_v15 }
0x3c87   :  { %6724 = vmatmul.mubr.f32.vlgmr.msra.gmra.mrb[20].mxu1 %v4957_v21  ;;  %v5337_v21 = vld [vmem:[%s9483_s18 + $0x38] sm:$0xff] }
0x3c88   :  { %7440 = vmatpush3.bf16.msra.mxu1 %v7439_v19  ;;  %6781 = vmatprep.mubr.msk.f32.mxu1 %vm8267_vm5, %v8268_v38  ;;  %v5336_v19 = vld [vmem:[%s9483_s18 + $0x30] sm:$0xff] }
0x3c89   :  { %7441 = vmatprep.subr.bf16.mxu1 %v8266_v31  ;;  %v7487_v26 = vpack.c.bf16 %v5337_v21, %v5336_v19 }
0x3c8c   :  { %7443 = vmatpush3.bf16.msra.mxu1 %v7442_v17  ;;  %v5339_v17 = vld [vmem:[%s9483_s18 + $0x48] sm:$0xff] }
0x3c8d   :  { %7444 = vmatprep.subr.bf16.mxu1 %v8266_v31  ;;  %v7490_v29 = vpack.c.bf16 %v5339_v17, %v5338_v14 }
0x3c90   :  { %7446 = vmatpush3.bf16.msra.mxu1 %v7445_v25  ;;  %v5341_v25 = vld [vmem:[%s9483_s18 + $0x58] sm:$0xff] }
0x3c91   :  { %7447 = vmatprep.subr.bf16.mxu1 %v8266_v31  ;;  %v7493_v34 = vpack.c.bf16 %v5341_v25, %v5340_v23 }
0x3c94   :  { %7449 = vmatpush3.bf16.msra.mxu1 %v7448_v36  ;;  %v5343_v36 = vld [vmem:[%s9483_s18 + $0x68] sm:$0xff]  ;;  %s8203_s18 = scalar_lea.vmem %s5438_s23, 32 }
0x3c95   :  { %7450 = vmatprep.subr.bf16.mxu1 %v8266_v31  ;;  %v7496_v39 = vpack.c.bf16 %v5343_v36, %v5342_v32  ;;  %p8204_p2 = scmp.ne.s32.totalorder %s5438_s23, %s8203_s18  ;;  %p8209_p4 = scmp.lt.s32.totalorder %s8203_s18, %s8203_s18 }
0x3c97   :  { %p8210_p5 = por %p8209_p4, %p8208_p3 }
0x3c98   :  { %7452 = vmatpush3.bf16.msra.mxu1 %v7451_v45 }
0x3c99   :  { %7477 = vmatprep.subr.bf16.mxu1 %v8266_v31  ;;  %p8211_p6 = pnand %p8210_p5, %p8204_p2 }
0x3c9b   :  { %6782 = vmatmul.mubr.msk.f32.vlgmr.msra.gmra.mrb[22].mxu1 %vm5153_vm6, %v5056_v48  ;;  %v7499_v48 = vpack.c.bf16 %v5345_v13, %v5344_v46 }
0x3c9c   :  { %6851 = vmatprep.mubr.msk.f32.mxu1 %vm8267_vm5, %v8268_v38  ;;  %7479 = vmatpush3.bf16.msra.mxu1 %v7478_v8 }
0x3c9d   :  { %7480 = vmatprep.subr.bf16.mxu1 %v8266_v31 }
0x3ca0   :  { %7482 = vmatpush3.bf16.msra.mxu1 %v7481_v11 }
0x3ca1   :  { %7483 = vmatprep.subr.bf16.mxu1 %v8266_v31 }
0x3ca4   :  { %7485 = vmatpush3.bf16.msra.mxu1 %v7484_v12 }
0x3ca5   :  { %7486 = vmatprep.subr.bf16.mxu1 %v8266_v31 }
0x3ca8   :  { %7488 = vmatpush3.bf16.msra.mxu1 %v7487_v26 }
0x3ca9   :  { %7489 = vmatprep.subr.bf16.mxu1 %v8266_v31 }
0x3cac   :  { %7491 = vmatpush3.bf16.msra.mxu1 %v7490_v29 }
0x3cad   :  { %7492 = vmatprep.subr.bf16.mxu1 %v8266_v31 }
0x3cb0   :  { %7494 = vmatpush3.bf16.msra.mxu1 %v7493_v34 }
0x3cb1   :  { %7495 = vmatprep.subr.bf16.mxu1 %v8266_v31 }
0x3cb4   :  { %7497 = vmatpush3.bf16.msra.mxu1 %v7496_v39 }
0x3cb5   :  { %7498 = vmatprep.subr.bf16.mxu1 %v8266_v31 }
0x3cb8   :  { %7500 = vmatpush3.bf16.msra.mxu1 %v7499_v48 }
0x3d5a   :  { %v5047_v58 = vpop.f32.mrb[20].mxu1 }
0x3d5b   :  { %v5048_v28 = vadd.f32 %v5622_v56, %v5047_v58  ;;  %v6725_v30 = vpop.f32.mrb[21].mxu1  ;;  %v5625_v56 = vld [vmem:[#allocation27] ss:$0 sm:$0xff] }
0x3d5d   :  { %v5051_v16 = vmax.f32 %v5048_v28, 0.0 }
0x3d5f   :  { %v5053_v55 = vrot.slane %v5051_v16, 2 }
0x3d61   :  { %v5055_v57 = vsub.f32 %v5051_v16, %v5053_v55  ;;  %v5626_v16 = vld [vmem:[#allocation29] ss:$0 sm:$0xff] }
0x3d63   :  { %6759 = vmatmul.mubr.f32.vlgmr.msra.gmra.mrb[46].mxu0 %v5055_v57 }
0x3d64   :  { %7455 = vmatpush3.bf16.msra.mxu0 %v7454_v52  ;;  %6816 = vmatprep.mubr.msk.f32.mxu0 %vm8267_vm5, %v8268_v38  ;;  %v5246_v38 = vld [vmem:[#allocation26 + $0x50] sm:$0xff] }
0x3d65   :  { %7456 = vmatprep.subr.bf16.mxu0 %v8266_v31  ;;  %v7469_v63 = vpack.c.bf16 %v5247_v61, %v5246_v38 }
0x3d68   :  { %7458 = vmatpush3.bf16.msra.mxu0 %v7457_v59 }
0x3d69   :  { %7459 = vmatprep.subr.bf16.mxu0 %v8266_v31 }
0x3d6c   :  { %7461 = vmatpush3.bf16.msra.mxu0 %v7460_v24 }
0x3d6d   :  { %7462 = vmatprep.subr.bf16.mxu0 %v8266_v31 }
0x3d6e   :  { %v5223_v0 = vpop.f32.mrb[22].mxu1 }
0x3d6f   :  { %v6783_v20 = vpop.f32.mrb[23].mxu1 }
0x3d70   :  { %7464 = vmatpush3.bf16.msra.mxu0 %v7463_v49 }
0x3d71   :  { %7465 = vmatprep.subr.bf16.mxu0 %v8266_v31 }
0x3d74   :  { %7467 = vmatpush3.bf16.msra.mxu0 %v7466_v60 }
0x3d75   :  { %7468 = vmatprep.subr.bf16.mxu0 %v8266_v31 }
0x3d78   :  { %7470 = vmatpush3.bf16.msra.mxu0 %v7469_v63 }
0x3d79   :  { %7471 = vmatprep.subr.bf16.mxu0 %v8266_v31 }
0x3d7c   :  { %7473 = vmatpush3.bf16.msra.mxu0 %v7472_v33 }
0x3d7d   :  { %7474 = vmatprep.subr.bf16.mxu0 %v8266_v31 }
0x3d80   :  { %7476 = vmatpush3.bf16.msra.mxu0 %v7475_v22 }
0x3e36   :  { %v5149_v40 = vpop.f32.mrb[46].mxu0 }
0x3e37   :  { %v5224_v44 = vadd.f32 %v5223_v0, %v5149_v40  ;;  %v6760_v6 = vpop.f32.mrb[47].mxu0 }
0x3e39   :  { %v5234_v45 = vadd.f32 %v5624_v42, %v5224_v44 }
0x3e3b   :  { %v5235_v62 = vmax.f32 %v5234_v45, 0.0 }
0x3e3d   :  { %6817 = vmatmul.mubr.f32.vlgmr.msra.gmra.mrb[48].mxu0 %v5235_v62 }
0x3f10   :  { %v5325_v58 = vpop.f32.mrb[48].mxu0 }
0x3f11   :  { %v5326_v31 = vadd.f32 %v5625_v56, %v5325_v58  ;;  %v6818_v28 = vpop.f32.mrb[49].mxu0 }
0x3f13   :  { %v5329_v30 = vmax.f32 %v5326_v31, 0.0 }
0x3f15   :  { %6852 = vmatmul.mubr.f32.vlgmr.msra.gmra.mrb[24].mxu1 %v5329_v30 }
0x3fe8   :  { %v5419_v18 = vpop.f32.mrb[24].mxu1 }
0x3fe9   :  { %v5420_v53 = vadd.f32 %v5626_v16, %v5419_v18  ;;  %v6853_v55 = vpop.f32.mrb[25].mxu1 }
0x3feb   :  { %v5627_v52 = vmul.f32 -1.442695, %v5420_v53 }
0x3fed   :  { %7847 = vpow2.f32 %v5627_v52 }
0x3ff7   :  { %v7848_v57 = vpop.eup %7847 }
0x3ff8   :  { %v5426_v37 = vadd.f32 1.0, %v7848_v57 }
0x3ffa   :  { %7849 = vrcp.f32 %v5426_v37 }
0x4004   :  { %v7850_v50 = vpop.eup %7849 }
0x4005   :  { %5430 = vst.msk [vmem:[#allocation30] sm:$0x3] %vm5429_vm7, %v7850_v50 }
0x4006   :  { %8214 = shalt.err (!%p8211_p6)
}
0x4007   :  { %s9484_s22 = sld [smem:[#allocation51_spill]] }
0x400d   :  { %s8215_s21 = scalar_lea.hbm %s9484_s22, 32 }
0x400e   :  { %p8216_p7 = scmp.ne.s32.totalorder %s9484_s22, %s8215_s21  ;;  %p8219_p8 = scmp.lt.u32.totalorder %s8215_s21, %s9484_s22 }
0x4010   :  { %p8221_p9 = pnand %p8219_p8, %p8216_p7 }
0x4012   :  { %8224 = shalt.err (!%p8221_p9)
}
0x4013   :  { %5440 = dma.vmem_to_hbm [thread:$0]  %s5438_s23, 32, %s9484_s22, [#allocation8]  }
0x4014   :  { %8243 = dma.done.wait [#allocation8], 32  }
0x4015   :  { %8244 = vsyncadd [#allocation8], 4294967264 }
0x4016   :  { %5444 = vsyncpa [#allocation7], 1 }
0x4017   :  { %5445 = vsyncpa [#allocation10], 1 }
0x4018   :  { %5446 = vsyncpa [#allocation13], 1 }
0x4019   :  { %5447 = vsyncpa [#allocation16], 1 }
0x401a   :  { %5448 = vsyncpa [#allocation19], 1 }
0x401b   :  { %5449 = vsyncpa [#allocation22], 1 }
0x401c   :  { %5450 = vsyncpa [#allocation25], 1 }
0x401d   :  { %5451 = vsyncpa [#allocation28], 1 }
0x401e   :  { %5452 = vsyncpa [#allocation8], 1 }
0x401f   :  { %5453 = vsyncmov [#allocation5] }
0x4022   :  { %s5454_s11 = vpop.sfrf %5453 }
0x4023   :  { %p5628_p10 = scmp.ne.s32.totalorder %s5454_s11, 0 }
0x4025   :  { %5458 = shalt.err (%p5628_p10)  }

</bundles_post_ra>
